<compile_context>
chip_gen: v6e
topology: v6e:2x2x1
jax: 0.10.0
libtpu: 0.0.40
codegen_flags: <defaults>
</compile_context>

<pallas_src>
import functools
import math

import jax
import jax.numpy as jnp
from jax.experimental import pallas as pl
from jax.experimental.pallas import tpu as pltpu

DIM = 256       # point_net output width (hardcoded in the PyTorch module)
GROUP = 10      # max_pool2d kernel_size=(1, 10)


# ------------------------------------------------------------------ kernel --

def _map_encoder_kernel(x_ref, pe_ref, w1_ref, b1_ref, w2_ref, b2_ref, w3_ref, b3_ref,
                        enc_ref, maskf_ref):
    """Fused point_net + positional-encoding + (1,10) max-pool + padding-mask.

    x_ref   : (1, GROUP, s_tile, map_dim)  -- point j of every pooled group in this tile
    pe_ref  : (GROUP, s_tile, DIM)         -- positional encoding, same layout
    enc_ref : (1, s_tile, DIM)
    maskf_ref: (1, s_tile, 1)              -- 1.0 where the group is padded
    """
    w1 = w1_ref[...]
    b1 = b1_ref[...]
    w2 = w2_ref[...]
    b2 = b2_ref[...]
    w3 = w3_ref[...]
    b3 = b3_ref[...]

    acc = None
    macc = None
    # Static unroll over the 10 points of each pooled group; every iteration is a clean
    # full-tile 2-D matmul chain (s_tile x map_dim -> 64 -> 128 -> 256) plus elementwise max.
    for j in range(GROUP):
        xj = x_ref[0, j]                                                     # (s_tile, map_dim)
        h = jnp.maximum(jnp.dot(xj, w1, preferred_element_type=jnp.float32) + b1, 0.0)
        h = jnp.maximum(jnp.dot(h, w2, preferred_element_type=jnp.float32) + b2, 0.0)
        y = jnp.dot(h, w3, preferred_element_type=jnp.float32) + b3 + pe_ref[j]
        mj = jnp.where(xj[:, 0:1] == 0.0, 1.0, 0.0)                          # (s_tile, 1)
        if j == 0:
            acc, macc = y, mj
        else:
            acc = jnp.maximum(acc, y)
            macc = jnp.maximum(macc, mj)

    enc_ref[0] = acc
    maskf_ref[0] = macc


def _pick_s_tile(s_total, max_tile=256):
    """Largest multiple-of-8 divisor of s_total not exceeding max_tile (or the full extent)."""
    if s_total <= max_tile:
        return s_total
    for t in range(max_tile, 7, -1):
        if s_total % t == 0 and t % 8 == 0:
            return t
    return s_total


# ----------------------------------------------------------------- wrapper --

def map_encoder_forward(params, x):
    """MapEncoder.forward (eval). x: (B, N_e, N_p, map_dim) float32."""
    B, N_e, N_p, map_dim = x.shape
    assert N_p % GROUP == 0, "N_p must be a multiple of 10 (matches the PyTorch reshape/pool)"
    pe = params["pe"]                                    # (N_p, DIM), PositionalEncoding buffer
    assert pe.shape[0] == N_p, "map_len (PositionalEncoding max_len) must equal N_p"

    S = N_e * (N_p // GROUP)                             # number of pooled segments per batch
    s_tile = _pick_s_tile(S)
    n_tiles = S // s_tile

    # Layout plumbing in the wrapper (single cheap XLA transpose of the small input) so the
    # kernel never reshapes / strides: put the within-group point index j in front.
    #   x_t[b, j, g, :]  = x[b, e, q*10 + j, :]   with g = e*(N_p//10) + q
    x_t = x.reshape(B, S, GROUP, map_dim).transpose(0, 2, 1, 3)          # (B, GROUP, S, map_dim)
    pe_full = jnp.tile(pe, (N_e, 1))                                     # (N_e*N_p, DIM)
    pe_t = pe_full.reshape(S, GROUP, DIM).transpose(1, 0, 2)             # (GROUP, S, DIM)

    b1 = params["b1"].reshape(1, -1)
    b2 = params["b2"].reshape(1, -1)
    b3 = params["b3"].reshape(1, -1)

    enc, maskf = pl.pallas_call(
        _map_encoder_kernel,
        out_shape=(
            jax.ShapeDtypeStruct((B, S, DIM), jnp.float32),
            jax.ShapeDtypeStruct((B, S, 1), jnp.float32),
        ),
        grid=(B, n_tiles),
        in_specs=[
            pl.BlockSpec((1, GROUP, s_tile, map_dim), lambda b, t: (b, 0, t, 0)),
            pl.BlockSpec((GROUP, s_tile, DIM), lambda b, t: (0, t, 0)),
            pl.BlockSpec((map_dim, 64), lambda b, t: (0, 0)),
            pl.BlockSpec((1, 64), lambda b, t: (0, 0)),
            pl.BlockSpec((64, 128), lambda b, t: (0, 0)),
            pl.BlockSpec((1, 128), lambda b, t: (0, 0)),
            pl.BlockSpec((128, DIM), lambda b, t: (0, 0)),
            pl.BlockSpec((1, DIM), lambda b, t: (0, 0)),
        ],
        out_specs=[
            pl.BlockSpec((1, s_tile, DIM), lambda b, t: (b, t, 0)),
            pl.BlockSpec((1, s_tile, 1), lambda b, t: (b, t, 0)),
        ],
        compiler_params=pltpu.CompilerParams(
            dimension_semantics=("parallel", "parallel")),
    )(x_t, pe_t, params["w1"], b1, params["w2"], b2, params["w3"], b3)

    mask = maskf[..., 0] > 0.5                           # bool, True == padded segment
    return enc, mask


# ------------------------------------------------------------------ params --

def make_positional_encoding(max_len, d_model=DIM):
    position = jnp.arange(max_len, dtype=jnp.float32)[:, None]
    div_term = jnp.exp(jnp.arange(0, d_model, 2, dtype=jnp.float32)
                       * (-math.log(10000.0) / d_model))
    ang = position * div_term                            # (max_len, d_model//2)
    pe = jnp.zeros((max_len, d_model), jnp.float32)
    pe = pe.at[:, 0::2].set(jnp.sin(ang))
    pe = pe.at[:, 1::2].set(jnp.cos(ang))
    return pe


def init_params(key, map_dim, map_len):
    k1, k2, k3 = jax.random.split(key, 3)

    def w(k, shape, scale=0.1):
        return scale * jax.random.normal(k, shape, jnp.float32)

    return {
        "w1": w(k1, (map_dim, 64)), "b1": jnp.zeros((64,), jnp.float32),
        "w2": w(k2, (64, 128)), "b2": jnp.zeros((128,), jnp.float32),
        "w3": w(k3, (128, DIM)), "b3": jnp.zeros((DIM,), jnp.float32),
        "pe": make_positional_encoding(map_len, DIM),    # registered buffer
    }


# ---------------------------------------------------------------- reference --

def map_encoder_ref(params, x):
    """Pure-JAX reference (f32 'highest' matmul precision) for validation."""
    hp = jax.lax.Precision.HIGHEST
    B, N_e, N_p, _ = x.shape
    h = jnp.maximum(jnp.matmul(x, params["w1"], precision=hp) + params["b1"], 0.0)
    h = jnp.maximum(jnp.matmul(h, params["w2"], precision=hp) + params["b2"], 0.0)
    y = jnp.matmul(h, params["w3"], precision=hp) + params["b3"]
    y = y + params["pe"][None, None, :, :]
    g = N_p // GROUP
    enc = jnp.max(y.reshape(B, N_e, g, GROUP, DIM), axis=3).reshape(B, N_e * g, DIM)
    mz = (x[..., 0] == 0.0).astype(jnp.int32)
    mask = jnp.max(mz.reshape(B, N_e, g, GROUP), axis=-1).reshape(B, N_e * g) > 0
    return enc, mask


# --------------------------------------------------------------------- main --

if __name__ == "__main__":
    key = jax.random.PRNGKey(0)
    B, N_E, N_P, MAP_DIM = 2, 8, 50, 7                   # map_len = N_P = 50 (multiple of 10)

    pkey, dkey = jax.random.split(key)
    params = init_params(pkey, MAP_DIM, N_P)

    x = jax.random.normal(dkey, (B, N_E, N_P, MAP_DIM), jnp.float32)
    # Zero out the tail of the last two map elements -> those pooled groups become masked.
    x = x.at[:, -2:, 30:, :].set(0.0)

    fwd = jax.jit(map_encoder_forward)
    encoding, mask = fwd(params, x)
    jax.block_until_ready((encoding, mask))

    S = N_E * (N_P // GROUP)
    assert encoding.shape == (B, S, DIM)
    assert mask.shape == (B, S)

    enc_ref, mask_ref = jax.jit(map_encoder_ref)(params, x)
    assert bool(jnp.all(mask == mask_ref))
    assert bool(jnp.allclose(encoding, enc_ref, atol=5e-3, rtol=5e-3))

    print("KERNEL_OK")
</pallas_src>

<mosaic_0001>
module attributes {stable_mosaic.version = 11 : i64} {
  func.func @_map_encoder_kernel(%arg0: i32, %arg1: i32, %arg2: memref<1x10x40x7xf32, #tpu.memory_space<vmem>>, %arg3: memref<10x40x256xf32, #tpu.memory_space<vmem>>, %arg4: memref<7x64xf32, #tpu.memory_space<vmem>>, %arg5: memref<1x64xf32, #tpu.memory_space<vmem>>, %arg6: memref<64x128xf32, #tpu.memory_space<vmem>>, %arg7: memref<1x128xf32, #tpu.memory_space<vmem>>, %arg8: memref<128x256xf32, #tpu.memory_space<vmem>>, %arg9: memref<1x256xf32, #tpu.memory_space<vmem>>, %arg10: memref<1x40x256xf32, #tpu.memory_space<vmem>>, %arg11: memref<1x40x1xf32, #tpu.memory_space<vmem>>) attributes {dimension_semantics = [#tpu.dimension_semantics<parallel>, #tpu.dimension_semantics<parallel>], iteration_bounds = array<i64: 2, 1>, scalar_prefetch = 0 : i64, scratch_operands = 0 : i64, tpu.core_type = #tpu.core_type<tc>, window_params = [{transform_indices = @transform_0, window_bounds = array<i64: 1, 10, 40, 7>}, {transform_indices = @transform_1, window_bounds = array<i64: 10, 40, 256>}, {pipeline_mode = #tpu.pipeline_mode<synchronous>, transform_indices = @transform_2, window_bounds = array<i64: 7, 64>}, {pipeline_mode = #tpu.pipeline_mode<synchronous>, transform_indices = @transform_3, window_bounds = array<i64: 1, 64>}, {pipeline_mode = #tpu.pipeline_mode<synchronous>, transform_indices = @transform_4, window_bounds = array<i64: 64, 128>}, {pipeline_mode = #tpu.pipeline_mode<synchronous>, transform_indices = @transform_5, window_bounds = array<i64: 1, 128>}, {pipeline_mode = #tpu.pipeline_mode<synchronous>, transform_indices = @transform_6, window_bounds = array<i64: 128, 256>}, {pipeline_mode = #tpu.pipeline_mode<synchronous>, transform_indices = @transform_7, window_bounds = array<i64: 1, 256>}, {transform_indices = @transform_8, window_bounds = array<i64: 1, 40, 256>}, {transform_indices = @transform_9, window_bounds = array<i64: 1, 40, 1>}]} {
    %c0 = arith.constant 0 : index
    %c0_0 = arith.constant 0 : index
    %0 = vector.load %arg4[%c0, %c0_0] : memref<7x64xf32, #tpu.memory_space<vmem>>, vector<7x64xf32>
    %c0_1 = arith.constant 0 : index
    %c0_2 = arith.constant 0 : index
    %1 = vector.load %arg5[%c0_1, %c0_2] : memref<1x64xf32, #tpu.memory_space<vmem>>, vector<1x64xf32>
    %c0_3 = arith.constant 0 : index
    %c0_4 = arith.constant 0 : index
    %2 = vector.load %arg6[%c0_3, %c0_4] : memref<64x128xf32, #tpu.memory_space<vmem>>, vector<64x128xf32>
    %c0_5 = arith.constant 0 : index
    %c0_6 = arith.constant 0 : index
    %3 = vector.load %arg7[%c0_5, %c0_6] : memref<1x128xf32, #tpu.memory_space<vmem>>, vector<1x128xf32>
    %c0_7 = arith.constant 0 : index
    %c0_8 = arith.constant 0 : index
    %4 = vector.load %arg8[%c0_7, %c0_8] : memref<128x256xf32, #tpu.memory_space<vmem>>, vector<128x256xf32>
    %c0_9 = arith.constant 0 : index
    %c0_10 = arith.constant 0 : index
    %5 = vector.load %arg9[%c0_9, %c0_10] : memref<1x256xf32, #tpu.memory_space<vmem>>, vector<1x256xf32>
    %c0_11 = arith.constant 0 : index
    %c0_12 = arith.constant 0 : index
    %c0_13 = arith.constant 0 : index
    %c0_14 = arith.constant 0 : index
    %6 = vector.load %arg2[%c0_11, %c0_12, %c0_13, %c0_14] : memref<1x10x40x7xf32, #tpu.memory_space<vmem>>, vector<1x1x40x7xf32>
    %7 = vector.shape_cast %6 : vector<1x1x40x7xf32> to vector<40x7xf32>
    %cst = arith.constant dense<0.000000e+00> : vector<40x64xf32>
    %8 = tpu.matmul %7, %0, %cst {dimension_numbers = #tpu.dot_dimension_numbers<[1], [0], [0], [1], [0, 0, 1, 1], [], []>} : vector<40x7xf32>, vector<7x64xf32>, vector<40x64xf32> -> vector<40x64xf32>
    %9 = vector.broadcast %1 : vector<1x64xf32> to vector<40x64xf32>
    %10 = arith.addf %8, %9 : vector<40x64xf32>
    %cst_15 = arith.constant 0.000000e+00 : f32
    %11 = vector.broadcast %cst_15 : f32 to vector<40x64xf32>
    %12 = arith.maximumf %10, %11 : vector<40x64xf32>
    %cst_16 = arith.constant dense<0.000000e+00> : vector<40x128xf32>
    %13 = tpu.matmul %12, %2, %cst_16 {dimension_numbers = #tpu.dot_dimension_numbers<[1], [0], [0], [1], [0, 0, 1, 1], [], []>} : vector<40x64xf32>, vector<64x128xf32>, vector<40x128xf32> -> vector<40x128xf32>
    %14 = vector.broadcast %3 : vector<1x128xf32> to vector<40x128xf32>
    %15 = arith.addf %13, %14 : vector<40x128xf32>
    %cst_17 = arith.constant 0.000000e+00 : f32
    %16 = vector.broadcast %cst_17 : f32 to vector<40x128xf32>
    %17 = arith.maximumf %15, %16 : vector<40x128xf32>
    %cst_18 = arith.constant dense<0.000000e+00> : vector<40x256xf32>
    %18 = tpu.matmul %17, %4, %cst_18 {dimension_numbers = #tpu.dot_dimension_numbers<[1], [0], [0], [1], [0, 0, 1, 1], [], []>} : vector<40x128xf32>, vector<128x256xf32>, vector<40x256xf32> -> vector<40x256xf32>
    %19 = vector.broadcast %5 : vector<1x256xf32> to vector<40x256xf32>
    %20 = arith.addf %18, %19 : vector<40x256xf32>
    %c0_19 = arith.constant 0 : index
    %c0_20 = arith.constant 0 : index
    %c0_21 = arith.constant 0 : index
    %21 = vector.load %arg3[%c0_19, %c0_20, %c0_21] : memref<10x40x256xf32, #tpu.memory_space<vmem>>, vector<1x40x256xf32>
    %22 = vector.shape_cast %21 : vector<1x40x256xf32> to vector<40x256xf32>
    %23 = arith.addf %20, %22 : vector<40x256xf32>
    %24 = vector.extract_strided_slice %7 {offsets = [0, 0], sizes = [40, 1], strides = [1, 1]} : vector<40x7xf32> to vector<40x1xf32>
    %cst_22 = arith.constant 0.000000e+00 : f32
    %25 = vector.broadcast %cst_22 : f32 to vector<40x1xf32>
    %26 = arith.cmpf oeq, %24, %25 : vector<40x1xf32>
    %cst_23 = arith.constant 1.000000e+00 : f32
    %cst_24 = arith.constant 0.000000e+00 : f32
    %27 = vector.broadcast %cst_23 : f32 to vector<40x1xf32>
    %28 = vector.broadcast %cst_24 : f32 to vector<40x1xf32>
    %29 = arith.select %26, %27, %28 : vector<40x1xi1>, vector<40x1xf32>
    %c0_25 = arith.constant 0 : index
    %c1 = arith.constant 1 : index
    %c0_26 = arith.constant 0 : index
    %c0_27 = arith.constant 0 : index
    %30 = vector.load %arg2[%c0_25, %c1, %c0_26, %c0_27] : memref<1x10x40x7xf32, #tpu.memory_space<vmem>>, vector<1x1x40x7xf32>
    %31 = vector.shape_cast %30 : vector<1x1x40x7xf32> to vector<40x7xf32>
    %cst_28 = arith.constant dense<0.000000e+00> : vector<40x64xf32>
    %32 = tpu.matmul %31, %0, %cst_28 {dimension_numbers = #tpu.dot_dimension_numbers<[1], [0], [0], [1], [0, 0, 1, 1], [], []>} : vector<40x7xf32>, vector<7x64xf32>, vector<40x64xf32> -> vector<40x64xf32>
    %33 = vector.broadcast %1 : vector<1x64xf32> to vector<40x64xf32>
    %34 = arith.addf %32, %33 : vector<40x64xf32>
    %cst_29 = arith.constant 0.000000e+00 : f32
    %35 = vector.broadcast %cst_29 : f32 to vector<40x64xf32>
    %36 = arith.maximumf %34, %35 : vector<40x64xf32>
    %cst_30 = arith.constant dense<0.000000e+00> : vector<40x128xf32>
    %37 = tpu.matmul %36, %2, %cst_30 {dimension_numbers = #tpu.dot_dimension_numbers<[1], [0], [0], [1], [0, 0, 1, 1], [], []>} : vector<40x64xf32>, vector<64x128xf32>, vector<40x128xf32> -> vector<40x128xf32>
    %38 = vector.broadcast %3 : vector<1x128xf32> to vector<40x128xf32>
    %39 = arith.addf %37, %38 : vector<40x128xf32>
    %cst_31 = arith.constant 0.000000e+00 : f32
    %40 = vector.broadcast %cst_31 : f32 to vector<40x128xf32>
    %41 = arith.maximumf %39, %40 : vector<40x128xf32>
    %cst_32 = arith.constant dense<0.000000e+00> : vector<40x256xf32>
    %42 = tpu.matmul %41, %4, %cst_32 {dimension_numbers = #tpu.dot_dimension_numbers<[1], [0], [0], [1], [0, 0, 1, 1], [], []>} : vector<40x128xf32>, vector<128x256xf32>, vector<40x256xf32> -> vector<40x256xf32>
    %43 = vector.broadcast %5 : vector<1x256xf32> to vector<40x256xf32>
    %44 = arith.addf %42, %43 : vector<40x256xf32>
    %c1_33 = arith.constant 1 : index
    %c0_34 = arith.constant 0 : index
    %c0_35 = arith.constant 0 : index
    %45 = vector.load %arg3[%c1_33, %c0_34, %c0_35] : memref<10x40x256xf32, #tpu.memory_space<vmem>>, vector<1x40x256xf32>
    %46 = vector.shape_cast %45 : vector<1x40x256xf32> to vector<40x256xf32>
    %47 = arith.addf %44, %46 : vector<40x256xf32>
    %48 = vector.extract_strided_slice %31 {offsets = [0, 0], sizes = [40, 1], strides = [1, 1]} : vector<40x7xf32> to vector<40x1xf32>
    %cst_36 = arith.constant 0.000000e+00 : f32
    %49 = vector.broadcast %cst_36 : f32 to vector<40x1xf32>
    %50 = arith.cmpf oeq, %48, %49 : vector<40x1xf32>
    %cst_37 = arith.constant 1.000000e+00 : f32
    %cst_38 = arith.constant 0.000000e+00 : f32
    %51 = vector.broadcast %cst_37 : f32 to vector<40x1xf32>
    %52 = vector.broadcast %cst_38 : f32 to vector<40x1xf32>
    %53 = arith.select %50, %51, %52 : vector<40x1xi1>, vector<40x1xf32>
    %54 = arith.maximumf %23, %47 : vector<40x256xf32>
    %55 = arith.maximumf %29, %53 : vector<40x1xf32>
    %c0_39 = arith.constant 0 : index
    %c2 = arith.constant 2 : index
    %c0_40 = arith.constant 0 : index
    %c0_41 = arith.constant 0 : index
    %56 = vector.load %arg2[%c0_39, %c2, %c0_40, %c0_41] : memref<1x10x40x7xf32, #tpu.memory_space<vmem>>, vector<1x1x40x7xf32>
    %57 = vector.shape_cast %56 : vector<1x1x40x7xf32> to vector<40x7xf32>
    %cst_42 = arith.constant dense<0.000000e+00> : vector<40x64xf32>
    %58 = tpu.matmul %57, %0, %cst_42 {dimension_numbers = #tpu.dot_dimension_numbers<[1], [0], [0], [1], [0, 0, 1, 1], [], []>} : vector<40x7xf32>, vector<7x64xf32>, vector<40x64xf32> -> vector<40x64xf32>
    %59 = vector.broadcast %1 : vector<1x64xf32> to vector<40x64xf32>
    %60 = arith.addf %58, %59 : vector<40x64xf32>
    %cst_43 = arith.constant 0.000000e+00 : f32
    %61 = vector.broadcast %cst_43 : f32 to vector<40x64xf32>
    %62 = arith.maximumf %60, %61 : vector<40x64xf32>
    %cst_44 = arith.constant dense<0.000000e+00> : vector<40x128xf32>
    %63 = tpu.matmul %62, %2, %cst_44 {dimension_numbers = #tpu.dot_dimension_numbers<[1], [0], [0], [1], [0, 0, 1, 1], [], []>} : vector<40x64xf32>, vector<64x128xf32>, vector<40x128xf32> -> vector<40x128xf32>
    %64 = vector.broadcast %3 : vector<1x128xf32> to vector<40x128xf32>
    %65 = arith.addf %63, %64 : vector<40x128xf32>
    %cst_45 = arith.constant 0.000000e+00 : f32
    %66 = vector.broadcast %cst_45 : f32 to vector<40x128xf32>
    %67 = arith.maximumf %65, %66 : vector<40x128xf32>
    %cst_46 = arith.constant dense<0.000000e+00> : vector<40x256xf32>
    %68 = tpu.matmul %67, %4, %cst_46 {dimension_numbers = #tpu.dot_dimension_numbers<[1], [0], [0], [1], [0, 0, 1, 1], [], []>} : vector<40x128xf32>, vector<128x256xf32>, vector<40x256xf32> -> vector<40x256xf32>
    %69 = vector.broadcast %5 : vector<1x256xf32> to vector<40x256xf32>
    %70 = arith.addf %68, %69 : vector<40x256xf32>
    %c2_47 = arith.constant 2 : index
    %c0_48 = arith.constant 0 : index
    %c0_49 = arith.constant 0 : index
    %71 = vector.load %arg3[%c2_47, %c0_48, %c0_49] : memref<10x40x256xf32, #tpu.memory_space<vmem>>, vector<1x40x256xf32>
    %72 = vector.shape_cast %71 : vector<1x40x256xf32> to vector<40x256xf32>
    %73 = arith.addf %70, %72 : vector<40x256xf32>
    %74 = vector.extract_strided_slice %57 {offsets = [0, 0], sizes = [40, 1], strides = [1, 1]} : vector<40x7xf32> to vector<40x1xf32>
    %cst_50 = arith.constant 0.000000e+00 : f32
    %75 = vector.broadcast %cst_50 : f32 to vector<40x1xf32>
    %76 = arith.cmpf oeq, %74, %75 : vector<40x1xf32>
    %cst_51 = arith.constant 1.000000e+00 : f32
    %cst_52 = arith.constant 0.000000e+00 : f32
    %77 = vector.broadcast %cst_51 : f32 to vector<40x1xf32>
    %78 = vector.broadcast %cst_52 : f32 to vector<40x1xf32>
    %79 = arith.select %76, %77, %78 : vector<40x1xi1>, vector<40x1xf32>
    %80 = arith.maximumf %54, %73 : vector<40x256xf32>
    %81 = arith.maximumf %55, %79 : vector<40x1xf32>
    %c0_53 = arith.constant 0 : index
    %c3 = arith.constant 3 : index
    %c0_54 = arith.constant 0 : index
    %c0_55 = arith.constant 0 : index
    %82 = vector.load %arg2[%c0_53, %c3, %c0_54, %c0_55] : memref<1x10x40x7xf32, #tpu.memory_space<vmem>>, vector<1x1x40x7xf32>
    %83 = vector.shape_cast %82 : vector<1x1x40x7xf32> to vector<40x7xf32>
    %cst_56 = arith.constant dense<0.000000e+00> : vector<40x64xf32>
    %84 = tpu.matmul %83, %0, %cst_56 {dimension_numbers = #tpu.dot_dimension_numbers<[1], [0], [0], [1], [0, 0, 1, 1], [], []>} : vector<40x7xf32>, vector<7x64xf32>, vector<40x64xf32> -> vector<40x64xf32>
    %85 = vector.broadcast %1 : vector<1x64xf32> to vector<40x64xf32>
    %86 = arith.addf %84, %85 : vector<40x64xf32>
    %cst_57 = arith.constant 0.000000e+00 : f32
    %87 = vector.broadcast %cst_57 : f32 to vector<40x64xf32>
    %88 = arith.maximumf %86, %87 : vector<40x64xf32>
    %cst_58 = arith.constant dense<0.000000e+00> : vector<40x128xf32>
    %89 = tpu.matmul %88, %2, %cst_58 {dimension_numbers = #tpu.dot_dimension_numbers<[1], [0], [0], [1], [0, 0, 1, 1], [], []>} : vector<40x64xf32>, vector<64x128xf32>, vector<40x128xf32> -> vector<40x128xf32>
    %90 = vector.broadcast %3 : vector<1x128xf32> to vector<40x128xf32>
    %91 = arith.addf %89, %90 : vector<40x128xf32>
    %cst_59 = arith.constant 0.000000e+00 : f32
    %92 = vector.broadcast %cst_59 : f32 to vector<40x128xf32>
    %93 = arith.maximumf %91, %92 : vector<40x128xf32>
    %cst_60 = arith.constant dense<0.000000e+00> : vector<40x256xf32>
    %94 = tpu.matmul %93, %4, %cst_60 {dimension_numbers = #tpu.dot_dimension_numbers<[1], [0], [0], [1], [0, 0, 1, 1], [], []>} : vector<40x128xf32>, vector<128x256xf32>, vector<40x256xf32> -> vector<40x256xf32>
    %95 = vector.broadcast %5 : vector<1x256xf32> to vector<40x256xf32>
    %96 = arith.addf %94, %95 : vector<40x256xf32>
    %c3_61 = arith.constant 3 : index
    %c0_62 = arith.constant 0 : index
    %c0_63 = arith.constant 0 : index
    %97 = vector.load %arg3[%c3_61, %c0_62, %c0_63] : memref<10x40x256xf32, #tpu.memory_space<vmem>>, vector<1x40x256xf32>
    %98 = vector.shape_cast %97 : vector<1x40x256xf32> to vector<40x256xf32>
    %99 = arith.addf %96, %98 : vector<40x256xf32>
    %100 = vector.extract_strided_slice %83 {offsets = [0, 0], sizes = [40, 1], strides = [1, 1]} : vector<40x7xf32> to vector<40x1xf32>
    %cst_64 = arith.constant 0.000000e+00 : f32
    %101 = vector.broadcast %cst_64 : f32 to vector<40x1xf32>
    %102 = arith.cmpf oeq, %100, %101 : vector<40x1xf32>
    %cst_65 = arith.constant 1.000000e+00 : f32
    %cst_66 = arith.constant 0.000000e+00 : f32
    %103 = vector.broadcast %cst_65 : f32 to vector<40x1xf32>
    %104 = vector.broadcast %cst_66 : f32 to vector<40x1xf32>
    %105 = arith.select %102, %103, %104 : vector<40x1xi1>, vector<40x1xf32>
    %106 = arith.maximumf %80, %99 : vector<40x256xf32>
    %107 = arith.maximumf %81, %105 : vector<40x1xf32>
    %c0_67 = arith.constant 0 : index
    %c4 = arith.constant 4 : index
    %c0_68 = arith.constant 0 : index
    %c0_69 = arith.constant 0 : index
    %108 = vector.load %arg2[%c0_67, %c4, %c0_68, %c0_69] : memref<1x10x40x7xf32, #tpu.memory_space<vmem>>, vector<1x1x40x7xf32>
    %109 = vector.shape_cast %108 : vector<1x1x40x7xf32> to vector<40x7xf32>
    %cst_70 = arith.constant dense<0.000000e+00> : vector<40x64xf32>
    %110 = tpu.matmul %109, %0, %cst_70 {dimension_numbers = #tpu.dot_dimension_numbers<[1], [0], [0], [1], [0, 0, 1, 1], [], []>} : vector<40x7xf32>, vector<7x64xf32>, vector<40x64xf32> -> vector<40x64xf32>
    %111 = vector.broadcast %1 : vector<1x64xf32> to vector<40x64xf32>
    %112 = arith.addf %110, %111 : vector<40x64xf32>
    %cst_71 = arith.constant 0.000000e+00 : f32
    %113 = vector.broadcast %cst_71 : f32 to vector<40x64xf32>
    %114 = arith.maximumf %112, %113 : vector<40x64xf32>
    %cst_72 = arith.constant dense<0.000000e+00> : vector<40x128xf32>
    %115 = tpu.matmul %114, %2, %cst_72 {dimension_numbers = #tpu.dot_dimension_numbers<[1], [0], [0], [1], [0, 0, 1, 1], [], []>} : vector<40x64xf32>, vector<64x128xf32>, vector<40x128xf32> -> vector<40x128xf32>
    %116 = vector.broadcast %3 : vector<1x128xf32> to vector<40x128xf32>
    %117 = arith.addf %115, %116 : vector<40x128xf32>
    %cst_73 = arith.constant 0.000000e+00 : f32
    %118 = vector.broadcast %cst_73 : f32 to vector<40x128xf32>
    %119 = arith.maximumf %117, %118 : vector<40x128xf32>
    %cst_74 = arith.constant dense<0.000000e+00> : vector<40x256xf32>
    %120 = tpu.matmul %119, %4, %cst_74 {dimension_numbers = #tpu.dot_dimension_numbers<[1], [0], [0], [1], [0, 0, 1, 1], [], []>} : vector<40x128xf32>, vector<128x256xf32>, vector<40x256xf32> -> vector<40x256xf32>
    %121 = vector.broadcast %5 : vector<1x256xf32> to vector<40x256xf32>
    %122 = arith.addf %120, %121 : vector<40x256xf32>
    %c4_75 = arith.constant 4 : index
    %c0_76 = arith.constant 0 : index
    %c0_77 = arith.constant 0 : index
    %123 = vector.load %arg3[%c4_75, %c0_76, %c0_77] : memref<10x40x256xf32, #tpu.memory_space<vmem>>, vector<1x40x256xf32>
    %124 = vector.shape_cast %123 : vector<1x40x256xf32> to vector<40x256xf32>
    %125 = arith.addf %122, %124 : vector<40x256xf32>
    %126 = vector.extract_strided_slice %109 {offsets = [0, 0], sizes = [40, 1], strides = [1, 1]} : vector<40x7xf32> to vector<40x1xf32>
    %cst_78 = arith.constant 0.000000e+00 : f32
    %127 = vector.broadcast %cst_78 : f32 to vector<40x1xf32>
    %128 = arith.cmpf oeq, %126, %127 : vector<40x1xf32>
    %cst_79 = arith.constant 1.000000e+00 : f32
    %cst_80 = arith.constant 0.000000e+00 : f32
    %129 = vector.broadcast %cst_79 : f32 to vector<40x1xf32>
    %130 = vector.broadcast %cst_80 : f32 to vector<40x1xf32>
    %131 = arith.select %128, %129, %130 : vector<40x1xi1>, vector<40x1xf32>
    %132 = arith.maximumf %106, %125 : vector<40x256xf32>
    %133 = arith.maximumf %107, %131 : vector<40x1xf32>
    %c0_81 = arith.constant 0 : index
    %c5 = arith.constant 5 : index
    %c0_82 = arith.constant 0 : index
    %c0_83 = arith.constant 0 : index
    %134 = vector.load %arg2[%c0_81, %c5, %c0_82, %c0_83] : memref<1x10x40x7xf32, #tpu.memory_space<vmem>>, vector<1x1x40x7xf32>
    %135 = vector.shape_cast %134 : vector<1x1x40x7xf32> to vector<40x7xf32>
    %cst_84 = arith.constant dense<0.000000e+00> : vector<40x64xf32>
    %136 = tpu.matmul %135, %0, %cst_84 {dimension_numbers = #tpu.dot_dimension_numbers<[1], [0], [0], [1], [0, 0, 1, 1], [], []>} : vector<40x7xf32>, vector<7x64xf32>, vector<40x64xf32> -> vector<40x64xf32>
    %137 = vector.broadcast %1 : vector<1x64xf32> to vector<40x64xf32>
    %138 = arith.addf %136, %137 : vector<40x64xf32>
    %cst_85 = arith.constant 0.000000e+00 : f32
    %139 = vector.broadcast %cst_85 : f32 to vector<40x64xf32>
    %140 = arith.maximumf %138, %139 : vector<40x64xf32>
    %cst_86 = arith.constant dense<0.000000e+00> : vector<40x128xf32>
    %141 = tpu.matmul %140, %2, %cst_86 {dimension_numbers = #tpu.dot_dimension_numbers<[1], [0], [0], [1], [0, 0, 1, 1], [], []>} : vector<40x64xf32>, vector<64x128xf32>, vector<40x128xf32> -> vector<40x128xf32>
    %142 = vector.broadcast %3 : vector<1x128xf32> to vector<40x128xf32>
    %143 = arith.addf %141, %142 : vector<40x128xf32>
    %cst_87 = arith.constant 0.000000e+00 : f32
    %144 = vector.broadcast %cst_87 : f32 to vector<40x128xf32>
    %145 = arith.maximumf %143, %144 : vector<40x128xf32>
    %cst_88 = arith.constant dense<0.000000e+00> : vector<40x256xf32>
    %146 = tpu.matmul %145, %4, %cst_88 {dimension_numbers = #tpu.dot_dimension_numbers<[1], [0], [0], [1], [0, 0, 1, 1], [], []>} : vector<40x128xf32>, vector<128x256xf32>, vector<40x256xf32> -> vector<40x256xf32>
    %147 = vector.broadcast %5 : vector<1x256xf32> to vector<40x256xf32>
    %148 = arith.addf %146, %147 : vector<40x256xf32>
    %c5_89 = arith.constant 5 : index
    %c0_90 = arith.constant 0 : index
    %c0_91 = arith.constant 0 : index
    %149 = vector.load %arg3[%c5_89, %c0_90, %c0_91] : memref<10x40x256xf32, #tpu.memory_space<vmem>>, vector<1x40x256xf32>
    %150 = vector.shape_cast %149 : vector<1x40x256xf32> to vector<40x256xf32>
    %151 = arith.addf %148, %150 : vector<40x256xf32>
    %152 = vector.extract_strided_slice %135 {offsets = [0, 0], sizes = [40, 1], strides = [1, 1]} : vector<40x7xf32> to vector<40x1xf32>
    %cst_92 = arith.constant 0.000000e+00 : f32
    %153 = vector.broadcast %cst_92 : f32 to vector<40x1xf32>
    %154 = arith.cmpf oeq, %152, %153 : vector<40x1xf32>
    %cst_93 = arith.constant 1.000000e+00 : f32
    %cst_94 = arith.constant 0.000000e+00 : f32
    %155 = vector.broadcast %cst_93 : f32 to vector<40x1xf32>
    %156 = vector.broadcast %cst_94 : f32 to vector<40x1xf32>
    %157 = arith.select %154, %155, %156 : vector<40x1xi1>, vector<40x1xf32>
    %158 = arith.maximumf %132, %151 : vector<40x256xf32>
    %159 = arith.maximumf %133, %157 : vector<40x1xf32>
    %c0_95 = arith.constant 0 : index
    %c6 = arith.constant 6 : index
    %c0_96 = arith.constant 0 : index
    %c0_97 = arith.constant 0 : index
    %160 = vector.load %arg2[%c0_95, %c6, %c0_96, %c0_97] : memref<1x10x40x7xf32, #tpu.memory_space<vmem>>, vector<1x1x40x7xf32>
    %161 = vector.shape_cast %160 : vector<1x1x40x7xf32> to vector<40x7xf32>
    %cst_98 = arith.constant dense<0.000000e+00> : vector<40x64xf32>
    %162 = tpu.matmul %161, %0, %cst_98 {dimension_numbers = #tpu.dot_dimension_numbers<[1], [0], [0], [1], [0, 0, 1, 1], [], []>} : vector<40x7xf32>, vector<7x64xf32>, vector<40x64xf32> -> vector<40x64xf32>
    %163 = vector.broadcast %1 : vector<1x64xf32> to vector<40x64xf32>
    %164 = arith.addf %162, %163 : vector<40x64xf32>
    %cst_99 = arith.constant 0.000000e+00 : f32
    %165 = vector.broadcast %cst_99 : f32 to vector<40x64xf32>
    %166 = arith.maximumf %164, %165 : vector<40x64xf32>
    %cst_100 = arith.constant dense<0.000000e+00> : vector<40x128xf32>
    %167 = tpu.matmul %166, %2, %cst_100 {dimension_numbers = #tpu.dot_dimension_numbers<[1], [0], [0], [1], [0, 0, 1, 1], [], []>} : vector<40x64xf32>, vector<64x128xf32>, vector<40x128xf32> -> vector<40x128xf32>
    %168 = vector.broadcast %3 : vector<1x128xf32> to vector<40x128xf32>
    %169 = arith.addf %167, %168 : vector<40x128xf32>
    %cst_101 = arith.constant 0.000000e+00 : f32
    %170 = vector.broadcast %cst_101 : f32 to vector<40x128xf32>
    %171 = arith.maximumf %169, %170 : vector<40x128xf32>
    %cst_102 = arith.constant dense<0.000000e+00> : vector<40x256xf32>
    %172 = tpu.matmul %171, %4, %cst_102 {dimension_numbers = #tpu.dot_dimension_numbers<[1], [0], [0], [1], [0, 0, 1, 1], [], []>} : vector<40x128xf32>, vector<128x256xf32>, vector<40x256xf32> -> vector<40x256xf32>
    %173 = vector.broadcast %5 : vector<1x256xf32> to vector<40x256xf32>
    %174 = arith.addf %172, %173 : vector<40x256xf32>
    %c6_103 = arith.constant 6 : index
    %c0_104 = arith.constant 0 : index
    %c0_105 = arith.constant 0 : index
    %175 = vector.load %arg3[%c6_103, %c0_104, %c0_105] : memref<10x40x256xf32, #tpu.memory_space<vmem>>, vector<1x40x256xf32>
    %176 = vector.shape_cast %175 : vector<1x40x256xf32> to vector<40x256xf32>
    %177 = arith.addf %174, %176 : vector<40x256xf32>
    %178 = vector.extract_strided_slice %161 {offsets = [0, 0], sizes = [40, 1], strides = [1, 1]} : vector<40x7xf32> to vector<40x1xf32>
    %cst_106 = arith.constant 0.000000e+00 : f32
    %179 = vector.broadcast %cst_106 : f32 to vector<40x1xf32>
    %180 = arith.cmpf oeq, %178, %179 : vector<40x1xf32>
    %cst_107 = arith.constant 1.000000e+00 : f32
    %cst_108 = arith.constant 0.000000e+00 : f32
    %181 = vector.broadcast %cst_107 : f32 to vector<40x1xf32>
    %182 = vector.broadcast %cst_108 : f32 to vector<40x1xf32>
    %183 = arith.select %180, %181, %182 : vector<40x1xi1>, vector<40x1xf32>
    %184 = arith.maximumf %158, %177 : vector<40x256xf32>
    %185 = arith.maximumf %159, %183 : vector<40x1xf32>
    %c0_109 = arith.constant 0 : index
    %c7 = arith.constant 7 : index
    %c0_110 = arith.constant 0 : index
    %c0_111 = arith.constant 0 : index
    %186 = vector.load %arg2[%c0_109, %c7, %c0_110, %c0_111] : memref<1x10x40x7xf32, #tpu.memory_space<vmem>>, vector<1x1x40x7xf32>
    %187 = vector.shape_cast %186 : vector<1x1x40x7xf32> to vector<40x7xf32>
    %cst_112 = arith.constant dense<0.000000e+00> : vector<40x64xf32>
    %188 = tpu.matmul %187, %0, %cst_112 {dimension_numbers = #tpu.dot_dimension_numbers<[1], [0], [0], [1], [0, 0, 1, 1], [], []>} : vector<40x7xf32>, vector<7x64xf32>, vector<40x64xf32> -> vector<40x64xf32>
    %189 = vector.broadcast %1 : vector<1x64xf32> to vector<40x64xf32>
    %190 = arith.addf %188, %189 : vector<40x64xf32>
    %cst_113 = arith.constant 0.000000e+00 : f32
    %191 = vector.broadcast %cst_113 : f32 to vector<40x64xf32>
    %192 = arith.maximumf %190, %191 : vector<40x64xf32>
    %cst_114 = arith.constant dense<0.000000e+00> : vector<40x128xf32>
    %193 = tpu.matmul %192, %2, %cst_114 {dimension_numbers = #tpu.dot_dimension_numbers<[1], [0], [0], [1], [0, 0, 1, 1], [], []>} : vector<40x64xf32>, vector<64x128xf32>, vector<40x128xf32> -> vector<40x128xf32>
    %194 = vector.broadcast %3 : vector<1x128xf32> to vector<40x128xf32>
    %195 = arith.addf %193, %194 : vector<40x128xf32>
    %cst_115 = arith.constant 0.000000e+00 : f32
    %196 = vector.broadcast %cst_115 : f32 to vector<40x128xf32>
    %197 = arith.maximumf %195, %196 : vector<40x128xf32>
    %cst_116 = arith.constant dense<0.000000e+00> : vector<40x256xf32>
    %198 = tpu.matmul %197, %4, %cst_116 {dimension_numbers = #tpu.dot_dimension_numbers<[1], [0], [0], [1], [0, 0, 1, 1], [], []>} : vector<40x128xf32>, vector<128x256xf32>, vector<40x256xf32> -> vector<40x256xf32>
    %199 = vector.broadcast %5 : vector<1x256xf32> to vector<40x256xf32>
    %200 = arith.addf %198, %199 : vector<40x256xf32>
    %c7_117 = arith.constant 7 : index
    %c0_118 = arith.constant 0 : index
    %c0_119 = arith.constant 0 : index
    %201 = vector.load %arg3[%c7_117, %c0_118, %c0_119] : memref<10x40x256xf32, #tpu.memory_space<vmem>>, vector<1x40x256xf32>
    %202 = vector.shape_cast %201 : vector<1x40x256xf32> to vector<40x256xf32>
    %203 = arith.addf %200, %202 : vector<40x256xf32>
    %204 = vector.extract_strided_slice %187 {offsets = [0, 0], sizes = [40, 1], strides = [1, 1]} : vector<40x7xf32> to vector<40x1xf32>
    %cst_120 = arith.constant 0.000000e+00 : f32
    %205 = vector.broadcast %cst_120 : f32 to vector<40x1xf32>
    %206 = arith.cmpf oeq, %204, %205 : vector<40x1xf32>
    %cst_121 = arith.constant 1.000000e+00 : f32
    %cst_122 = arith.constant 0.000000e+00 : f32
    %207 = vector.broadcast %cst_121 : f32 to vector<40x1xf32>
    %208 = vector.broadcast %cst_122 : f32 to vector<40x1xf32>
    %209 = arith.select %206, %207, %208 : vector<40x1xi1>, vector<40x1xf32>
    %210 = arith.maximumf %184, %203 : vector<40x256xf32>
    %211 = arith.maximumf %185, %209 : vector<40x1xf32>
    %c0_123 = arith.constant 0 : index
    %c8 = arith.constant 8 : index
    %c0_124 = arith.constant 0 : index
    %c0_125 = arith.constant 0 : index
    %212 = vector.load %arg2[%c0_123, %c8, %c0_124, %c0_125] : memref<1x10x40x7xf32, #tpu.memory_space<vmem>>, vector<1x1x40x7xf32>
    %213 = vector.shape_cast %212 : vector<1x1x40x7xf32> to vector<40x7xf32>
    %cst_126 = arith.constant dense<0.000000e+00> : vector<40x64xf32>
    %214 = tpu.matmul %213, %0, %cst_126 {dimension_numbers = #tpu.dot_dimension_numbers<[1], [0], [0], [1], [0, 0, 1, 1], [], []>} : vector<40x7xf32>, vector<7x64xf32>, vector<40x64xf32> -> vector<40x64xf32>
    %215 = vector.broadcast %1 : vector<1x64xf32> to vector<40x64xf32>
    %216 = arith.addf %214, %215 : vector<40x64xf32>
    %cst_127 = arith.constant 0.000000e+00 : f32
    %217 = vector.broadcast %cst_127 : f32 to vector<40x64xf32>
    %218 = arith.maximumf %216, %217 : vector<40x64xf32>
    %cst_128 = arith.constant dense<0.000000e+00> : vector<40x128xf32>
    %219 = tpu.matmul %218, %2, %cst_128 {dimension_numbers = #tpu.dot_dimension_numbers<[1], [0], [0], [1], [0, 0, 1, 1], [], []>} : vector<40x64xf32>, vector<64x128xf32>, vector<40x128xf32> -> vector<40x128xf32>
    %220 = vector.broadcast %3 : vector<1x128xf32> to vector<40x128xf32>
    %221 = arith.addf %219, %220 : vector<40x128xf32>
    %cst_129 = arith.constant 0.000000e+00 : f32
    %222 = vector.broadcast %cst_129 : f32 to vector<40x128xf32>
    %223 = arith.maximumf %221, %222 : vector<40x128xf32>
    %cst_130 = arith.constant dense<0.000000e+00> : vector<40x256xf32>
    %224 = tpu.matmul %223, %4, %cst_130 {dimension_numbers = #tpu.dot_dimension_numbers<[1], [0], [0], [1], [0, 0, 1, 1], [], []>} : vector<40x128xf32>, vector<128x256xf32>, vector<40x256xf32> -> vector<40x256xf32>
    %225 = vector.broadcast %5 : vector<1x256xf32> to vector<40x256xf32>
    %226 = arith.addf %224, %225 : vector<40x256xf32>
    %c8_131 = arith.constant 8 : index
    %c0_132 = arith.constant 0 : index
    %c0_133 = arith.constant 0 : index
    %227 = vector.load %arg3[%c8_131, %c0_132, %c0_133] : memref<10x40x256xf32, #tpu.memory_space<vmem>>, vector<1x40x256xf32>
    %228 = vector.shape_cast %227 : vector<1x40x256xf32> to vector<40x256xf32>
    %229 = arith.addf %226, %228 : vector<40x256xf32>
    %230 = vector.extract_strided_slice %213 {offsets = [0, 0], sizes = [40, 1], strides = [1, 1]} : vector<40x7xf32> to vector<40x1xf32>
    %cst_134 = arith.constant 0.000000e+00 : f32
    %231 = vector.broadcast %cst_134 : f32 to vector<40x1xf32>
    %232 = arith.cmpf oeq, %230, %231 : vector<40x1xf32>
    %cst_135 = arith.constant 1.000000e+00 : f32
    %cst_136 = arith.constant 0.000000e+00 : f32
    %233 = vector.broadcast %cst_135 : f32 to vector<40x1xf32>
    %234 = vector.broadcast %cst_136 : f32 to vector<40x1xf32>
    %235 = arith.select %232, %233, %234 : vector<40x1xi1>, vector<40x1xf32>
    %236 = arith.maximumf %210, %229 : vector<40x256xf32>
    %237 = arith.maximumf %211, %235 : vector<40x1xf32>
    %c0_137 = arith.constant 0 : index
    %c9 = arith.constant 9 : index
    %c0_138 = arith.constant 0 : index
    %c0_139 = arith.constant 0 : index
    %238 = vector.load %arg2[%c0_137, %c9, %c0_138, %c0_139] : memref<1x10x40x7xf32, #tpu.memory_space<vmem>>, vector<1x1x40x7xf32>
    %239 = vector.shape_cast %238 : vector<1x1x40x7xf32> to vector<40x7xf32>
    %cst_140 = arith.constant dense<0.000000e+00> : vector<40x64xf32>
    %240 = tpu.matmul %239, %0, %cst_140 {dimension_numbers = #tpu.dot_dimension_numbers<[1], [0], [0], [1], [0, 0, 1, 1], [], []>} : vector<40x7xf32>, vector<7x64xf32>, vector<40x64xf32> -> vector<40x64xf32>
    %241 = vector.broadcast %1 : vector<1x64xf32> to vector<40x64xf32>
    %242 = arith.addf %240, %241 : vector<40x64xf32>
    %cst_141 = arith.constant 0.000000e+00 : f32
    %243 = vector.broadcast %cst_141 : f32 to vector<40x64xf32>
    %244 = arith.maximumf %242, %243 : vector<40x64xf32>
    %cst_142 = arith.constant dense<0.000000e+00> : vector<40x128xf32>
    %245 = tpu.matmul %244, %2, %cst_142 {dimension_numbers = #tpu.dot_dimension_numbers<[1], [0], [0], [1], [0, 0, 1, 1], [], []>} : vector<40x64xf32>, vector<64x128xf32>, vector<40x128xf32> -> vector<40x128xf32>
    %246 = vector.broadcast %3 : vector<1x128xf32> to vector<40x128xf32>
    %247 = arith.addf %245, %246 : vector<40x128xf32>
    %cst_143 = arith.constant 0.000000e+00 : f32
    %248 = vector.broadcast %cst_143 : f32 to vector<40x128xf32>
    %249 = arith.maximumf %247, %248 : vector<40x128xf32>
    %cst_144 = arith.constant dense<0.000000e+00> : vector<40x256xf32>
    %250 = tpu.matmul %249, %4, %cst_144 {dimension_numbers = #tpu.dot_dimension_numbers<[1], [0], [0], [1], [0, 0, 1, 1], [], []>} : vector<40x128xf32>, vector<128x256xf32>, vector<40x256xf32> -> vector<40x256xf32>
    %251 = vector.broadcast %5 : vector<1x256xf32> to vector<40x256xf32>
    %252 = arith.addf %250, %251 : vector<40x256xf32>
    %c9_145 = arith.constant 9 : index
    %c0_146 = arith.constant 0 : index
    %c0_147 = arith.constant 0 : index
    %253 = vector.load %arg3[%c9_145, %c0_146, %c0_147] : memref<10x40x256xf32, #tpu.memory_space<vmem>>, vector<1x40x256xf32>
    %254 = vector.shape_cast %253 : vector<1x40x256xf32> to vector<40x256xf32>
    %255 = arith.addf %252, %254 : vector<40x256xf32>
    %256 = vector.extract_strided_slice %239 {offsets = [0, 0], sizes = [40, 1], strides = [1, 1]} : vector<40x7xf32> to vector<40x1xf32>
    %cst_148 = arith.constant 0.000000e+00 : f32
    %257 = vector.broadcast %cst_148 : f32 to vector<40x1xf32>
    %258 = arith.cmpf oeq, %256, %257 : vector<40x1xf32>
    %cst_149 = arith.constant 1.000000e+00 : f32
    %cst_150 = arith.constant 0.000000e+00 : f32
    %259 = vector.broadcast %cst_149 : f32 to vector<40x1xf32>
    %260 = vector.broadcast %cst_150 : f32 to vector<40x1xf32>
    %261 = arith.select %258, %259, %260 : vector<40x1xi1>, vector<40x1xf32>
    %262 = arith.maximumf %236, %255 : vector<40x256xf32>
    %263 = arith.maximumf %237, %261 : vector<40x1xf32>
    %c0_151 = arith.constant 0 : index
    %c0_152 = arith.constant 0 : index
    %c0_153 = arith.constant 0 : index
    %264 = vector.load %arg10[%c0_151, %c0_152, %c0_153] : memref<1x40x256xf32, #tpu.memory_space<vmem>>, vector<1x40x256xf32>
    %265 = vector.shape_cast %264 : vector<1x40x256xf32> to vector<40x256xf32>
    %266 = vector.shape_cast %262 : vector<40x256xf32> to vector<1x40x256xf32>
    tpu.vector_store %arg10[%c0_151, %c0_152, %c0_153], %266 {strides = array<i32>} : memref<1x40x256xf32, #tpu.memory_space<vmem>>, vector<1x40x256xf32>,
    %c0_154 = arith.constant 0 : index
    %c0_155 = arith.constant 0 : index
    %c0_156 = arith.constant 0 : index
    %267 = vector.load %arg11[%c0_154, %c0_155, %c0_156] : memref<1x40x1xf32, #tpu.memory_space<vmem>>, vector<1x40x1xf32>
    %268 = vector.shape_cast %267 : vector<1x40x1xf32> to vector<40x1xf32>
    %269 = vector.shape_cast %263 : vector<40x1xf32> to vector<1x40x1xf32>
    tpu.vector_store %arg11[%c0_154, %c0_155, %c0_156], %269 {strides = array<i32>} : memref<1x40x1xf32, #tpu.memory_space<vmem>>, vector<1x40x1xf32>,
    return
  }
  func.func @transform_0(%arg0: i32, %arg1: i32) -> (i32, i32, i32, i32) {
    %c0_i32 = arith.constant 0 : i32
    %c0_i32_0 = arith.constant 0 : i32
    %c0_i32_1 = arith.constant 0 : i32
    return %arg0, %c0_i32, %arg1, %c0_i32_0 : i32, i32, i32, i32
  }
  func.func @transform_1(%arg0: i32, %arg1: i32) -> (i32, i32, i32) {
    %c0_i32 = arith.constant 0 : i32
    %c0_i32_0 = arith.constant 0 : i32
    %c0_i32_1 = arith.constant 0 : i32
    return %c0_i32, %arg1, %c0_i32_0 : i32, i32, i32
  }
  func.func @transform_2(%arg0: i32, %arg1: i32) -> (i32, i32) {
    %c0_i32 = arith.constant 0 : i32
    %c0_i32_0 = arith.constant 0 : i32
    %c0_i32_1 = arith.constant 0 : i32
    return %c0_i32, %c0_i32_0 : i32, i32
  }
  func.func @transform_3(%arg0: i32, %arg1: i32) -> (i32, i32) {
    %c0_i32 = arith.constant 0 : i32
    %c0_i32_0 = arith.constant 0 : i32
    %c0_i32_1 = arith.constant 0 : i32
    return %c0_i32, %c0_i32_0 : i32, i32
  }
  func.func @transform_4(%arg0: i32, %arg1: i32) -> (i32, i32) {
    %c0_i32 = arith.constant 0 : i32
    %c0_i32_0 = arith.constant 0 : i32
    %c0_i32_1 = arith.constant 0 : i32
    return %c0_i32, %c0_i32_0 : i32, i32
  }
  func.func @transform_5(%arg0: i32, %arg1: i32) -> (i32, i32) {
    %c0_i32 = arith.constant 0 : i32
    %c0_i32_0 = arith.constant 0 : i32
    %c0_i32_1 = arith.constant 0 : i32
    return %c0_i32, %c0_i32_0 : i32, i32
  }
  func.func @transform_6(%arg0: i32, %arg1: i32) -> (i32, i32) {
    %c0_i32 = arith.constant 0 : i32
    %c0_i32_0 = arith.constant 0 : i32
    %c0_i32_1 = arith.constant 0 : i32
    return %c0_i32, %c0_i32_0 : i32, i32
  }
  func.func @transform_7(%arg0: i32, %arg1: i32) -> (i32, i32) {
    %c0_i32 = arith.constant 0 : i32
    %c0_i32_0 = arith.constant 0 : i32
    %c0_i32_1 = arith.constant 0 : i32
    return %c0_i32, %c0_i32_0 : i32, i32
  }
  func.func @transform_8(%arg0: i32, %arg1: i32) -> (i32, i32, i32) {
    %c0_i32 = arith.constant 0 : i32
    %c0_i32_0 = arith.constant 0 : i32
    return %arg0, %arg1, %c0_i32 : i32, i32, i32
  }
  func.func @transform_9(%arg0: i32, %arg1: i32) -> (i32, i32, i32) {
    %c0_i32 = arith.constant 0 : i32
    %c0_i32_0 = arith.constant 0 : i32
    return %arg0, %arg1, %c0_i32 : i32, i32, i32
  }
}

</mosaic_0001>

<bundles_post_ra>
// kernel: tile.9
= control target key start
LH: loop header
LB: loop body
LE: loop exit
PB: predicated region body
PF: predicated region fallthrough
CT: control target
= control target key end

     0   :  { %s1928_s0 = inlined_call_operand.vmem [shape: f32[8,50,256], index: 0, kind: input, shape index: {}]   ;;  %s1929_s1 = inlined_call_operand.vmem [shape: f32[40,10,256], index: 1, kind: output, shape index: {}]  }
   0x1   :  { %v2_v0 = vld [vmem:[%s1928_s0] sm:$0xff]   ;;  %v640_v1 = vld [vmem:[%s1928_s0 + $0x8] sm:$0xff]   ;;  %v642_v2 = vld [vmem:[%s1928_s0 + $0x10] sm:$0xff]  }
   0x2   :  { %3 = vst [vmem:[%s1929_s1] sm:$0xff] %v2_v0   ;;  %641 = vst [vmem:[%s1929_s1 + $0x8] sm:$0xff] %v640_v1   ;;  %v645_v3 = vld [vmem:[%s1928_s0 + $0x18] sm:$0xff]   ;;  %v648_v4 = vld [vmem:[%s1928_s0 + $0x20] sm:$0xff]  }
   0x3   :  { %643 = vst [vmem:[%s1929_s1 + $0x10] sm:$0x3] %v642_v2   ;;  %644 = vst [vmem:[%s1929_s1 + $0x1e] sm:$0xfc] %v642_v2   ;;  %v652_v5 = vld [vmem:[%s1928_s0 + $0x28] sm:$0xff]   ;;  %v656_v6 = vld [vmem:[%s1928_s0 + $0x30] sm:$0xff]  }
   0x4   :  { %646 = vst [vmem:[%s1929_s1 + $0x18] sm:$0x3] %v645_v3   ;;  %647 = vst [vmem:[%s1929_s1 + $0x26] sm:$0xfc] %v645_v3   ;;  %v660_v7 = vld [vmem:[%s1928_s0 + $0x38] sm:$0xff]   ;;  %v664_v8 = vld [vmem:[%s1928_s0 + $0x40] sm:$0xff]  }
   0x5   :  { %649 = vst [vmem:[%s1929_s1 + $0x26] sm:$0x3] %v648_v4   ;;  %650 = vst [vmem:[%s1929_s1 + $0x2e] sm:$0xc] %v648_v4   ;;  %v667_v9 = vld [vmem:[%s1928_s0 + $0x48] sm:$0xff]   ;;  %v670_v10 = vld [vmem:[%s1928_s0 + $0x50] sm:$0xff]  }
   0x6   :  { %651 = vst [vmem:[%s1929_s1 + $0x3c] sm:$0xf0] %v648_v4   ;;  %653 = vst [vmem:[%s1929_s1 + $0x2e] sm:$0x3] %v652_v5   ;;  %v672_v11 = vld [vmem:[%s1928_s0 + $0x58] sm:$0xff]   ;;  %v678_v14 = vld [vmem:[%s1928_s0 + $0x70] sm:$0xff]  }
   0x7   :  { %654 = vst [vmem:[%s1929_s1 + $0x36] sm:$0xc] %v652_v5   ;;  %655 = vst [vmem:[%s1929_s1 + $0x44] sm:$0xf0] %v652_v5   ;;  %v674_v12 = vld [vmem:[%s1928_s0 + $0x60] sm:$0x3]  }
   0x8   :  { %657 = vst [vmem:[%s1929_s1 + $0x44] sm:$0xf] %v656_v6   ;;  %658 = vst [vmem:[%s1929_s1 + $0x4c] sm:$0x30] %v656_v6   ;;  %v676_v13 = vld [vmem:[%s1928_s0 + $0x68] sm:$0x3]  }
   0x9   :  { %659 = vst [vmem:[%s1929_s1 + $0x5a] sm:$0xc0] %v656_v6   ;;  %661 = vst [vmem:[%s1929_s1 + $0x4c] sm:$0xf] %v660_v7   ;;  %v680_v15 = vld [vmem:[%s1928_s0 + $0x78] sm:$0xff]   ;;  %v682_v16 = vld [vmem:[%s1928_s0 + $0x80] sm:$0xff]  }
   0xa   :  { %662 = vst [vmem:[%s1929_s1 + $0x54] sm:$0x30] %v660_v7   ;;  %663 = vst [vmem:[%s1929_s1 + $0x62] sm:$0xc0] %v660_v7   ;;  %v685_v17 = vld [vmem:[%s1928_s0 + $0x88] sm:$0xff]   ;;  %v688_v18 = vld [vmem:[%s1928_s0 + $0x90] sm:$0xff]  }
   0xb   :  { %665 = vst [vmem:[%s1929_s1 + $0x62] sm:$0x3f] %v664_v8   ;;  %666 = vst [vmem:[%s1929_s1 + $0x6a] sm:$0xc0] %v664_v8   ;;  %v692_v19 = vld [vmem:[%s1928_s0 + $0x98] sm:$0xff]   ;;  %v696_v20 = vld [vmem:[%s1928_s0 + $0xa0] sm:$0xff]  }
   0xc   :  { %668 = vst [vmem:[%s1929_s1 + $0x6a] sm:$0x3f] %v667_v9   ;;  %669 = vst [vmem:[%s1929_s1 + $0x72] sm:$0xc0] %v667_v9   ;;  %v700_v21 = vld [vmem:[%s1928_s0 + $0xa8] sm:$0xff]   ;;  %v704_v22 = vld [vmem:[%s1928_s0 + $0xb0] sm:$0xff]  }
   0xd   :  { %671 = vst [vmem:[%s1929_s1 + $0x80] sm:$0xff] %v670_v10   ;;  %673 = vst [vmem:[%s1929_s1 + $0x88] sm:$0xff] %v672_v11   ;;  %v707_v23 = vld [vmem:[%s1928_s0 + $0xb8] sm:$0xff]   ;;  %v710_v24 = vld [vmem:[%s1928_s0 + $0xc0] sm:$0xff]  }
   0xe   :  { %675 = vst [vmem:[%s1929_s1 + $0x90] sm:$0x3] %v674_v12   ;;  %677 = vst [vmem:[%s1929_s1 + $0x98] sm:$0x3] %v676_v13   ;;  %v712_v25 = vld [vmem:[%s1928_s0 + $0xc8] sm:$0xff]   ;;  %v718_v28 = vld [vmem:[%s1928_s0 + $0xe0] sm:$0xff]  }
   0xf   :  { %679 = vst [vmem:[%s1929_s1 + $0xa0] sm:$0xff] %v678_v14   ;;  %681 = vst [vmem:[%s1929_s1 + $0xa8] sm:$0xff] %v680_v15   ;;  %v714_v26 = vld [vmem:[%s1928_s0 + $0xd0] sm:$0x3]   ;;  %v716_v27 = vld [vmem:[%s1928_s0 + $0xd8] sm:$0x3]  }
  0x10   :  { %683 = vst [vmem:[%s1929_s1 + $0xb0] sm:$0x3] %v682_v16   ;;  %684 = vst [vmem:[%s1929_s1 + $0xbe] sm:$0xfc] %v682_v16   ;;  %v720_v29 = vld [vmem:[%s1928_s0 + $0xe8] sm:$0xff]   ;;  %v722_v30 = vld [vmem:[%s1928_s0 + $0xf0] sm:$0xff]  }
  0x11   :  { %686 = vst [vmem:[%s1929_s1 + $0xb8] sm:$0x3] %v685_v17   ;;  %687 = vst [vmem:[%s1929_s1 + $0xc6] sm:$0xfc] %v685_v17   ;;  %v725_v31 = vld [vmem:[%s1928_s0 + $0xf8] sm:$0xff]   ;;  %v728_v32 = vld [vmem:[%s1928_s0 + $0x100] sm:$0xff]  }
  0x12   :  { %689 = vst [vmem:[%s1929_s1 + $0xc6] sm:$0x3] %v688_v18   ;;  %690 = vst [vmem:[%s1929_s1 + $0xce] sm:$0xc] %v688_v18   ;;  %v732_v33 = vld [vmem:[%s1928_s0 + $0x108] sm:$0xff]   ;;  %v736_v34 = vld [vmem:[%s1928_s0 + $0x110] sm:$0xff]  }
  0x13   :  { %691 = vst [vmem:[%s1929_s1 + $0xdc] sm:$0xf0] %v688_v18   ;;  %693 = vst [vmem:[%s1929_s1 + $0xce] sm:$0x3] %v692_v19   ;;  %v740_v35 = vld [vmem:[%s1928_s0 + $0x118] sm:$0xff]   ;;  %v744_v36 = vld [vmem:[%s1928_s0 + $0x120] sm:$0xff]  }
  0x14   :  { %694 = vst [vmem:[%s1929_s1 + $0xd6] sm:$0xc] %v692_v19   ;;  %695 = vst [vmem:[%s1929_s1 + $0xe4] sm:$0xf0] %v692_v19   ;;  %v747_v37 = vld [vmem:[%s1928_s0 + $0x128] sm:$0xff]   ;;  %v750_v38 = vld [vmem:[%s1928_s0 + $0x130] sm:$0xff]  }
  0x15   :  { %697 = vst [vmem:[%s1929_s1 + $0xe4] sm:$0xf] %v696_v20   ;;  %698 = vst [vmem:[%s1929_s1 + $0xec] sm:$0x30] %v696_v20   ;;  %v752_v39 = vld [vmem:[%s1928_s0 + $0x138] sm:$0xff]   ;;  %v758_v42 = vld [vmem:[%s1928_s0 + $0x150] sm:$0xff]  }
  0x16   :  { %699 = vst [vmem:[%s1929_s1 + $0xfa] sm:$0xc0] %v696_v20   ;;  %701 = vst [vmem:[%s1929_s1 + $0xec] sm:$0xf] %v700_v21   ;;  %v754_v40 = vld [vmem:[%s1928_s0 + $0x140] sm:$0x3]  }
  0x17   :  { %702 = vst [vmem:[%s1929_s1 + $0xf4] sm:$0x30] %v700_v21   ;;  %703 = vst [vmem:[%s1929_s1 + $0x102] sm:$0xc0] %v700_v21   ;;  %v756_v41 = vld [vmem:[%s1928_s0 + $0x148] sm:$0x3]  }
  0x18   :  { %705 = vst [vmem:[%s1929_s1 + $0x102] sm:$0x3f] %v704_v22   ;;  %706 = vst [vmem:[%s1929_s1 + $0x10a] sm:$0xc0] %v704_v22   ;;  %v760_v43 = vld [vmem:[%s1928_s0 + $0x158] sm:$0xff]   ;;  %v762_v44 = vld [vmem:[%s1928_s0 + $0x160] sm:$0xff]  }
  0x19   :  { %708 = vst [vmem:[%s1929_s1 + $0x10a] sm:$0x3f] %v707_v23   ;;  %709 = vst [vmem:[%s1929_s1 + $0x112] sm:$0xc0] %v707_v23   ;;  %v765_v45 = vld [vmem:[%s1928_s0 + $0x168] sm:$0xff]   ;;  %v768_v46 = vld [vmem:[%s1928_s0 + $0x170] sm:$0xff]  }
  0x1a   :  { %711 = vst [vmem:[%s1929_s1 + $0x120] sm:$0xff] %v710_v24   ;;  %713 = vst [vmem:[%s1929_s1 + $0x128] sm:$0xff] %v712_v25   ;;  %v772_v47 = vld [vmem:[%s1928_s0 + $0x178] sm:$0xff]   ;;  %v776_v48 = vld [vmem:[%s1928_s0 + $0x180] sm:$0xff]  }
  0x1b   :  { %715 = vst [vmem:[%s1929_s1 + $0x130] sm:$0x3] %v714_v26   ;;  %717 = vst [vmem:[%s1929_s1 + $0x138] sm:$0x3] %v716_v27   ;;  %v780_v49 = vld [vmem:[%s1928_s0 + $0x188] sm:$0xff]   ;;  %v784_v50 = vld [vmem:[%s1928_s0 + $0x190] sm:$0xff]  }
  0x1c   :  { %719 = vst [vmem:[%s1929_s1 + $0x140] sm:$0xff] %v718_v28   ;;  %721 = vst [vmem:[%s1929_s1 + $0x148] sm:$0xff] %v720_v29   ;;  %v787_v51 = vld [vmem:[%s1928_s0 + $0x198] sm:$0xff]   ;;  %v790_v52 = vld [vmem:[%s1928_s0 + $0x1a0] sm:$0xff]  }
  0x1d   :  { %723 = vst [vmem:[%s1929_s1 + $0x150] sm:$0x3] %v722_v30   ;;  %724 = vst [vmem:[%s1929_s1 + $0x15e] sm:$0xfc] %v722_v30   ;;  %v792_v53 = vld [vmem:[%s1928_s0 + $0x1a8] sm:$0xff]   ;;  %v798_v56 = vld [vmem:[%s1928_s0 + $0x1c0] sm:$0xff]  }
  0x1e   :  { %726 = vst [vmem:[%s1929_s1 + $0x158] sm:$0x3] %v725_v31   ;;  %727 = vst [vmem:[%s1929_s1 + $0x166] sm:$0xfc] %v725_v31   ;;  %v794_v54 = vld [vmem:[%s1928_s0 + $0x1b0] sm:$0x3]  }
  0x1f   :  { %729 = vst [vmem:[%s1929_s1 + $0x166] sm:$0x3] %v728_v32   ;;  %730 = vst [vmem:[%s1929_s1 + $0x16e] sm:$0xc] %v728_v32   ;;  %v796_v55 = vld [vmem:[%s1928_s0 + $0x1b8] sm:$0x3]  }
  0x20   :  { %731 = vst [vmem:[%s1929_s1 + $0x17c] sm:$0xf0] %v728_v32   ;;  %733 = vst [vmem:[%s1929_s1 + $0x16e] sm:$0x3] %v732_v33   ;;  %v800_v57 = vld [vmem:[%s1928_s0 + $0x1c8] sm:$0xff]   ;;  %v802_v58 = vld [vmem:[%s1928_s0 + $0x1d0] sm:$0xff]  }
  0x21   :  { %734 = vst [vmem:[%s1929_s1 + $0x176] sm:$0xc] %v732_v33   ;;  %735 = vst [vmem:[%s1929_s1 + $0x184] sm:$0xf0] %v732_v33   ;;  %v805_v59 = vld [vmem:[%s1928_s0 + $0x1d8] sm:$0xff]   ;;  %v808_v60 = vld [vmem:[%s1928_s0 + $0x1e0] sm:$0xff]  }
  0x22   :  { %737 = vst [vmem:[%s1929_s1 + $0x184] sm:$0xf] %v736_v34   ;;  %738 = vst [vmem:[%s1929_s1 + $0x18c] sm:$0x30] %v736_v34   ;;  %v812_v61 = vld [vmem:[%s1928_s0 + $0x1e8] sm:$0xff]   ;;  %v816_v62 = vld [vmem:[%s1928_s0 + $0x1f0] sm:$0xff]  }
  0x23   :  { %739 = vst [vmem:[%s1929_s1 + $0x19a] sm:$0xc0] %v736_v34   ;;  %741 = vst [vmem:[%s1929_s1 + $0x18c] sm:$0xf] %v740_v35   ;;  %v820_v63 = vld [vmem:[%s1928_s0 + $0x1f8] sm:$0xff]   ;;  %v824_v0 = vld [vmem:[%s1928_s0 + $0x200] sm:$0xff]  }
  0x24   :  { %742 = vst [vmem:[%s1929_s1 + $0x194] sm:$0x30] %v740_v35   ;;  %743 = vst [vmem:[%s1929_s1 + $0x1a2] sm:$0xc0] %v740_v35   ;;  %v827_v1 = vld [vmem:[%s1928_s0 + $0x208] sm:$0xff]   ;;  %v830_v2 = vld [vmem:[%s1928_s0 + $0x210] sm:$0xff]  }
  0x25   :  { %745 = vst [vmem:[%s1929_s1 + $0x1a2] sm:$0x3f] %v744_v36   ;;  %746 = vst [vmem:[%s1929_s1 + $0x1aa] sm:$0xc0] %v744_v36   ;;  %v832_v3 = vld [vmem:[%s1928_s0 + $0x218] sm:$0xff]   ;;  %v838_v6 = vld [vmem:[%s1928_s0 + $0x230] sm:$0xff]  }
  0x26   :  { %748 = vst [vmem:[%s1929_s1 + $0x1aa] sm:$0x3f] %v747_v37   ;;  %749 = vst [vmem:[%s1929_s1 + $0x1b2] sm:$0xc0] %v747_v37   ;;  %v834_v4 = vld [vmem:[%s1928_s0 + $0x220] sm:$0x3]  }
  0x27   :  { %751 = vst [vmem:[%s1929_s1 + $0x1c0] sm:$0xff] %v750_v38   ;;  %753 = vst [vmem:[%s1929_s1 + $0x1c8] sm:$0xff] %v752_v39   ;;  %v836_v5 = vld [vmem:[%s1928_s0 + $0x228] sm:$0x3]   ;;  %v840_v7 = vld [vmem:[%s1928_s0 + $0x238] sm:$0xff]  }
  0x28   :  { %755 = vst [vmem:[%s1929_s1 + $0x1d0] sm:$0x3] %v754_v40   ;;  %757 = vst [vmem:[%s1929_s1 + $0x1d8] sm:$0x3] %v756_v41   ;;  %v842_v8 = vld [vmem:[%s1928_s0 + $0x240] sm:$0xff]   ;;  %v845_v9 = vld [vmem:[%s1928_s0 + $0x248] sm:$0xff]  }
  0x29   :  { %759 = vst [vmem:[%s1929_s1 + $0x1e0] sm:$0xff] %v758_v42   ;;  %761 = vst [vmem:[%s1929_s1 + $0x1e8] sm:$0xff] %v760_v43   ;;  %v848_v10 = vld [vmem:[%s1928_s0 + $0x250] sm:$0xff]   ;;  %v852_v11 = vld [vmem:[%s1928_s0 + $0x258] sm:$0xff]  }
  0x2a   :  { %763 = vst [vmem:[%s1929_s1 + $0x1f0] sm:$0x3] %v762_v44   ;;  %764 = vst [vmem:[%s1929_s1 + $0x1fe] sm:$0xfc] %v762_v44   ;;  %v856_v12 = vld [vmem:[%s1928_s0 + $0x260] sm:$0xff]   ;;  %v860_v13 = vld [vmem:[%s1928_s0 + $0x268] sm:$0xff]  }
  0x2b   :  { %766 = vst [vmem:[%s1929_s1 + $0x1f8] sm:$0x3] %v765_v45   ;;  %767 = vst [vmem:[%s1929_s1 + $0x206] sm:$0xfc] %v765_v45   ;;  %v864_v14 = vld [vmem:[%s1928_s0 + $0x270] sm:$0xff]   ;;  %v867_v15 = vld [vmem:[%s1928_s0 + $0x278] sm:$0xff]  }
  0x2c   :  { %769 = vst [vmem:[%s1929_s1 + $0x206] sm:$0x3] %v768_v46   ;;  %770 = vst [vmem:[%s1929_s1 + $0x20e] sm:$0xc] %v768_v46   ;;  %v870_v16 = vld [vmem:[%s1928_s0 + $0x280] sm:$0xff]   ;;  %v872_v17 = vld [vmem:[%s1928_s0 + $0x288] sm:$0xff]  }
  0x2d   :  { %771 = vst [vmem:[%s1929_s1 + $0x21c] sm:$0xf0] %v768_v46   ;;  %773 = vst [vmem:[%s1929_s1 + $0x20e] sm:$0x3] %v772_v47   ;;  %v874_v18 = vld [vmem:[%s1928_s0 + $0x290] sm:$0x3]  }
  0x2e   :  { %774 = vst [vmem:[%s1929_s1 + $0x216] sm:$0xc] %v772_v47   ;;  %775 = vst [vmem:[%s1929_s1 + $0x224] sm:$0xf0] %v772_v47   ;;  %v876_v19 = vld [vmem:[%s1928_s0 + $0x298] sm:$0x3]  }
  0x2f   :  { %777 = vst [vmem:[%s1929_s1 + $0x224] sm:$0xf] %v776_v48   ;;  %778 = vst [vmem:[%s1929_s1 + $0x22c] sm:$0x30] %v776_v48   ;;  %v878_v20 = vld [vmem:[%s1928_s0 + $0x2a0] sm:$0xff]   ;;  %v880_v21 = vld [vmem:[%s1928_s0 + $0x2a8] sm:$0xff]  }
  0x30   :  { %779 = vst [vmem:[%s1929_s1 + $0x23a] sm:$0xc0] %v776_v48   ;;  %781 = vst [vmem:[%s1929_s1 + $0x22c] sm:$0xf] %v780_v49   ;;  %v882_v22 = vld [vmem:[%s1928_s0 + $0x2b0] sm:$0xff]   ;;  %v885_v23 = vld [vmem:[%s1928_s0 + $0x2b8] sm:$0xff]  }
  0x31   :  { %782 = vst [vmem:[%s1929_s1 + $0x234] sm:$0x30] %v780_v49   ;;  %783 = vst [vmem:[%s1929_s1 + $0x242] sm:$0xc0] %v780_v49   ;;  %v888_v24 = vld [vmem:[%s1928_s0 + $0x2c0] sm:$0xff]   ;;  %v892_v25 = vld [vmem:[%s1928_s0 + $0x2c8] sm:$0xff]  }
  0x32   :  { %785 = vst [vmem:[%s1929_s1 + $0x242] sm:$0x3f] %v784_v50   ;;  %786 = vst [vmem:[%s1929_s1 + $0x24a] sm:$0xc0] %v784_v50   ;;  %v896_v26 = vld [vmem:[%s1928_s0 + $0x2d0] sm:$0xff]   ;;  %v900_v27 = vld [vmem:[%s1928_s0 + $0x2d8] sm:$0xff]  }
  0x33   :  { %788 = vst [vmem:[%s1929_s1 + $0x24a] sm:$0x3f] %v787_v51   ;;  %789 = vst [vmem:[%s1929_s1 + $0x252] sm:$0xc0] %v787_v51   ;;  %v904_v28 = vld [vmem:[%s1928_s0 + $0x2e0] sm:$0xff]   ;;  %v907_v29 = vld [vmem:[%s1928_s0 + $0x2e8] sm:$0xff]  }
  0x34   :  { %791 = vst [vmem:[%s1929_s1 + $0x260] sm:$0xff] %v790_v52   ;;  %793 = vst [vmem:[%s1929_s1 + $0x268] sm:$0xff] %v792_v53   ;;  %v910_v30 = vld [vmem:[%s1928_s0 + $0x2f0] sm:$0xff]   ;;  %v912_v31 = vld [vmem:[%s1928_s0 + $0x2f8] sm:$0xff]  }
  0x35   :  { %795 = vst [vmem:[%s1929_s1 + $0x270] sm:$0x3] %v794_v54   ;;  %797 = vst [vmem:[%s1929_s1 + $0x278] sm:$0x3] %v796_v55   ;;  %v914_v32 = vld [vmem:[%s1928_s0 + $0x300] sm:$0x3]  }
  0x36   :  { %799 = vst [vmem:[%s1929_s1 + $0x280] sm:$0xff] %v798_v56   ;;  %801 = vst [vmem:[%s1929_s1 + $0x288] sm:$0xff] %v800_v57   ;;  %v916_v33 = vld [vmem:[%s1928_s0 + $0x308] sm:$0x3]   ;;  %v918_v34 = vld [vmem:[%s1928_s0 + $0x310] sm:$0xff]  }
  0x37   :  { %803 = vst [vmem:[%s1929_s1 + $0x290] sm:$0x3] %v802_v58   ;;  %804 = vst [vmem:[%s1929_s1 + $0x29e] sm:$0xfc] %v802_v58   ;;  %v920_v35 = vld [vmem:[%s1928_s0 + $0x318] sm:$0xff]   ;;  %v922_v36 = vld [vmem:[%s1928_s0 + $0x320] sm:$0xff]  }
  0x38   :  { %806 = vst [vmem:[%s1929_s1 + $0x298] sm:$0x3] %v805_v59   ;;  %807 = vst [vmem:[%s1929_s1 + $0x2a6] sm:$0xfc] %v805_v59   ;;  %v925_v37 = vld [vmem:[%s1928_s0 + $0x328] sm:$0xff]   ;;  %v928_v38 = vld [vmem:[%s1928_s0 + $0x330] sm:$0xff]  }
  0x39   :  { %809 = vst [vmem:[%s1929_s1 + $0x2a6] sm:$0x3] %v808_v60   ;;  %810 = vst [vmem:[%s1929_s1 + $0x2ae] sm:$0xc] %v808_v60   ;;  %v932_v39 = vld [vmem:[%s1928_s0 + $0x338] sm:$0xff]   ;;  %v936_v40 = vld [vmem:[%s1928_s0 + $0x340] sm:$0xff]  }
  0x3a   :  { %811 = vst [vmem:[%s1929_s1 + $0x2bc] sm:$0xf0] %v808_v60   ;;  %813 = vst [vmem:[%s1929_s1 + $0x2ae] sm:$0x3] %v812_v61   ;;  %v940_v41 = vld [vmem:[%s1928_s0 + $0x348] sm:$0xff]   ;;  %v944_v42 = vld [vmem:[%s1928_s0 + $0x350] sm:$0xff]  }
  0x3b   :  { %814 = vst [vmem:[%s1929_s1 + $0x2b6] sm:$0xc] %v812_v61   ;;  %815 = vst [vmem:[%s1929_s1 + $0x2c4] sm:$0xf0] %v812_v61   ;;  %v947_v43 = vld [vmem:[%s1928_s0 + $0x358] sm:$0xff]   ;;  %v950_v44 = vld [vmem:[%s1928_s0 + $0x360] sm:$0xff]  }
  0x3c   :  { %817 = vst [vmem:[%s1929_s1 + $0x2c4] sm:$0xf] %v816_v62   ;;  %818 = vst [vmem:[%s1929_s1 + $0x2cc] sm:$0x30] %v816_v62   ;;  %v952_v45 = vld [vmem:[%s1928_s0 + $0x368] sm:$0xff]  }
  0x3d   :  { %819 = vst [vmem:[%s1929_s1 + $0x2da] sm:$0xc0] %v816_v62   ;;  %821 = vst [vmem:[%s1929_s1 + $0x2cc] sm:$0xf] %v820_v63   ;;  %v954_v46 = vld [vmem:[%s1928_s0 + $0x370] sm:$0x3]  }
  0x3e   :  { %822 = vst [vmem:[%s1929_s1 + $0x2d4] sm:$0x30] %v820_v63   ;;  %823 = vst [vmem:[%s1929_s1 + $0x2e2] sm:$0xc0] %v820_v63   ;;  %v956_v47 = vld [vmem:[%s1928_s0 + $0x378] sm:$0x3]  }
  0x3f   :  { %825 = vst [vmem:[%s1929_s1 + $0x2e2] sm:$0x3f] %v824_v0   ;;  %826 = vst [vmem:[%s1929_s1 + $0x2ea] sm:$0xc0] %v824_v0  }
  0x40   :  { %828 = vst [vmem:[%s1929_s1 + $0x2ea] sm:$0x3f] %v827_v1   ;;  %829 = vst [vmem:[%s1929_s1 + $0x2f2] sm:$0xc0] %v827_v1  }
  0x41   :  { %831 = vst [vmem:[%s1929_s1 + $0x300] sm:$0xff] %v830_v2   ;;  %833 = vst [vmem:[%s1929_s1 + $0x308] sm:$0xff] %v832_v3  }
  0x42   :  { %835 = vst [vmem:[%s1929_s1 + $0x310] sm:$0x3] %v834_v4   ;;  %837 = vst [vmem:[%s1929_s1 + $0x318] sm:$0x3] %v836_v5  }
  0x43   :  { %839 = vst [vmem:[%s1929_s1 + $0x320] sm:$0xff] %v838_v6   ;;  %841 = vst [vmem:[%s1929_s1 + $0x328] sm:$0xff] %v840_v7  }
  0x44   :  { %843 = vst [vmem:[%s1929_s1 + $0x330] sm:$0x3] %v842_v8   ;;  %844 = vst [vmem:[%s1929_s1 + $0x33e] sm:$0xfc] %v842_v8  }
  0x45   :  { %846 = vst [vmem:[%s1929_s1 + $0x338] sm:$0x3] %v845_v9   ;;  %847 = vst [vmem:[%s1929_s1 + $0x346] sm:$0xfc] %v845_v9  }
  0x46   :  { %849 = vst [vmem:[%s1929_s1 + $0x346] sm:$0x3] %v848_v10   ;;  %850 = vst [vmem:[%s1929_s1 + $0x34e] sm:$0xc] %v848_v10  }
  0x47   :  { %851 = vst [vmem:[%s1929_s1 + $0x35c] sm:$0xf0] %v848_v10   ;;  %853 = vst [vmem:[%s1929_s1 + $0x34e] sm:$0x3] %v852_v11  }
  0x48   :  { %854 = vst [vmem:[%s1929_s1 + $0x356] sm:$0xc] %v852_v11   ;;  %855 = vst [vmem:[%s1929_s1 + $0x364] sm:$0xf0] %v852_v11  }
  0x49   :  { %857 = vst [vmem:[%s1929_s1 + $0x364] sm:$0xf] %v856_v12   ;;  %858 = vst [vmem:[%s1929_s1 + $0x36c] sm:$0x30] %v856_v12  }
  0x4a   :  { %859 = vst [vmem:[%s1929_s1 + $0x37a] sm:$0xc0] %v856_v12   ;;  %861 = vst [vmem:[%s1929_s1 + $0x36c] sm:$0xf] %v860_v13  }
  0x4b   :  { %862 = vst [vmem:[%s1929_s1 + $0x374] sm:$0x30] %v860_v13   ;;  %863 = vst [vmem:[%s1929_s1 + $0x382] sm:$0xc0] %v860_v13  }
  0x4c   :  { %865 = vst [vmem:[%s1929_s1 + $0x382] sm:$0x3f] %v864_v14   ;;  %866 = vst [vmem:[%s1929_s1 + $0x38a] sm:$0xc0] %v864_v14  }
  0x4d   :  { %868 = vst [vmem:[%s1929_s1 + $0x38a] sm:$0x3f] %v867_v15   ;;  %869 = vst [vmem:[%s1929_s1 + $0x392] sm:$0xc0] %v867_v15  }
  0x4e   :  { %871 = vst [vmem:[%s1929_s1 + $0x3a0] sm:$0xff] %v870_v16   ;;  %873 = vst [vmem:[%s1929_s1 + $0x3a8] sm:$0xff] %v872_v17  }
  0x4f   :  { %875 = vst [vmem:[%s1929_s1 + $0x3b0] sm:$0x3] %v874_v18   ;;  %877 = vst [vmem:[%s1929_s1 + $0x3b8] sm:$0x3] %v876_v19  }
  0x50   :  { %879 = vst [vmem:[%s1929_s1 + $0x3c0] sm:$0xff] %v878_v20   ;;  %881 = vst [vmem:[%s1929_s1 + $0x3c8] sm:$0xff] %v880_v21  }
  0x51   :  { %883 = vst [vmem:[%s1929_s1 + $0x3d0] sm:$0x3] %v882_v22   ;;  %884 = vst [vmem:[%s1929_s1 + $0x3de] sm:$0xfc] %v882_v22  }
  0x52   :  { %886 = vst [vmem:[%s1929_s1 + $0x3d8] sm:$0x3] %v885_v23   ;;  %887 = vst [vmem:[%s1929_s1 + $0x3e6] sm:$0xfc] %v885_v23  }
  0x53   :  { %889 = vst [vmem:[%s1929_s1 + $0x3e6] sm:$0x3] %v888_v24   ;;  %890 = vst [vmem:[%s1929_s1 + $0x3ee] sm:$0xc] %v888_v24  }
  0x54   :  { %891 = vst [vmem:[%s1929_s1 + $0x3fc] sm:$0xf0] %v888_v24   ;;  %893 = vst [vmem:[%s1929_s1 + $0x3ee] sm:$0x3] %v892_v25  }
  0x55   :  { %894 = vst [vmem:[%s1929_s1 + $0x3f6] sm:$0xc] %v892_v25   ;;  %895 = vst [vmem:[%s1929_s1 + $0x404] sm:$0xf0] %v892_v25  }
  0x56   :  { %897 = vst [vmem:[%s1929_s1 + $0x404] sm:$0xf] %v896_v26   ;;  %898 = vst [vmem:[%s1929_s1 + $0x40c] sm:$0x30] %v896_v26  }
  0x57   :  { %899 = vst [vmem:[%s1929_s1 + $0x41a] sm:$0xc0] %v896_v26   ;;  %901 = vst [vmem:[%s1929_s1 + $0x40c] sm:$0xf] %v900_v27  }
  0x58   :  { %902 = vst [vmem:[%s1929_s1 + $0x414] sm:$0x30] %v900_v27   ;;  %903 = vst [vmem:[%s1929_s1 + $0x422] sm:$0xc0] %v900_v27  }
  0x59   :  { %905 = vst [vmem:[%s1929_s1 + $0x422] sm:$0x3f] %v904_v28   ;;  %906 = vst [vmem:[%s1929_s1 + $0x42a] sm:$0xc0] %v904_v28  }
  0x5a   :  { %908 = vst [vmem:[%s1929_s1 + $0x42a] sm:$0x3f] %v907_v29   ;;  %909 = vst [vmem:[%s1929_s1 + $0x432] sm:$0xc0] %v907_v29  }
  0x5b   :  { %911 = vst [vmem:[%s1929_s1 + $0x440] sm:$0xff] %v910_v30   ;;  %913 = vst [vmem:[%s1929_s1 + $0x448] sm:$0xff] %v912_v31  }
  0x5c   :  { %915 = vst [vmem:[%s1929_s1 + $0x450] sm:$0x3] %v914_v32   ;;  %917 = vst [vmem:[%s1929_s1 + $0x458] sm:$0x3] %v916_v33  }
  0x5d   :  { %919 = vst [vmem:[%s1929_s1 + $0x460] sm:$0xff] %v918_v34   ;;  %921 = vst [vmem:[%s1929_s1 + $0x468] sm:$0xff] %v920_v35  }
  0x5e   :  { %923 = vst [vmem:[%s1929_s1 + $0x470] sm:$0x3] %v922_v36   ;;  %924 = vst [vmem:[%s1929_s1 + $0x47e] sm:$0xfc] %v922_v36  }
  0x5f   :  { %926 = vst [vmem:[%s1929_s1 + $0x478] sm:$0x3] %v925_v37   ;;  %927 = vst [vmem:[%s1929_s1 + $0x486] sm:$0xfc] %v925_v37  }
  0x60   :  { %929 = vst [vmem:[%s1929_s1 + $0x486] sm:$0x3] %v928_v38   ;;  %930 = vst [vmem:[%s1929_s1 + $0x48e] sm:$0xc] %v928_v38  }
  0x61   :  { %931 = vst [vmem:[%s1929_s1 + $0x49c] sm:$0xf0] %v928_v38   ;;  %933 = vst [vmem:[%s1929_s1 + $0x48e] sm:$0x3] %v932_v39  }
  0x62   :  { %934 = vst [vmem:[%s1929_s1 + $0x496] sm:$0xc] %v932_v39   ;;  %935 = vst [vmem:[%s1929_s1 + $0x4a4] sm:$0xf0] %v932_v39  }
  0x63   :  { %937 = vst [vmem:[%s1929_s1 + $0x4a4] sm:$0xf] %v936_v40   ;;  %938 = vst [vmem:[%s1929_s1 + $0x4ac] sm:$0x30] %v936_v40  }
  0x64   :  { %939 = vst [vmem:[%s1929_s1 + $0x4ba] sm:$0xc0] %v936_v40   ;;  %941 = vst [vmem:[%s1929_s1 + $0x4ac] sm:$0xf] %v940_v41  }
  0x65   :  { %942 = vst [vmem:[%s1929_s1 + $0x4b4] sm:$0x30] %v940_v41   ;;  %943 = vst [vmem:[%s1929_s1 + $0x4c2] sm:$0xc0] %v940_v41  }
  0x66   :  { %945 = vst [vmem:[%s1929_s1 + $0x4c2] sm:$0x3f] %v944_v42   ;;  %946 = vst [vmem:[%s1929_s1 + $0x4ca] sm:$0xc0] %v944_v42  }
  0x67   :  { %948 = vst [vmem:[%s1929_s1 + $0x4ca] sm:$0x3f] %v947_v43   ;;  %949 = vst [vmem:[%s1929_s1 + $0x4d2] sm:$0xc0] %v947_v43  }
  0x68   :  { %951 = vst [vmem:[%s1929_s1 + $0x4e0] sm:$0xff] %v950_v44   ;;  %953 = vst [vmem:[%s1929_s1 + $0x4e8] sm:$0xff] %v952_v45  }
  0x69   :  { %955 = vst [vmem:[%s1929_s1 + $0x4f0] sm:$0x3] %v954_v46   ;;  %957 = vst [vmem:[%s1929_s1 + $0x4f8] sm:$0x3] %v956_v47  }

// kernel: map_encoder_forward.1
= control target key start
LH: loop header
LB: loop body
LE: loop exit
PB: predicated region body
PF: predicated region fallthrough
CT: control target
= control target key end

     0   :  { %15 = vsyncpa [#allocation3], 0  ;;  %s8358_s0 = inlined_call_operand.vmem [shape: f32[2,10,40,7], index: 0, kind: input, shape index: {}]   ;;  %s8359_s1 = inlined_call_operand.vmem [shape: f32[10,40,256], index: 1, kind: input, shape index: {}]   ;;  %s8360_s2 = inlined_call_operand.vmem [shape: f32[7,64], index: 2, kind: input, shape index: {}]   ;;  %s8361_s3 = inlined_call_operand.vmem [shape: f32[1,64], index: 3, kind: input, shape index: {}]   ;;  %s8362_s4 = inlined_call_operand.vmem [shape: f32[64,128], index: 4, kind: input, shape index: {}]   ;;  %s8363_s5 = inlined_call_operand.vmem [shape: f32[1,128], index: 5, kind: input, shape index: {}]   ;;  %s8364_s6 = inlined_call_operand.vmem [shape: f32[128,256], index: 6, kind: input, shape index: {}]   ;;  %s8365_s7 = inlined_call_operand.vmem [shape: f32[1,256], index: 7, kind: input, shape index: {}]   ;;  %s8366_s8 = inlined_call_operand.hbm [shape: f32[2,40,256], index: 8, kind: output, shape index: {0}]   ;;  %s8367_s9 = inlined_call_operand.vmem [shape: f32[2,40,1], index: 9, kind: output, shape index: {1}]  }
   0x1   :  { %17 = vsyncpa [#allocation3 + $0x1], 0  ;;  %s5560_s30 = smov 0   ;;  %s5562_s10 = smov 0  }
   0x2   :  { %s5564_s11 = smov 0   ;;  %s5566_s12 = smov 0  }
   0x3   :  { %s5568_s13 = smov 0   ;;  %s5570_s14 = smov 0  }
   0x4 LB: > { %s4314_s15 = sadd.s32 4294967295, %s5503_s14   ;;  %s4315_s16 = sadd.s32 4294967294, %s5503_s14   ;;  %s5503_s14 = sphi %s5570_s14, %s23_s14   ;;  %s5499_s13 = sphi %s5568_s13, %s8585_s13   ;;  %s5495_s12 = sphi %s5566_s12, %s8584_s12   ;;  %s5491_s11 = sphi %s5564_s11, %s8583_s11   ;;  %s5487_s10 = sphi %s5562_s10, %s8582_s10   ;;  %s5483_s30 = sphi %s5560_s30, %s8581_s30  }
   0x5   : > { %s35_s17 = sadd.s32 1, %s5499_s13  ;;  %s224_s18 = sadd.s32 1, %s5491_s11 }
   0x6   : > { %p37_p0 = scmp.ge.s32.totalorder %s35_s17, 2  ;;  %p234_p1 = scmp.ne.s32.totalorder %s5491_s11, %s5487_s10 }
   0x7   : > { %p235_p2 = scmp.eq.s32.totalorder %s4314_s15, 1  ;;  %p240_p3 = scmp.ne.s32.totalorder %s5487_s10, %s5483_s30 }
   0x8   : > { %s8587_s17 = smov (%p37_p0, %s35_s17), 0  ;;  %p241_p5 = scmp.eq.s32.totalorder %s4315_s16, 1 }
   0x9   : > { %p5600_p4 = por %p235_p2, %p234_p1  ;;  %s219_s20 = ssub.s32 %s5499_s13, %s8587_s17 }
   0xa   : > { %p4319_p6 = scmp.ge.s32.totalorder %s5503_s14, 1  ;;  %p222_p7 = scmp.eq.s32.totalorder %s219_s20, 0 }
   0xb   : > { %p5607_p8 = por %p241_p5, %p240_p3  ;;  %p328_p9 = scmp.lt.s32.totalorder %s5503_s14, 3 }
   0xc   : > { %s5613_s22 = scalar_select %p222_p7, %s5491_s11, %s224_s18  }
   0xd   : > { %p329_p10 = pnand %p4319_p6, %p328_p9 }
   0xf   : > { %332 = sbr.rel (%p329_p10) target bundleno = 2606 (0xa2e), region = 52 }
  0x14   : > { %v5618_v0 = vld [vmem:[%s8360_s2] sm:$0x7f]  ;;  %vm482_vm0 = vcmask 1046528   ;;  %p384_p11 = scmp.lt.s32.totalorder %s5495_s12, 1  ;;  %v8368_v1 = vmov 0.0   ;;  %vm5506_vm1 = vmmov 0  }
  0x15   : > { %4762 = vmatprep.subr.mxu0 %v8368_v1  ;;  %4764 = vmatprep.mubr.msk.f32.mxu0 %vm5506_vm1, %v8368_v1  ;;  %v5627_v2 = vld [vmem:[%s8362_s4 + $0x38] sm:$0xff]  ;;  %v5638_v3 = vld [vmem:[%s8362_s4 + $0x30] sm:$0xff]  ;;  %v5648_v4 = vld [vmem:[%s8362_s4 + $0x28] sm:$0xff]  ;;  %vm466_vm2 = vcmask 56320   ;;  %vm587_vm3 = vcmask 523264   ;;  %s5245_s16 = smul.u32 1280, %s5495_s12 }
  0x16   : > { %4763 = vmatpush3.msk.msra.mxu0 %vm482_vm0, %v5618_v0  ;;  %s5632_s27 = scalar_select %p384_p11, %s5495_s12, 1  ;;  %4779 = vmatprep.subr.mxu1 %v8368_v1  ;;  %v5660_v5 = vld [vmem:[%s8362_s4 + $0x20] sm:$0xff]  ;;  %v5669_v7 = vld [vmem:[%s8362_s4 + $0x18] sm:$0xff]  ;;  %v5679_v9 = vld [vmem:[%s8362_s4 + $0x10] sm:$0xff] }
  0x17   : > { %4780 = vmatpush3.msra.mxu1 %v5627_v2  ;;  %4795 = vmatprep.mubr.msk.f32.mxu1 %vm5506_vm1, %v8368_v1  ;;  %v5702_v13 = vld [vmem:[%s8362_s4 + $0x8] sm:$0xff]  ;;  %v5709_v14 = vld [vmem:[%s8362_s4] sm:$0xff]  ;;  %v5716_v15 = vld [vmem:[%s8364_s6 + $0xf8] sm:$0xff]  ;;  %s8304_s23 = scalar_lea.hbm %s8366_s8, %s5245_s16 }
  0x18   : > { %s5243_s15 = smul.u32 400, %s5632_s27  ;;  %4781 = vmatprep.subr.mxu1 %v8368_v1  ;;  %v5721_v16 = vld [vmem:[%s8364_s6 + $0xf0] sm:$0xff]  ;;  %v5726_v17 = vld [vmem:[%s8364_s6 + $0xe8] sm:$0xff]  ;;  %709 = vmatprep.subr.mxu0 %v5716_v15  ;;  %v5732_v18 = vld [vmem:[%s8364_s6 + $0xe0] sm:$0xff] }
  0x19   : > { %4782 = vmatpush3.msra.mxu1 %v5638_v3  ;;  %v5738_v19 = vld [vmem:[%s8364_s6 + $0xd8] sm:$0xff]  ;;  %v5744_v20 = vld [vmem:[%s8364_s6 + $0xd0] sm:$0xff]  ;;  %v5750_v21 = vld [vmem:[%s8364_s6 + $0xc8] sm:$0xff]  ;;  %s5244_s26 = smul.u32 40, %s5632_s27  ;;  %s369_s27 = sand.u32 1, %s5487_s10  }
  0x1a   : > { %s5654_s24 = scalar_lea.vmem %s8358_s0, %s5243_s15  ;;  %4783 = vmatprep.subr.mxu1 %v8368_v1  ;;  %v5756_v22 = vld [vmem:[%s8364_s6 + $0xc0] sm:$0xff]  ;;  %v5762_v23 = vld [vmem:[%s8364_s6 + $0xb8] sm:$0xff]  ;;  %v5768_v24 = vld [vmem:[%s8364_s6 + $0xb0] sm:$0xff]  ;;  %s5242_s28 = smul.u32 80, %s369_s27 }
  0x1b   : > { %v455_v6 = vld [vmem:[%s5654_s24] sm:$0xff]  ;;  %4784 = vmatpush3.msra.mxu1 %v5648_v4  ;;  %v456_v8 = vld [vmem:[%s5654_s24 + $0x8] sm:$0xff]  ;;  %v457_v10 = vld [vmem:[%s5654_s24 + $0x10] sm:$0xff]  ;;  %s7767_s29 = scalar_lea.vmem %s8367_s9, %s5244_s26  ;;  %s8313_s12 = scalar_lea.sflag [#allocation3], %s369_s27 }
  0x1c   : > { %4765 = vmatmul.mubr.msk.f32.vlgmr.msra.gmra.mxu0 %vm466_vm2, %v455_v6  ;;  %4785 = vmatprep.subr.mxu1 %v8368_v1  ;;  %v458_v11 = vld [vmem:[%s5654_s24 + $0x18] sm:$0xff]  ;;  %v459_v12 = vld [vmem:[%s5654_s24 + $0x20] sm:$0xff]  ;;  %v5774_v25 = vld [vmem:[%s8364_s6 + $0xa8] sm:$0xff]  ;;  %s8256_s26 = scalar_lea.vmem [#allocation2], %s5242_s28 }
  0x1d   : > { %4767 = vmatprep.mubr.msk.f32.mxu0 %vm5506_vm1, %v8368_v1  ;;  %4786 = vmatpush3.msra.mxu1 %v5660_v5  ;;  %v5780_v26 = vld [vmem:[%s8364_s6 + $0xa0] sm:$0xff]  ;;  %v5786_v27 = vld [vmem:[%s8364_s6 + $0x98] sm:$0xff]  ;;  %v5792_v28 = vld [vmem:[%s8364_s6 + $0x90] sm:$0xff]  ;;  %s4179_s18 = sshll.u32 %s8256_s26, 4  ;;  %s8306_s18 = int_to_ptr.vmem [resolvable:$true] %s4179_s18 }
  0x1e   : > { %4787 = vmatprep.subr.mxu1 %v8368_v1  ;;  %710 = vmatpush1.msra.mxu0 %v5721_v16  ;;  %v5798_v29 = vld [vmem:[%s8364_s6 + $0x88] sm:$0xff]  ;;  %v5804_v30 = vld [vmem:[%s8364_s6 + $0x80] sm:$0xff]  ;;  %v5810_v31 = vld [vmem:[%s8364_s6 + $0x78] sm:$0xff]  ;;  %s5427_s25 = scalar_lea.vmem %s8306_s18, 1280 }
  0x1f   : > { %4788 = vmatpush3.msra.mxu1 %v5669_v7  ;;  %711 = vmatprep.subr.mxu0 %v5726_v17  ;;  %v5816_v32 = vld [vmem:[%s8364_s6 + $0x70] sm:$0xff]  ;;  %v5822_v33 = vld [vmem:[%s8364_s6 + $0x68] sm:$0xff]  ;;  %v5828_v34 = vld [vmem:[%s8364_s6 + $0x60] sm:$0xff]  ;;  %p5428_p12 = scmp.ne.s32.totalorder %s8306_s18, %s5427_s25 }
  0x20   : > { %4768 = vmatmul.mubr.msk.f32.gmra.mxu0 %vm466_vm2, %v456_v8  ;;  %4789 = vmatprep.subr.mxu1 %v8368_v1  ;;  %v5834_v35 = vld [vmem:[%s8364_s6 + $0x58] sm:$0xff]  ;;  %v5840_v36 = vld [vmem:[%s8364_s6 + $0x50] sm:$0xff]  ;;  %v5846_v37 = vld [vmem:[%s8364_s6 + $0x48] sm:$0xff] }
  0x21   : > { %4770 = vmatprep.mubr.msk.f32.mxu0 %vm5506_vm1, %v8368_v1  ;;  %4790 = vmatpush3.msra.mxu1 %v5679_v9  ;;  %v5852_v38 = vld [vmem:[%s8364_s6 + $0x40] sm:$0xff]  ;;  %v5858_v39 = vld [vmem:[%s8364_s6 + $0x38] sm:$0xff]  ;;  %v5864_v40 = vld [vmem:[%s8364_s6 + $0x30] sm:$0xff]  ;;  %p5429_p13 = pnand %p5428_p12, %p5600_p4 }
  0x22   : > { %4791 = vmatprep.subr.mxu1 %v8368_v1  ;;  %712 = vmatpush1.msra.mxu0 %v5732_v18  ;;  %v5870_v41 = vld [vmem:[%s8364_s6 + $0x28] sm:$0xff]  ;;  %v5876_v42 = vld [vmem:[%s8364_s6 + $0x20] sm:$0xff]  ;;  %v4336_v8 = vld [vmem:[%s5654_s24 + $0x30] sm:$0xff] }
  0x23   : > { %4792 = vmatpush3.msra.mxu1 %v5702_v13  ;;  %713 = vmatprep.subr.mxu0 %v5738_v19  ;;  %v5884_v43 = vld [vmem:[%s8361_s3] ss:$0 sm:$0xff]  ;;  %v4335_v6 = vld [vmem:[%s5654_s24 + $0x28] sm:$0xff]  ;;  %p5430_p0 = pneg %p5429_p13 }
  0x24   : > { %4771 = vmatmul.mubr.msk.f32.gmra.mxu0 %vm466_vm2, %v457_v10  ;;  %4793 = vmatprep.subr.mxu1 %v8368_v1  ;;  %v4337_v10 = vld [vmem:[%s5654_s24 + $0x38] sm:$0xff] }
  0x25   : > { %4773 = vmatprep.mubr.msk.f32.mxu0 %vm5506_vm1, %v8368_v1  ;;  %4794 = vmatpush3.msra.mxu1 %v5709_v14 }
  0x26   : > { %4810 = vmatprep.subr.mxu1 %v8368_v1  ;;  %714 = vmatpush1.msra.mxu0 %v5744_v20 }
  0x27   : > { %715 = vmatprep.subr.mxu0 %v5750_v21 }
  0x28   : > { %4774 = vmatmul.mubr.msk.f32.gmra.mxu0 %vm466_vm2, %v458_v11  ;;  %v4338_v11 = vld [vmem:[%s5654_s24 + $0x40] sm:$0xff] }
  0x29   : > { %4776 = vmatprep.mubr.msk.f32.mxu0 %vm5506_vm1, %v8368_v1  ;;  %716 = vmatpush1.msra.mxu0 %v5756_v22 }
  0x2a   : > { %717 = vmatprep.subr.mxu0 %v5762_v23 }
  0x2b   : > { %718 = vmatpush1.msra.mxu0 %v5768_v24 }
  0x2c   : > { %4777 = vmatmul.mubr.msk.f32.gmra.mxu0 %vm466_vm2, %v459_v12  ;;  %719 = vmatprep.subr.mxu0 %v5774_v25  ;;  %v4339_v12 = vld [vmem:[%s5654_s24 + $0x48] sm:$0xff] }
  0x2d   : > { %773 = vmatprep.mubr.f32.mxu0 %v8368_v1  ;;  %720 = vmatpush1.msra.mxu0 %v5780_v26 }
  0x2e   : > { %721 = vmatprep.subr.mxu0 %v5786_v27 }
  0x2f   : > { %722 = vmatpush1.msra.mxu0 %v5792_v28 }
  0x30   : > { %723 = vmatprep.subr.mxu0 %v5798_v29 }
  0x31   : > { %724 = vmatpush1.msra.mxu0 %v5804_v30 }
  0x32   : > { %725 = vmatprep.subr.mxu0 %v5810_v31 }
  0x33   : > { %726 = vmatpush1.msra.mxu0 %v5816_v32 }
  0x34   : > { %727 = vmatprep.subr.mxu0 %v5822_v33 }
  0x35   : > { %728 = vmatpush1.msra.mxu0 %v5828_v34 }
  0x36   : > { %729 = vmatprep.subr.mxu0 %v5834_v35 }
  0x37   : > { %730 = vmatpush1.msra.mxu0 %v5840_v36 }
  0x38   : > { %731 = vmatprep.subr.mxu0 %v5846_v37 }
  0x39   : > { %732 = vmatpush1.msra.mxu0 %v5852_v38 }
  0x3a   : > { %733 = vmatprep.subr.mxu0 %v5858_v39 }
  0x3b   : > { %734 = vmatpush1.msra.mxu0 %v5864_v40 }
  0x3c   : > { %735 = vmatprep.subr.mxu0 %v5870_v41 }
  0x3d   : > { %736 = vmatpush1.msra.mxu0 %v5876_v42 }
  0xdc   : > { %v552_v44 = vpop.f32.mrf.mxu0 }
  0xdd   : > { %v553_v45 = vadd.f32 %v5884_v43, %v552_v44  ;;  %v5958_v44 = vld [vmem:[%s8364_s6 + $0x18] sm:$0xff] }
  0xde   : > { %v4766_v46 = vpop.f32.mrf.mxu0  ;;  %737 = vmatprep.subr.mxu0 %v5958_v44 }
  0xdf   : > { %v576_v47 = vmax.f32 %v553_v45, 0.0  ;;  %v5964_v45 = vld [vmem:[%s8364_s6 + $0x10] sm:$0xff]  ;;  %v5971_v46 = vld [vmem:[%s8364_s6 + $0x8] sm:$0xff] }
  0xe0   : > { %v557_v48 = vpop.f32.mrf.mxu0  ;;  %738 = vmatpush1.msra.mxu0 %v5964_v45 }
  0xe1   : > { %v558_v49 = vadd.f32 %v5884_v43, %v557_v48  ;;  %4796 = vmatmul.mubr.msk.f32.vlgmr.msra.gmra.mxu1 %vm587_vm3, %v576_v47  ;;  %739 = vmatprep.subr.mxu0 %v5971_v46  ;;  %v5978_v47 = vld [vmem:[%s8364_s6] sm:$0xff] }
  0xe2   : > { %4811 = vmatpush3.msk.msra.mxu1 %vm482_vm0, %v5618_v0  ;;  %v4769_v50 = vpop.f32.mrf.mxu0  ;;  %4798 = vmatprep.mubr.msk.f32.mxu1 %vm5506_vm1, %v8368_v1  ;;  %v5988_v48 = vld [vmem:[%s8363_s5] ss:$0 sm:$0xff] }
  0xe3   : > { %v577_v51 = vmax.f32 %v558_v49, 0.0  ;;  %1060 = vmatprep.subr.mxu1 %v5716_v15  ;;  %740 = vmatpush1.msra.mxu0 %v5978_v47 }
  0xe4   : > { %v562_v52 = vpop.f32.mrf.mxu0  ;;  %4827 = vmatprep.subr.mxu0 %v8368_v1 }
  0xe5   : > { %v563_v53 = vadd.f32 %v5884_v43, %v562_v52  ;;  %4799 = vmatmul.mubr.msk.f32.gmra.mxu1 %vm587_vm3, %v577_v51 }
  0xe6   : > { %v4772_v54 = vpop.f32.mrf.mxu0  ;;  %4801 = vmatprep.mubr.msk.f32.mxu1 %vm5506_vm1, %v8368_v1 }
  0xe7   : > { %v578_v55 = vmax.f32 %v563_v53, 0.0 }
  0xe8   : > { %v567_v56 = vpop.f32.mrf.mxu0 }
  0xe9   : > { %v568_v57 = vadd.f32 %v5884_v43, %v567_v56  ;;  %4802 = vmatmul.mubr.msk.f32.gmra.mxu1 %vm587_vm3, %v578_v55 }
  0xea   : > { %v4775_v58 = vpop.f32.mrf.mxu0  ;;  %4804 = vmatprep.mubr.msk.f32.mxu1 %vm5506_vm1, %v8368_v1 }
  0xeb   : > { %v579_v59 = vmax.f32 %v568_v57, 0.0 }
  0xec   : > { %v572_v60 = vpop.f32.mrf.mxu0 }
  0xed   : > { %v573_v61 = vadd.f32 %v5884_v43, %v572_v60  ;;  %4805 = vmatmul.mubr.msk.f32.gmra.mxu1 %vm587_vm3, %v579_v59 }
  0xee   : > { %v4778_v62 = vpop.f32.mrf.mxu0  ;;  %4807 = vmatprep.mubr.msk.f32.mxu1 %vm5506_vm1, %v8368_v1 }
  0xef   : > { %v580_v63 = vmax.f32 %v573_v61, 0.0 }
  0xf1   : > { %4808 = vmatmul.mubr.msk.f32.gmra.mxu1 %vm587_vm3, %v580_v63 }
  0xf2   : > { %4812 = vmatprep.mubr.msk.f32.mxu1 %vm5506_vm1, %v8368_v1 }
  0xf5   : > { %4813 = vmatmul.mubr.msk.f32.vlgmr.msra.gmra.mxu1 %vm466_vm2, %v4335_v6 }
  0xf6   : > { %4815 = vmatprep.mubr.msk.f32.mxu1 %vm5506_vm1, %v8368_v1  ;;  %1061 = vmatpush1.msra.mxu1 %v5721_v16 }
  0xf7   : > { %1062 = vmatprep.subr.mxu1 %v5726_v17 }
  0xf8   : > { %1063 = vmatpush1.msra.mxu1 %v5732_v18 }
  0xf9   : > { %4816 = vmatmul.mubr.msk.f32.gmra.mxu1 %vm466_vm2, %v4336_v8  ;;  %1064 = vmatprep.subr.mxu1 %v5738_v19 }
  0xfa   : > { %4818 = vmatprep.mubr.msk.f32.mxu1 %vm5506_vm1, %v8368_v1  ;;  %1065 = vmatpush1.msra.mxu1 %v5744_v20 }
  0xfb   : > { %1066 = vmatprep.subr.mxu1 %v5750_v21 }
  0xfc   : > { %1067 = vmatpush1.msra.mxu1 %v5756_v22 }
  0xfd   : > { %4819 = vmatmul.mubr.msk.f32.gmra.mxu1 %vm466_vm2, %v4337_v10  ;;  %1068 = vmatprep.subr.mxu1 %v5762_v23 }
  0xfe   : > { %4821 = vmatprep.mubr.msk.f32.mxu1 %vm5506_vm1, %v8368_v1  ;;  %1069 = vmatpush1.msra.mxu1 %v5768_v24 }
  0xff   : > { %1070 = vmatprep.subr.mxu1 %v5774_v25 }
 0x100   : > { %1071 = vmatpush1.msra.mxu1 %v5780_v26 }
 0x101   : > { %4822 = vmatmul.mubr.msk.f32.gmra.mxu1 %vm466_vm2, %v4338_v11  ;;  %1072 = vmatprep.subr.mxu1 %v5786_v27 }
 0x102   : > { %4824 = vmatprep.mubr.msk.f32.mxu1 %vm5506_vm1, %v8368_v1  ;;  %1073 = vmatpush1.msra.mxu1 %v5792_v28 }
 0x103   : > { %1074 = vmatprep.subr.mxu1 %v5798_v29 }
 0x104   : > { %1075 = vmatpush1.msra.mxu1 %v5804_v30 }
 0x105   : > { %4825 = vmatmul.mubr.msk.f32.gmra.mxu1 %vm466_vm2, %v4339_v12  ;;  %1076 = vmatprep.subr.mxu1 %v5810_v31 }
 0x106   : > { %1077 = vmatpush1.msra.mxu1 %v5816_v32  ;;  %1124 = vmatprep.mubr.f32.mxu1 %v8368_v1 }
 0x107   : > { %1078 = vmatprep.subr.mxu1 %v5822_v33 }
 0x108   : > { %1079 = vmatpush1.msra.mxu1 %v5828_v34 }
 0x109   : > { %1080 = vmatprep.subr.mxu1 %v5834_v35 }
 0x10a   : > { %1081 = vmatpush1.msra.mxu1 %v5840_v36 }
 0x10b   : > { %1082 = vmatprep.subr.mxu1 %v5846_v37 }
 0x10c   : > { %1083 = vmatpush1.msra.mxu1 %v5852_v38 }
 0x10d   : > { %1084 = vmatprep.subr.mxu1 %v5858_v39 }
 0x10e   : > { %1085 = vmatpush1.msra.mxu1 %v5864_v40 }
 0x10f   : > { %1086 = vmatprep.subr.mxu1 %v5870_v41 }
 0x110   : > { %1087 = vmatpush1.msra.mxu1 %v5876_v42 }
 0x111   : > { %1088 = vmatprep.subr.mxu1 %v5958_v44 }
 0x112   : > { %1089 = vmatpush1.msra.mxu1 %v5964_v45 }
 0x113   : > { %1090 = vmatprep.subr.mxu1 %v5971_v46 }
 0x114   : > { %1091 = vmatpush1.msra.mxu1 %v5978_v47 }
 0x115   : > { %4875 = vmatprep.subr.mxu1 %v8368_v1 }
 0x1a1   : > { %v669_v49 = vpop.f32.mrf.mxu1 }
 0x1a2   : > { %v670_v50 = vadd.f32 %v5988_v48, %v669_v49 }
 0x1a3   : > { %v4797_v51 = vpop.f32.mrf.mxu1 }
 0x1a4   : > { %v693_v52 = vmax.f32 %v670_v50, 0.0 }
 0x1a5   : > { %v674_v53 = vpop.f32.mrf.mxu1 }
 0x1a6   : > { %v675_v54 = vadd.f32 %v5988_v48, %v674_v53  ;;  %774 = vmatmul.mubr.f32.vlgmr.msra.gmra.mxu0 %v693_v52 }
 0x1a7   : > { %4828 = vmatpush3.msra.mxu0 %v5627_v2  ;;  %v4800_v55 = vpop.f32.mrf.mxu1  ;;  %779 = vmatprep.mubr.f32.mxu0 %v8368_v1 }
 0x1a8   : > { %v694_v56 = vmax.f32 %v675_v54, 0.0  ;;  %4829 = vmatprep.subr.mxu0 %v8368_v1 }
 0x1a9   : > { %v679_v57 = vpop.f32.mrf.mxu1  ;;  %4830 = vmatpush3.msra.mxu0 %v5638_v3 }
 0x1aa   : > { %v680_v58 = vadd.f32 %v5988_v48, %v679_v57  ;;  %780 = vmatmul.mubr.f32.gmra.mxu0 %v694_v56  ;;  %4831 = vmatprep.subr.mxu0 %v8368_v1 }
 0x1ab   : > { %v4803_v59 = vpop.f32.mrf.mxu1  ;;  %4832 = vmatpush3.msra.mxu0 %v5648_v4  ;;  %785 = vmatprep.mubr.f32.mxu0 %v8368_v1 }
 0x1ac   : > { %v695_v60 = vmax.f32 %v680_v58, 0.0  ;;  %4833 = vmatprep.subr.mxu0 %v8368_v1 }
 0x1ad   : > { %v684_v61 = vpop.f32.mrf.mxu1  ;;  %4834 = vmatpush3.msra.mxu0 %v5660_v5 }
 0x1ae   : > { %v685_v62 = vadd.f32 %v5988_v48, %v684_v61  ;;  %786 = vmatmul.mubr.f32.gmra.mxu0 %v695_v60  ;;  %4835 = vmatprep.subr.mxu0 %v8368_v1 }
 0x1af   : > { %v4806_v63 = vpop.f32.mrf.mxu1  ;;  %4836 = vmatpush3.msra.mxu0 %v5669_v7  ;;  %791 = vmatprep.mubr.f32.mxu0 %v8368_v1 }
 0x1b0   : > { %v696_v6 = vmax.f32 %v685_v62, 0.0  ;;  %4837 = vmatprep.subr.mxu0 %v8368_v1 }
 0x1b1   : > { %v689_v8 = vpop.f32.mrf.mxu1  ;;  %4838 = vmatpush3.msra.mxu0 %v5679_v9 }
 0x1b2   : > { %v690_v10 = vadd.f32 %v5988_v48, %v689_v8  ;;  %792 = vmatmul.mubr.f32.gmra.mxu0 %v696_v6  ;;  %4839 = vmatprep.subr.mxu0 %v8368_v1 }
 0x1b3   : > { %v4809_v11 = vpop.f32.mrf.mxu1  ;;  %797 = vmatprep.mubr.f32.mxu0 %v8368_v1  ;;  %4840 = vmatpush3.msra.mxu0 %v5702_v13 }
 0x1b4   : > { %v697_v12 = vmax.f32 %v690_v10, 0.0  ;;  %4841 = vmatprep.subr.mxu0 %v8368_v1 }
 0x1b5   : > { %v921_v49 = vpop.f32.mrf.mxu1  ;;  %4842 = vmatpush3.msra.mxu0 %v5709_v14 }
 0x1b6   : > { %v922_v50 = vadd.f32 %v5884_v43, %v921_v49  ;;  %798 = vmatmul.mubr.f32.gmra.mxu0 %v697_v12  ;;  %4858 = vmatprep.subr.mxu0 %v8368_v1  ;;  %v4361_v49 = vld [vmem:[%s5654_s24 + $0x50] sm:$0xff] }
 0x1b7   : > { %v4814_v51 = vpop.f32.mrf.mxu1  ;;  %4843 = vmatprep.mubr.msk.f32.mxu0 %vm5506_vm1, %v8368_v1 }
 0x1b8   : > { %v945_v52 = vmax.f32 %v922_v50, 0.0  ;;  %v4362_v50 = vld [vmem:[%s5654_s24 + $0x58] sm:$0xff]  ;;  %v4363_v51 = vld [vmem:[%s5654_s24 + $0x60] sm:$0xff] }
 0x1b9   : > { %v926_v53 = vpop.f32.mrf.mxu1 }
 0x1ba   : > { %v927_v54 = vadd.f32 %v5884_v43, %v926_v53  ;;  %4844 = vmatmul.mubr.msk.f32.vlgmr.msra.gmra.mxu0 %vm587_vm3, %v945_v52  ;;  %v4364_v52 = vld [vmem:[%s5654_s24 + $0x68] sm:$0xff]  ;;  %v4365_v53 = vld [vmem:[%s5654_s24 + $0x70] sm:$0xff] }
 0x1bb   : > { %4859 = vmatpush3.msk.msra.mxu0 %vm482_vm0, %v5618_v0  ;;  %v4817_v55 = vpop.f32.mrf.mxu1  ;;  %4846 = vmatprep.mubr.msk.f32.mxu0 %vm5506_vm1, %v8368_v1 }
 0x1bc   : > { %v946_v56 = vmax.f32 %v927_v54, 0.0  ;;  %1427 = vmatprep.subr.mxu0 %v5716_v15 }
 0x1bd   : > { %v931_v57 = vpop.f32.mrf.mxu1 }
 0x1be   : > { %v932_v58 = vadd.f32 %v5884_v43, %v931_v57  ;;  %4847 = vmatmul.mubr.msk.f32.gmra.mxu0 %vm587_vm3, %v946_v56 }
 0x1bf   : > { %v4820_v59 = vpop.f32.mrf.mxu1  ;;  %4849 = vmatprep.mubr.msk.f32.mxu0 %vm5506_vm1, %v8368_v1 }
 0x1c0   : > { %v947_v60 = vmax.f32 %v932_v58, 0.0 }
 0x1c1   : > { %v936_v61 = vpop.f32.mrf.mxu1 }
 0x1c2   : > { %v937_v62 = vadd.f32 %v5884_v43, %v936_v61  ;;  %4850 = vmatmul.mubr.msk.f32.gmra.mxu0 %vm587_vm3, %v947_v60 }
 0x1c3   : > { %v4823_v63 = vpop.f32.mrf.mxu1  ;;  %4852 = vmatprep.mubr.msk.f32.mxu0 %vm5506_vm1, %v8368_v1 }
 0x1c4   : > { %v948_v6 = vmax.f32 %v937_v62, 0.0 }
 0x1c5   : > { %v941_v8 = vpop.f32.mrf.mxu1 }
 0x1c6   : > { %v942_v10 = vadd.f32 %v5884_v43, %v941_v8  ;;  %4853 = vmatmul.mubr.msk.f32.gmra.mxu0 %vm587_vm3, %v948_v6 }
 0x1c7   : > { %v4826_v11 = vpop.f32.mrf.mxu1  ;;  %4855 = vmatprep.mubr.msk.f32.mxu0 %vm5506_vm1, %v8368_v1 }
 0x1c8   : > { %v949_v12 = vmax.f32 %v942_v10, 0.0 }
 0x1ca   : > { %4856 = vmatmul.mubr.msk.f32.gmra.mxu0 %vm587_vm3, %v949_v12 }
 0x1cb   : > { %4860 = vmatprep.mubr.msk.f32.mxu0 %vm5506_vm1, %v8368_v1 }
 0x1ce   : > { %4861 = vmatmul.mubr.msk.f32.vlgmr.msra.gmra.mxu0 %vm466_vm2, %v4361_v49 }
 0x1cf   : > { %4863 = vmatprep.mubr.msk.f32.mxu0 %vm5506_vm1, %v8368_v1  ;;  %1428 = vmatpush1.msra.mxu0 %v5721_v16 }
 0x1d0   : > { %1429 = vmatprep.subr.mxu0 %v5726_v17 }
 0x1d1   : > { %1430 = vmatpush1.msra.mxu0 %v5732_v18 }
 0x1d2   : > { %4864 = vmatmul.mubr.msk.f32.gmra.mxu0 %vm466_vm2, %v4362_v50  ;;  %1431 = vmatprep.subr.mxu0 %v5738_v19 }
 0x1d3   : > { %4866 = vmatprep.mubr.msk.f32.mxu0 %vm5506_vm1, %v8368_v1  ;;  %1432 = vmatpush1.msra.mxu0 %v5744_v20 }
 0x1d4   : > { %1433 = vmatprep.subr.mxu0 %v5750_v21 }
 0x1d5   : > { %1434 = vmatpush1.msra.mxu0 %v5756_v22 }
 0x1d6   : > { %4867 = vmatmul.mubr.msk.f32.gmra.mxu0 %vm466_vm2, %v4363_v51  ;;  %1435 = vmatprep.subr.mxu0 %v5762_v23 }
 0x1d7   : > { %4869 = vmatprep.mubr.msk.f32.mxu0 %vm5506_vm1, %v8368_v1  ;;  %1436 = vmatpush1.msra.mxu0 %v5768_v24 }
 0x1d8   : > { %1437 = vmatprep.subr.mxu0 %v5774_v25 }
 0x1d9   : > { %1438 = vmatpush1.msra.mxu0 %v5780_v26 }
 0x1da   : > { %4870 = vmatmul.mubr.msk.f32.gmra.mxu0 %vm466_vm2, %v4364_v52  ;;  %1439 = vmatprep.subr.mxu0 %v5786_v27 }
 0x1db   : > { %4872 = vmatprep.mubr.msk.f32.mxu0 %vm5506_vm1, %v8368_v1  ;;  %1440 = vmatpush1.msra.mxu0 %v5792_v28 }
 0x1dc   : > { %1441 = vmatprep.subr.mxu0 %v5798_v29 }
 0x1dd   : > { %1442 = vmatpush1.msra.mxu0 %v5804_v30 }
 0x1de   : > { %4873 = vmatmul.mubr.msk.f32.gmra.mxu0 %vm466_vm2, %v4365_v53  ;;  %1443 = vmatprep.subr.mxu0 %v5810_v31 }
 0x1df   : > { %1444 = vmatpush1.msra.mxu0 %v5816_v32  ;;  %1491 = vmatprep.mubr.f32.mxu0 %v8368_v1 }
 0x1e0   : > { %1445 = vmatprep.subr.mxu0 %v5822_v33 }
 0x1e1   : > { %1446 = vmatpush1.msra.mxu0 %v5828_v34 }
 0x1e2   : > { %1447 = vmatprep.subr.mxu0 %v5834_v35 }
 0x1e3   : > { %1448 = vmatpush1.msra.mxu0 %v5840_v36 }
 0x1e4   : > { %1449 = vmatprep.subr.mxu0 %v5846_v37 }
 0x1e5   : > { %1450 = vmatpush1.msra.mxu0 %v5852_v38 }
 0x1e6   : > { %1451 = vmatprep.subr.mxu0 %v5858_v39 }
 0x1e7   : > { %1452 = vmatpush1.msra.mxu0 %v5864_v40 }
 0x1e8   : > { %1453 = vmatprep.subr.mxu0 %v5870_v41 }
 0x1e9   : > { %1454 = vmatpush1.msra.mxu0 %v5876_v42 }
 0x1ea   : > { %1455 = vmatprep.subr.mxu0 %v5958_v44 }
 0x1eb   : > { %1456 = vmatpush1.msra.mxu0 %v5964_v45 }
 0x1ec   : > { %1457 = vmatprep.subr.mxu0 %v5971_v46 }
 0x1ed   : > { %1458 = vmatpush1.msra.mxu0 %v5978_v47 }
 0x1ee   : > { %4923 = vmatprep.subr.mxu0 %v8368_v1 }
 0x266   : > { %v6091_v54 = vpop.f32.mrf.mxu0 }
 0x268   : > { %v6093_v55 = vpop.f32.mrf.mxu0 }
 0x26a   : > { %v6095_v56 = vpop.f32.mrf.mxu0 }
 0x26c   : > { %v6097_v57 = vpop.f32.mrf.mxu0 }
 0x26d   : > { %8432 = vst [vmem:[#allocation5_spill] sm:$0xff] %v6097_v57 }
 0x26e   : > { %v6099_v58 = vpop.f32.mrf.mxu0 }
 0x270   : > { %v6101_v59 = vpop.f32.mrf.mxu0 }
 0x271   : > { %8433 = vst [vmem:[#allocation6_spill] sm:$0xff] %v6101_v59 }
 0x272   : > { %v6103_v60 = vpop.f32.mrf.mxu0 }
 0x274   : > { %v6105_v61 = vpop.f32.mrf.mxu0 }
 0x275   : > { %8434 = vst [vmem:[#allocation7_spill] sm:$0xff] %v6105_v61 }
 0x276   : > { %v6107_v62 = vpop.f32.mrf.mxu0 }
 0x278   : > { %v6109_v63 = vpop.f32.mrf.mxu0 }
 0x279   : > { %8435 = vst [vmem:[#allocation8_spill] sm:$0xff] %v6109_v63  ;;  %v4377_v63 = vld [vmem:[%s8359_s1 + $0xa0] sm:$0xff] }
 0x27a   : > { %v1031_v6 = vpop.f32.mrf.mxu0 }
 0x27b   : > { %v1032_v8 = vadd.f32 %v5988_v48, %v1031_v6 }
 0x27c   : > { %v4845_v10 = vpop.f32.mrf.mxu0 }
 0x27d   : > { %v1055_v11 = vmax.f32 %v1032_v8, 0.0 }
 0x27e   : > { %v1036_v12 = vpop.f32.mrf.mxu0 }
 0x27f   : > { %v1037_v49 = vadd.f32 %v5988_v48, %v1036_v12  ;;  %1125 = vmatmul.mubr.f32.vlgmr.msra.gmra.mxu1 %v1055_v11 }
 0x280   : > { %4876 = vmatpush3.msra.mxu1 %v5627_v2  ;;  %v4848_v50 = vpop.f32.mrf.mxu0  ;;  %1130 = vmatprep.mubr.f32.mxu1 %v8368_v1 }
 0x281   : > { %v1056_v51 = vmax.f32 %v1037_v49, 0.0  ;;  %4877 = vmatprep.subr.mxu1 %v8368_v1 }
 0x282   : > { %v1041_v52 = vpop.f32.mrf.mxu0  ;;  %4878 = vmatpush3.msra.mxu1 %v5638_v3 }
 0x283   : > { %v1042_v53 = vadd.f32 %v5988_v48, %v1041_v52  ;;  %1131 = vmatmul.mubr.f32.gmra.mxu1 %v1056_v51  ;;  %4879 = vmatprep.subr.mxu1 %v8368_v1 }
 0x284   : > { %v4851_v6 = vpop.f32.mrf.mxu0  ;;  %4880 = vmatpush3.msra.mxu1 %v5648_v4  ;;  %1136 = vmatprep.mubr.f32.mxu1 %v8368_v1 }
 0x285   : > { %v1057_v8 = vmax.f32 %v1042_v53, 0.0  ;;  %4881 = vmatprep.subr.mxu1 %v8368_v1 }
 0x286   : > { %v1046_v10 = vpop.f32.mrf.mxu0  ;;  %4882 = vmatpush3.msra.mxu1 %v5660_v5 }
 0x287   : > { %v1047_v11 = vadd.f32 %v5988_v48, %v1046_v10  ;;  %1137 = vmatmul.mubr.f32.gmra.mxu1 %v1057_v8  ;;  %4883 = vmatprep.subr.mxu1 %v8368_v1 }
 0x288   : > { %v4854_v3 = vpop.f32.mrf.mxu0  ;;  %4884 = vmatpush3.msra.mxu1 %v5669_v7  ;;  %1142 = vmatprep.mubr.f32.mxu1 %v8368_v1 }
 0x289   : > { %v1058_v12 = vmax.f32 %v1047_v11, 0.0  ;;  %4885 = vmatprep.subr.mxu1 %v8368_v1 }
 0x28a   : > { %v1051_v4 = vpop.f32.mrf.mxu0  ;;  %4886 = vmatpush3.msra.mxu1 %v5679_v9 }
 0x28b   : > { %v1052_v49 = vadd.f32 %v5988_v48, %v1051_v4  ;;  %1143 = vmatmul.mubr.f32.gmra.mxu1 %v1058_v12  ;;  %4887 = vmatprep.subr.mxu1 %v8368_v1 }
 0x28c   : > { %v4857_v5 = vpop.f32.mrf.mxu0  ;;  %1148 = vmatprep.mubr.f32.mxu1 %v8368_v1  ;;  %4888 = vmatpush3.msra.mxu1 %v5702_v13 }
 0x28d   : > { %v1059_v50 = vmax.f32 %v1052_v49, 0.0  ;;  %4889 = vmatprep.subr.mxu1 %v8368_v1 }
 0x28e   : > { %v1288_v7 = vpop.f32.mrf.mxu0  ;;  %4890 = vmatpush3.msra.mxu1 %v5709_v14 }
 0x28f   : > { %v1289_v51 = vadd.f32 %v5884_v43, %v1288_v7  ;;  %1149 = vmatmul.mubr.f32.gmra.mxu1 %v1059_v50  ;;  %4906 = vmatprep.subr.mxu1 %v8368_v1 }
 0x290   : > { %v4862_v9 = vpop.f32.mrf.mxu0  ;;  %4891 = vmatprep.mubr.msk.f32.mxu1 %vm5506_vm1, %v8368_v1 }
 0x291   : > { %v1312_v52 = vmax.f32 %v1289_v51, 0.0 }
 0x292   : > { %v1293_v53 = vpop.f32.mrf.mxu0 }
 0x293   : > { %v1294_v6 = vadd.f32 %v5884_v43, %v1293_v53  ;;  %4892 = vmatmul.mubr.msk.f32.vlgmr.msra.gmra.mxu1 %vm587_vm3, %v1312_v52  ;;  %v4387_v52 = vld [vmem:[%s5654_s24 + $0x78] sm:$0xff]  ;;  %v4388_v53 = vld [vmem:[%s5654_s24 + $0x80] sm:$0xff] }
 0x294   : > { %4907 = vmatpush3.msk.msra.mxu1 %vm482_vm0, %v5618_v0  ;;  %v4865_v8 = vpop.f32.mrf.mxu0  ;;  %4894 = vmatprep.mubr.msk.f32.mxu1 %vm5506_vm1, %v8368_v1 }
 0x295   : > { %v1313_v10 = vmax.f32 %v1294_v6, 0.0  ;;  %1794 = vmatprep.subr.mxu1 %v5716_v15  ;;  %v4389_v6 = vld [vmem:[%s5654_s24 + $0x88] sm:$0xff] }
 0x296   : > { %v1298_v11 = vpop.f32.mrf.mxu0 }
 0x297   : > { %v1299_v3 = vadd.f32 %v5884_v43, %v1298_v11  ;;  %4895 = vmatmul.mubr.msk.f32.gmra.mxu1 %vm587_vm3, %v1313_v10 }
 0x298   : > { %v4868_v12 = vpop.f32.mrf.mxu0  ;;  %4897 = vmatprep.mubr.msk.f32.mxu1 %vm5506_vm1, %v8368_v1 }
 0x299   : > { %v1314_v4 = vmax.f32 %v1299_v3, 0.0  ;;  %v810_v12 = vld [vmem:[%s8359_s1 + $0x30] sm:$0xff] }
 0x29a   : > { %v1303_v49 = vpop.f32.mrf.mxu0 }
 0x29b   : > { %v1304_v0 = vadd.f32 %v5884_v43, %v1303_v49  ;;  %4898 = vmatmul.mubr.msk.f32.gmra.mxu1 %vm587_vm3, %v1314_v4  ;;  %v4357_v49 = vld [vmem:[%s8359_s1 + $0x80] sm:$0xff] }
 0x29c   : > { %v4871_v5 = vpop.f32.mrf.mxu0  ;;  %4900 = vmatprep.mubr.msk.f32.mxu1 %vm5506_vm1, %v8368_v1 }
 0x29d   : > { %v1315_v15 = vmax.f32 %v1304_v0, 0.0  ;;  %v6565_v0 = vld [vmem:[%s8364_s6 + $0x28] sm:$0xff] }
 0x29e   : > { %v1308_v50 = vpop.f32.mrf.mxu0  ;;  %8445 = vst [vmem:[#allocation18_spill] sm:$0xff] %v6565_v0 }
 0x29f   : > { %v1309_v7 = vadd.f32 %v5884_v43, %v1308_v50  ;;  %4901 = vmatmul.mubr.msk.f32.gmra.mxu1 %vm587_vm3, %v1315_v15 }
 0x2a0   : > { %v4874_v51 = vpop.f32.mrf.mxu0  ;;  %4903 = vmatprep.mubr.msk.f32.mxu1 %vm5506_vm1, %v8368_v1 }
 0x2a1   : > { %v1316_v9 = vmax.f32 %v1309_v7, 0.0  ;;  %v812_v51 = vld [vmem:[%s8359_s1 + $0x40] sm:$0xff] }
 0x2a3   : > { %4904 = vmatmul.mubr.msk.f32.gmra.mxu1 %vm587_vm3, %v1316_v9 }
 0x2a4   : > { %4908 = vmatprep.mubr.msk.f32.mxu1 %vm5506_vm1, %v8368_v1 }
 0x2a7   : > { %4909 = vmatmul.mubr.msk.f32.vlgmr.msra.gmra.mxu1 %vm466_vm2, %v4387_v52  ;;  %v4359_v52 = vld [vmem:[%s8359_s1 + $0x90] sm:$0xff] }
 0x2a8   : > { %4911 = vmatprep.mubr.msk.f32.mxu1 %vm5506_vm1, %v8368_v1  ;;  %1795 = vmatpush1.msra.mxu1 %v5721_v16  ;;  %v4390_v16 = vld [vmem:[%s5654_s24 + $0x90] sm:$0xff] }
 0x2a9   : > { %1796 = vmatprep.subr.mxu1 %v5726_v17  ;;  %v4391_v17 = vld [vmem:[%s5654_s24 + $0x98] sm:$0xff] }
 0x2aa   : > { %1797 = vmatpush1.msra.mxu1 %v5732_v18  ;;  %v699_v18 = vlaneseq }
 0x2ab   : > { %4912 = vmatmul.mubr.msk.f32.gmra.mxu1 %vm466_vm2, %v4388_v53  ;;  %1798 = vmatprep.subr.mxu1 %v5738_v19  ;;  %v6559_v53 = vld [vmem:[%s8364_s6 + $0x30] sm:$0xff] }
 0x2ac   : > { %4914 = vmatprep.mubr.msk.f32.mxu1 %vm5506_vm1, %v8368_v1  ;;  %1799 = vmatpush1.msra.mxu1 %v5744_v20  ;;  %v6212_v19 = vshrl.u32 %v699_v18, 7  ;;  %8444 = vst [vmem:[#allocation17_spill] sm:$0xff] %v6559_v53 }
 0x2ad   : > { %1800 = vmatprep.subr.mxu1 %v5750_v21  ;;  %v6218_v21 = vld [vmem:[%s8365_s7] sm:$0x3] }
 0x2ae   : > { %1801 = vmatpush1.msra.mxu1 %v5756_v22  ;;  %v701_v20 = vsub.s32 0, %v6212_v19 }
 0x2af   : > { %4915 = vmatmul.mubr.msk.f32.gmra.mxu1 %vm466_vm2, %v4389_v6  ;;  %1802 = vmatprep.subr.mxu1 %v5762_v23 }
 0x2b0   : > { %4917 = vmatprep.mubr.msk.f32.mxu1 %vm5506_vm1, %v8368_v1  ;;  %1803 = vmatpush1.msra.mxu1 %v5768_v24  ;;  %v6221_v22 = vrot.slane %v6218_v21, %v701_v20  ;;  %v804_v24 = vld [vmem:[%s8359_s1] sm:$0xff]  ;;  %v6553_v20 = vld [vmem:[%s8364_s6 + $0x38] sm:$0xff] }
 0x2b1   : > { %1804 = vmatprep.subr.mxu1 %v5774_v25  ;;  %8443 = vst [vmem:[#allocation16_spill] sm:$0xff] %v6553_v20 }
 0x2b2   : > { %1805 = vmatpush1.msra.mxu1 %v5780_v26  ;;  %v776_v23 = vadd.f32 %v6091_v54, %v6221_v22  ;;  %v4351_v26 = vld [vmem:[%s8359_s1 + $0x50] sm:$0xff] }
 0x2b3   : > { %4918 = vmatmul.mubr.msk.f32.gmra.mxu1 %vm466_vm2, %v4390_v16  ;;  %1806 = vmatprep.subr.mxu1 %v5786_v27  ;;  %v4355_v54 = vld [vmem:[%s8359_s1 + $0x70] sm:$0xff] }
 0x2b4   : > { %4920 = vmatprep.mubr.msk.f32.mxu1 %vm5506_vm1, %v8368_v1  ;;  %1807 = vmatpush1.msra.mxu1 %v5792_v28 }
 0x2b5   : > { %1808 = vmatprep.subr.mxu1 %v5798_v29  ;;  %v6234_v29 = vadd.f32 %v804_v24, %v776_v23 }
 0x2b6   : > { %1809 = vmatpush1.msra.mxu1 %v5804_v30  ;;  %v782_v30 = vadd.f32 %v6095_v56, %v6221_v22  ;;  %v6571_v56 = vld [vmem:[%s8364_s6 + $0x20] sm:$0xff] }
 0x2b7   : > { %4921 = vmatmul.mubr.msk.f32.gmra.mxu1 %vm466_vm2, %v4391_v17  ;;  %1810 = vmatprep.subr.mxu1 %v5810_v31  ;;  %8446 = vst [vmem:[#allocation19_spill] sm:$0xff] %v6571_v56 }
 0x2b8   : > { %1811 = vmatpush1.msra.mxu1 %v5816_v32  ;;  %1858 = vmatprep.mubr.f32.mxu1 %v8368_v1  ;;  %v806_v32 = vld [vmem:[%s8359_s1 + $0x10] sm:$0xff] }
 0x2b9   : > { %1812 = vmatprep.subr.mxu1 %v5822_v33 }
 0x2ba   : > { %1813 = vmatpush1.msra.mxu1 %v5828_v34  ;;  %v4353_v34 = vld [vmem:[%s8359_s1 + $0x60] sm:$0xff] }
 0x2bb   : > { %1814 = vmatprep.subr.mxu1 %v5834_v35 }
 0x2bc   : > { %1815 = vmatpush1.msra.mxu1 %v5840_v36 }
 0x2bd   : > { %1816 = vmatprep.subr.mxu1 %v5846_v37 }
 0x2be   : > { %1817 = vmatpush1.msra.mxu1 %v5852_v38  ;;  %v6251_v38 = vadd.f32 %v806_v32, %v782_v30 }
 0x2bf   : > { %1818 = vmatprep.subr.mxu1 %v5858_v39  ;;  %v788_v39 = vadd.f32 %v6099_v58, %v6221_v22  ;;  %v794_v58 = vadd.f32 %v6103_v60, %v6221_v22  ;;  %v800_v60 = vadd.f32 %v6107_v62, %v6221_v22 }
 0x2c0   : > { %1819 = vmatpush1.msra.mxu1 %v5864_v40 }
 0x2c1   : > { %1820 = vmatprep.subr.mxu1 %v5870_v41  ;;  %v808_v41 = vld [vmem:[%s8359_s1 + $0x20] sm:$0xff]  ;;  %v6285_v50 = vadd.f32 %v810_v12, %v794_v58  ;;  %v6302_v17 = vadd.f32 %v812_v51, %v800_v60  ;;  %v6340_v12 = vld [vmem:[%s8362_s4 + $0x18] sm:$0xff] }
 0x2c2   : > { %1821 = vmatpush1.msra.mxu1 %v5876_v42  ;;  %v6268_v11 = vadd.f32 %v808_v41, %v788_v39  ;;  %v6324_v39 = vld [vmem:[%s8362_s4 + $0x28] sm:$0xff] }
 0x2c3   : > { %1822 = vmatprep.subr.mxu1 %v5958_v44 }
 0x2c4   : > { %1823 = vmatpush1.msra.mxu1 %v5964_v45 }
 0x2c5   : > { %1824 = vmatprep.subr.mxu1 %v5971_v46 }
 0x2c6   : > { %1825 = vmatpush1.msra.mxu1 %v5978_v47 }
 0x2c7   : > { %4971 = vmatprep.subr.mxu1 %v8368_v1 }
 0x33f   : > { %v1126_v25 = vpop.f32.mrf.mxu1 }
 0x340   : > { %v1127_v27 = vadd.f32 %v1126_v25, %v6221_v22 }
 0x341   : > { %v6232_v28 = vpop.f32.mrf.mxu1 }
 0x342   : > { %v6238_v31 = vadd.f32 %v4351_v26, %v1127_v27 }
 0x343   : > { %v1132_v33 = vpop.f32.mrf.mxu1 }
 0x344   : > { %v1133_v36 = vadd.f32 %v1132_v33, %v6221_v22 }
 0x345   : > { %v6249_v37 = vpop.f32.mrf.mxu1 }
 0x346   : > { %8436 = vst [vmem:[#allocation9_spill] sm:$0xff] %v6249_v37  ;;  %v6255_v40 = vadd.f32 %v4353_v34, %v1133_v36  ;;  %v6316_v34 = vld [vmem:[%s8362_s4 + $0x30] sm:$0xff] }
 0x347   : > { %v1138_v42 = vpop.f32.mrf.mxu1 }
 0x348   : > { %v1139_v8 = vadd.f32 %v1138_v42, %v6221_v22 }
 0x349   : > { %v6266_v10 = vpop.f32.mrf.mxu1 }
 0x34a   : > { %8437 = vst [vmem:[#allocation10_spill] sm:$0xff] %v6266_v10  ;;  %v6272_v3 = vadd.f32 %v4355_v54, %v1139_v8  ;;  %v6332_v54 = vld [vmem:[%s8362_s4 + $0x20] sm:$0xff] }
 0x34b   : > { %v1144_v4 = vpop.f32.mrf.mxu1 }
 0x34c   : > { %v1145_v5 = vadd.f32 %v1144_v4, %v6221_v22 }
 0x34d   : > { %v6283_v15 = vpop.f32.mrf.mxu1 }
 0x34e   : > { %8438 = vst [vmem:[#allocation11_spill] sm:$0xff] %v6283_v15  ;;  %v6289_v7 = vadd.f32 %v4357_v49, %v1145_v5  ;;  %v6348_v5 = vld [vmem:[%s8362_s4 + $0x10] sm:$0xff] }
 0x34f   : > { %v1150_v9 = vpop.f32.mrf.mxu1 }
 0x350   : > { %v1151_v6 = vadd.f32 %v1150_v9, %v6221_v22 }
 0x351   : > { %v6300_v16 = vpop.f32.mrf.mxu1 }
 0x352   : > { %8439 = vst [vmem:[#allocation12_spill] sm:$0xff] %v6300_v16  ;;  %v6304_v62 = vadd.f32 %v4359_v52, %v1151_v6 }
 0x353   : > { %v1398_v18 = vpop.f32.mrf.mxu1 }
 0x354   : > { %v1399_v23 = vadd.f32 %v5988_v48, %v1398_v18 }
 0x355   : > { %v4893_v24 = vpop.f32.mrf.mxu1 }
 0x356   : > { %v1422_v25 = vmax.f32 %v1399_v23, 0.0 }
 0x357   : > { %v1403_v26 = vpop.f32.mrf.mxu1 }
 0x358   : > { %v1404_v27 = vadd.f32 %v5988_v48, %v1403_v26  ;;  %1492 = vmatmul.mubr.f32.vlgmr.msra.gmra.mxu0 %v1422_v25 }
 0x359   : > { %4924 = vmatpush3.msra.mxu0 %v5627_v2  ;;  %v4896_v30 = vpop.f32.mrf.mxu1  ;;  %1497 = vmatprep.mubr.f32.mxu0 %v8368_v1 }
 0x35a   : > { %v1423_v32 = vmax.f32 %v1404_v27, 0.0  ;;  %4925 = vmatprep.subr.mxu0 %v8368_v1  ;;  %v6375_v27 = vld [vmem:[%s8364_s6 + $0xf8] sm:$0xff] }
 0x35b   : > { %v1408_v33 = vpop.f32.mrf.mxu1  ;;  %4926 = vmatpush3.msra.mxu0 %v6316_v34 }
 0x35c   : > { %v1409_v36 = vadd.f32 %v5988_v48, %v1408_v33  ;;  %1498 = vmatmul.mubr.f32.gmra.mxu0 %v1423_v32  ;;  %4927 = vmatprep.subr.mxu0 %v8368_v1 }
 0x35d   : > { %v4899_v2 = vpop.f32.mrf.mxu1  ;;  %4928 = vmatpush3.msra.mxu0 %v6324_v39  ;;  %1503 = vmatprep.mubr.f32.mxu0 %v8368_v1 }
 0x35e   : > { %v1424_v41 = vmax.f32 %v1409_v36, 0.0  ;;  %4929 = vmatprep.subr.mxu0 %v8368_v1 }
 0x35f   : > { %v1413_v42 = vpop.f32.mrf.mxu1  ;;  %4930 = vmatpush3.msra.mxu0 %v6332_v54 }
 0x360   : > { %v1414_v8 = vadd.f32 %v5988_v48, %v1413_v42  ;;  %1504 = vmatmul.mubr.f32.gmra.mxu0 %v1424_v41  ;;  %4931 = vmatprep.subr.mxu0 %v8368_v1 }
 0x361   : > { %v4902_v58 = vpop.f32.mrf.mxu1  ;;  %4932 = vmatpush3.msra.mxu0 %v6340_v12  ;;  %1509 = vmatprep.mubr.f32.mxu0 %v8368_v1 }
 0x362   : > { %v1425_v4 = vmax.f32 %v1414_v8, 0.0  ;;  %4933 = vmatprep.subr.mxu0 %v8368_v1 }
 0x363   : > { %v1418_v49 = vpop.f32.mrf.mxu1  ;;  %4934 = vmatpush3.msra.mxu0 %v6348_v5 }
 0x364   : > { %v1419_v60 = vadd.f32 %v5988_v48, %v1418_v49  ;;  %1510 = vmatmul.mubr.f32.gmra.mxu0 %v1425_v4  ;;  %4935 = vmatprep.subr.mxu0 %v8368_v1 }
 0x365   : > { %v4905_v51 = vpop.f32.mrf.mxu1  ;;  %1515 = vmatprep.mubr.f32.mxu0 %v8368_v1  ;;  %4936 = vmatpush3.msra.mxu0 %v5702_v13  ;;  %v6366_v13 = vld [vmem:[%s8360_s2] sm:$0x7f] }
 0x366   : > { %v1426_v9 = vmax.f32 %v1419_v60, 0.0  ;;  %4937 = vmatprep.subr.mxu0 %v8368_v1  ;;  %v4413_v51 = vld [vmem:[%s5654_s24 + $0xa0] sm:$0xff] }
 0x367   : > { %v1655_v52 = vpop.f32.mrf.mxu1  ;;  %4938 = vmatpush3.msra.mxu0 %v5709_v14 }
 0x368   : > { %v1656_v6 = vadd.f32 %v5884_v43, %v1655_v52  ;;  %1516 = vmatmul.mubr.f32.gmra.mxu0 %v1426_v9  ;;  %4954 = vmatprep.subr.mxu0 %v8368_v1  ;;  %v6401_v9 = vld [vmem:[%s8364_s6 + $0xf0] sm:$0xff]  ;;  %v6407_v52 = vld [vmem:[%s8364_s6 + $0xe8] sm:$0xff] }
 0x369   : > { %v4910_v18 = vpop.f32.mrf.mxu1  ;;  %4939 = vmatprep.mubr.msk.f32.mxu0 %vm5506_vm1, %v8368_v1 }
 0x36a   : > { %v1679_v23 = vmax.f32 %v1656_v6, 0.0  ;;  %v6413_v6 = vld [vmem:[%s8364_s6 + $0xe0] sm:$0xff]  ;;  %v6420_v18 = vld [vmem:[%s8364_s6 + $0xd8] sm:$0xff] }
 0x36b   : > { %v1660_v24 = vpop.f32.mrf.mxu1 }
 0x36c   : > { %v1661_v25 = vadd.f32 %v5884_v43, %v1660_v24  ;;  %4940 = vmatmul.mubr.msk.f32.vlgmr.msra.gmra.mxu0 %vm587_vm3, %v1679_v23  ;;  %v4415_v23 = vld [vmem:[%s5654_s24 + $0xb0] sm:$0xff] }
 0x36d   : > { %4955 = vmatpush3.msk.msra.mxu0 %vm482_vm0, %v6366_v13  ;;  %v4913_v14 = vpop.f32.mrf.mxu1  ;;  %4942 = vmatprep.mubr.msk.f32.mxu0 %vm5506_vm1, %v8368_v1  ;;  %v6429_v24 = vld [vmem:[%s8364_s6 + $0xd0] sm:$0xff] }
 0x36e   : > { %v1680_v26 = vmax.f32 %v1661_v25, 0.0  ;;  %2161 = vmatprep.subr.mxu0 %v6375_v27  ;;  %v6435_v25 = vld [vmem:[%s8364_s6 + $0xc8] sm:$0xff]  ;;  %v6441_v14 = vld [vmem:[%s8364_s6 + $0xc0] sm:$0xff] }
 0x36f   : > { %v1665_v30 = vpop.f32.mrf.mxu1 }
 0x370   : > { %v1666_v32 = vadd.f32 %v5884_v43, %v1665_v30  ;;  %4943 = vmatmul.mubr.msk.f32.gmra.mxu0 %vm587_vm3, %v1680_v26  ;;  %v6448_v26 = vld [vmem:[%s8364_s6 + $0xb8] sm:$0xff] }
 0x371   : > { %v4916_v33 = vpop.f32.mrf.mxu1  ;;  %4945 = vmatprep.mubr.msk.f32.mxu0 %vm5506_vm1, %v8368_v1  ;;  %v4416_v30 = vld [vmem:[%s5654_s24 + $0xb8] sm:$0xff] }
 0x372   : > { %v1681_v36 = vmax.f32 %v1666_v32, 0.0  ;;  %v6457_v32 = vld [vmem:[%s8364_s6 + $0xb0] sm:$0xff]  ;;  %v6463_v33 = vld [vmem:[%s8364_s6 + $0xa8] sm:$0xff] }
 0x373   : > { %v1670_v2 = vpop.f32.mrf.mxu1 }
 0x374   : > { %v1671_v41 = vadd.f32 %v5884_v43, %v1670_v2  ;;  %4946 = vmatmul.mubr.msk.f32.gmra.mxu0 %vm587_vm3, %v1681_v36  ;;  %v6469_v36 = vld [vmem:[%s8364_s6 + $0xa0] sm:$0xff]  ;;  %v6476_v2 = vld [vmem:[%s8364_s6 + $0x98] sm:$0xff] }
 0x375   : > { %v4919_v42 = vpop.f32.mrf.mxu1  ;;  %4948 = vmatprep.mubr.msk.f32.mxu0 %vm5506_vm1, %v8368_v1 }
 0x376   : > { %v1682_v8 = vmax.f32 %v1671_v41, 0.0  ;;  %v4417_v41 = vld [vmem:[%s5654_s24 + $0xc0] sm:$0xff]  ;;  %v6485_v42 = vld [vmem:[%s8364_s6 + $0x90] sm:$0xff] }
 0x377   : > { %v1675_v58 = vpop.f32.mrf.mxu1 }
 0x378   : > { %v1676_v4 = vadd.f32 %v5884_v43, %v1675_v58  ;;  %4949 = vmatmul.mubr.msk.f32.gmra.mxu0 %vm587_vm3, %v1682_v8  ;;  %v4414_v43 = vld [vmem:[%s5654_s24 + $0xa8] sm:$0xff]  ;;  %v6497_v58 = vld [vmem:[%s8364_s6 + $0x80] sm:$0xff] }
 0x379   : > { %v4922_v49 = vpop.f32.mrf.mxu1  ;;  %4951 = vmatprep.mubr.msk.f32.mxu0 %vm5506_vm1, %v8368_v1  ;;  %v6491_v8 = vld [vmem:[%s8364_s6 + $0x88] sm:$0xff] }
 0x37a   : > { %v1683_v60 = vmax.f32 %v1676_v4, 0.0  ;;  %v6504_v4 = vld [vmem:[%s8364_s6 + $0x78] sm:$0xff]  ;;  %v6510_v49 = vld [vmem:[%s8364_s6 + $0x70] sm:$0xff] }
 0x37c   : > { %4952 = vmatmul.mubr.msk.f32.gmra.mxu0 %vm587_vm3, %v1683_v60  ;;  %v6517_v60 = vld [vmem:[%s8364_s6 + $0x68] sm:$0xff] }
 0x37d   : > { %4956 = vmatprep.mubr.msk.f32.mxu0 %vm5506_vm1, %v8368_v1 }
 0x380   : > { %4957 = vmatmul.mubr.msk.f32.vlgmr.msra.gmra.mxu0 %vm466_vm2, %v4413_v51  ;;  %v6523_v51 = vld [vmem:[%s8364_s6 + $0x60] sm:$0xff] }
 0x381   : > { %4959 = vmatprep.mubr.msk.f32.mxu0 %vm5506_vm1, %v8368_v1  ;;  %2162 = vmatpush1.msra.mxu0 %v6401_v9 }
 0x382   : > { %2163 = vmatprep.subr.mxu0 %v6407_v52 }
 0x383   : > { %2164 = vmatpush1.msra.mxu0 %v6413_v6 }
 0x384   : > { %4960 = vmatmul.mubr.msk.f32.gmra.mxu0 %vm466_vm2, %v4414_v43  ;;  %2165 = vmatprep.subr.mxu0 %v6420_v18  ;;  %v6529_v43 = vld [vmem:[%s8364_s6 + $0x58] sm:$0xff] }
 0x385   : > { %4962 = vmatprep.mubr.msk.f32.mxu0 %vm5506_vm1, %v8368_v1  ;;  %2166 = vmatpush1.msra.mxu0 %v6429_v24 }
 0x386   : > { %2167 = vmatprep.subr.mxu0 %v6435_v25 }
 0x387   : > { %2168 = vmatpush1.msra.mxu0 %v6441_v14 }
 0x388   : > { %4963 = vmatmul.mubr.msk.f32.gmra.mxu0 %vm466_vm2, %v4415_v23  ;;  %2169 = vmatprep.subr.mxu0 %v6448_v26  ;;  %v6535_v23 = vld [vmem:[%s8364_s6 + $0x50] sm:$0xff] }
 0x389   : > { %4965 = vmatprep.mubr.msk.f32.mxu0 %vm5506_vm1, %v8368_v1  ;;  %2170 = vmatpush1.msra.mxu0 %v6457_v32  ;;  %8440 = vst [vmem:[#allocation13_spill] sm:$0xff] %v6535_v23 }
 0x38a   : > { %2171 = vmatprep.subr.mxu0 %v6463_v33 }
 0x38b   : > { %2172 = vmatpush1.msra.mxu0 %v6469_v36 }
 0x38c   : > { %4966 = vmatmul.mubr.msk.f32.gmra.mxu0 %vm466_vm2, %v4416_v30  ;;  %2173 = vmatprep.subr.mxu0 %v6476_v2  ;;  %v6541_v30 = vld [vmem:[%s8364_s6 + $0x48] sm:$0xff] }
 0x38d   : > { %4968 = vmatprep.mubr.msk.f32.mxu0 %vm5506_vm1, %v8368_v1  ;;  %2174 = vmatpush1.msra.mxu0 %v6485_v42  ;;  %8441 = vst [vmem:[#allocation14_spill] sm:$0xff] %v6541_v30 }
 0x38e   : > { %2175 = vmatprep.subr.mxu0 %v6491_v8 }
 0x38f   : > { %2176 = vmatpush1.msra.mxu0 %v6497_v58 }
 0x390   : > { %4969 = vmatmul.mubr.msk.f32.gmra.mxu0 %vm466_vm2, %v4417_v41  ;;  %2177 = vmatprep.subr.mxu0 %v6504_v4  ;;  %v6547_v41 = vld [vmem:[%s8364_s6 + $0x40] sm:$0xff] }
 0x391   : > { %2178 = vmatpush1.msra.mxu0 %v6510_v49  ;;  %2225 = vmatprep.mubr.f32.mxu0 %v8368_v1  ;;  %8442 = vst [vmem:[#allocation15_spill] sm:$0xff] %v6547_v41 }
 0x392   : > { %2179 = vmatprep.subr.mxu0 %v6517_v60 }
 0x393   : > { %2180 = vmatpush1.msra.mxu0 %v6523_v51 }
 0x394   : > { %2181 = vmatprep.subr.mxu0 %v6529_v43 }
 0x395   : > { %2182 = vmatpush1.msra.mxu0 %v6535_v23 }
 0x396   : > { %2183 = vmatprep.subr.mxu0 %v6541_v30 }
 0x397   : > { %2184 = vmatpush1.msra.mxu0 %v6547_v41 }
 0x398   : > { %2185 = vmatprep.subr.mxu0 %v6553_v20 }
 0x399   : > { %2186 = vmatpush1.msra.mxu0 %v6559_v53 }
 0x39a   : > { %2187 = vmatprep.subr.mxu0 %v6565_v0 }
 0x39b   : > { %2188 = vmatpush1.msra.mxu0 %v6571_v56 }
 0x39c   : > { %2189 = vmatprep.subr.mxu0 %v5958_v44  ;;  %v4379_v44 = vld [vmem:[%s8359_s1 + $0xb0] sm:$0xff] }
 0x39d   : > { %2190 = vmatpush1.msra.mxu0 %v5964_v45  ;;  %v8447_v45 = vmax.f32 %v6234_v29, %v6238_v31 }
 0x39e   : > { %2191 = vmatprep.subr.mxu0 %v5971_v46 }
 0x39f   : > { %2192 = vmatpush1.msra.mxu0 %v5978_v47 }
 0x3a0   : > { %5019 = vmatprep.subr.mxu0 %v8368_v1 }
 0x418   : > { %v1493_v35 = vpop.f32.mrf.mxu0 }
 0x419   : > { %v1494_v16 = vadd.f32 %v1493_v35, %v6221_v22  ;;  %v8449_v35 = vmax.f32 %v6251_v38, %v6255_v40 }
 0x41a   : > { %v6583_v61 = vpop.f32.mrf.mxu0 }
 0x41b   : > { %v1533_v15 = vadd.f32 %v4377_v63, %v1494_v16  ;;  %v4381_v63 = vld [vmem:[%s8359_s1 + $0xc0] sm:$0xff] }
 0x41c   : > { %v1499_v59 = vpop.f32.mrf.mxu0 }
 0x41d   : > { %v6591_v46 = vmax.f32 %v8447_v45, %v1533_v15  ;;  %v1500_v47 = vadd.f32 %v1499_v59, %v6221_v22  ;;  %v4383_v59 = vld [vmem:[%s8359_s1 + $0xd0] sm:$0xff] }
 0x41e   : > { %v6594_v1 = vpop.f32.mrf.mxu0 }
 0x41f   : > { %8448 = vst [vmem:[#allocation20_spill] sm:$0xff] %v6591_v46  ;;  %v1535_v10 = vadd.f32 %v4379_v44, %v1500_v47  ;;  %v8451_v44 = vmax.f32 %v6268_v11, %v6272_v3 }
 0x420   : > { %v1505_v57 = vpop.f32.mrf.mxu0 }
 0x421   : > { %v6602_v16 = vmax.f32 %v8449_v35, %v1535_v10  ;;  %v1506_v37 = vadd.f32 %v1505_v57, %v6221_v22  ;;  %v4385_v57 = vld [vmem:[%s8359_s1 + $0xe0] sm:$0xff] }
 0x422   : > { %v6605_v29 = vpop.f32.mrf.mxu0 }
 0x423   : > { %8450 = vst [vmem:[#allocation21_spill] sm:$0xff] %v6602_v16  ;;  %v1537_v31 = vadd.f32 %v4381_v63, %v1506_v37  ;;  %v8453_v37 = vmax.f32 %v6285_v50, %v6289_v7  ;;  %v6639_v7 = vld [vmem:[%s8362_s4 + $0x38] sm:$0xff] }
 0x424   : > { %v1511_v15 = vpop.f32.mrf.mxu0 }
 0x425   : > { %v6613_v45 = vmax.f32 %v8451_v44, %v1537_v31  ;;  %v1512_v47 = vadd.f32 %v1511_v15, %v6221_v22  ;;  %v8454_v15 = vmax.f32 %v6302_v17, %v6304_v62 }
 0x426   : > { %v6616_v38 = vpop.f32.mrf.mxu0 }
 0x427   : > { %8452 = vst [vmem:[#allocation22_spill] sm:$0xff] %v6613_v45  ;;  %v1539_v40 = vadd.f32 %v4383_v59, %v1512_v47 }
 0x428   : > { %v1517_v10 = vpop.f32.mrf.mxu0 }
 0x429   : > { %v6624_v63 = vmax.f32 %v8453_v37, %v1539_v40  ;;  %v1518_v35 = vadd.f32 %v1517_v10, %v6221_v22  ;;  %v8455_v10 = vmov 0.0  }
 0x42a   : > { %v6627_v11 = vpop.f32.mrf.mxu0 }
 0x42b   : > { %v1541_v3 = vadd.f32 %v4385_v57, %v1518_v35 }
 0x42c   : > { %v1765_v31 = vpop.f32.mrf.mxu0 }
 0x42d   : > { %v6632_v59 = vmax.f32 %v8454_v15, %v1541_v3  ;;  %v1766_v44 = vadd.f32 %v5988_v48, %v1765_v31 }
 0x42e   : > { %v4941_v47 = vpop.f32.mrf.mxu0 }
 0x42f   : > { %v1789_v45 = vmax.f32 %v1766_v44, 0.0 }
 0x430   : > { %v1770_v16 = vpop.f32.mrf.mxu0 }
 0x431   : > { %v1771_v50 = vadd.f32 %v5988_v48, %v1770_v16  ;;  %1859 = vmatmul.mubr.f32.vlgmr.msra.gmra.mxu1 %v1789_v45 }
 0x432   : > { %4972 = vmatpush3.msra.mxu1 %v6639_v7  ;;  %v4944_v40 = vpop.f32.mrf.mxu0  ;;  %1864 = vmatprep.mubr.f32.mxu1 %v8455_v10 }
 0x433   : > { %v1790_v17 = vmax.f32 %v1771_v50, 0.0  ;;  %4973 = vmatprep.subr.mxu1 %v8455_v10  ;;  %v6663_v50 = vld [vmem:[%s8362_s4 + $0x8] sm:$0xff] }
 0x434   : > { %v1775_v62 = vpop.f32.mrf.mxu0  ;;  %4974 = vmatpush3.msra.mxu1 %v6316_v34 }
 0x435   : > { %v1776_v57 = vadd.f32 %v5988_v48, %v1775_v62  ;;  %1865 = vmatmul.mubr.f32.gmra.mxu1 %v1790_v17  ;;  %4975 = vmatprep.subr.mxu1 %v8455_v10  ;;  %v6676_v62 = vld [vmem:[%s8361_s3] ss:$0 sm:$0xff] }
 0x436   : > { %v4947_v16 = vpop.f32.mrf.mxu0  ;;  %4976 = vmatpush3.msra.mxu1 %v6324_v39  ;;  %1870 = vmatprep.mubr.f32.mxu1 %v8455_v10 }
 0x437   : > { %v1791_v45 = vmax.f32 %v1776_v57, 0.0  ;;  %4977 = vmatprep.subr.mxu1 %v8455_v10 }
 0x438   : > { %v1780_v37 = vpop.f32.mrf.mxu0  ;;  %4978 = vmatpush3.msra.mxu1 %v6332_v54 }
 0x439   : > { %v1781_v35 = vadd.f32 %v5988_v48, %v1780_v37  ;;  %1871 = vmatmul.mubr.f32.gmra.mxu1 %v1791_v45  ;;  %4979 = vmatprep.subr.mxu1 %v8455_v10 }
 0x43a   : > { %v4950_v3 = vpop.f32.mrf.mxu0  ;;  %4980 = vmatpush3.msra.mxu1 %v6340_v12  ;;  %1876 = vmatprep.mubr.f32.mxu1 %v8455_v10 }
 0x43b   : > { %v1792_v31 = vmax.f32 %v1781_v35, 0.0  ;;  %4981 = vmatprep.subr.mxu1 %v8455_v10 }
 0x43c   : > { %v1785_v15 = vpop.f32.mrf.mxu0  ;;  %4982 = vmatpush3.msra.mxu1 %v6348_v5 }
 0x43d   : > { %v1786_v44 = vadd.f32 %v5988_v48, %v1785_v15  ;;  %1877 = vmatmul.mubr.f32.gmra.mxu1 %v1792_v31  ;;  %4983 = vmatprep.subr.mxu1 %v8455_v10  ;;  %v6670_v48 = vld [vmem:[%s8362_s4] sm:$0xff] }
 0x43e   : > { %v4953_v47 = vpop.f32.mrf.mxu0  ;;  %1882 = vmatprep.mubr.f32.mxu1 %v8455_v10  ;;  %4984 = vmatpush3.msra.mxu1 %v6663_v50 }
 0x43f   : > { %v1793_v40 = vmax.f32 %v1786_v44, 0.0  ;;  %4985 = vmatprep.subr.mxu1 %v8455_v10 }
 0x440   : > { %v2022_v17 = vpop.f32.mrf.mxu0  ;;  %4986 = vmatpush3.msra.mxu1 %v6670_v48 }
 0x441   : > { %v2023_v57 = vadd.f32 %v6676_v62, %v2022_v17  ;;  %1883 = vmatmul.mubr.f32.gmra.mxu1 %v1793_v40  ;;  %5002 = vmatprep.subr.mxu1 %v8455_v10 }
 0x442   : > { %v4958_v16 = vpop.f32.mrf.mxu0  ;;  %4987 = vmatprep.mubr.msk.f32.mxu1 %vm5506_vm1, %v8455_v10 }
 0x443   : > { %v2046_v45 = vmax.f32 %v2023_v57, 0.0 }
 0x444   : > { %v2027_v37 = vpop.f32.mrf.mxu0 }
 0x445   : > { %v2028_v35 = vadd.f32 %v6676_v62, %v2027_v37  ;;  %4988 = vmatmul.mubr.msk.f32.vlgmr.msra.gmra.mxu1 %vm587_vm3, %v2046_v45 }
 0x446   : > { %5003 = vmatpush3.msk.msra.mxu1 %vm482_vm0, %v6366_v13  ;;  %v4961_v3 = vpop.f32.mrf.mxu0  ;;  %4990 = vmatprep.mubr.msk.f32.mxu1 %vm5506_vm1, %v8455_v10 }
 0x447   : > { %v2047_v31 = vmax.f32 %v2028_v35, 0.0  ;;  %2528 = vmatprep.subr.mxu1 %v6375_v27 }
 0x448   : > { %v2032_v15 = vpop.f32.mrf.mxu0 }
 0x449   : > { %v2033_v44 = vadd.f32 %v6676_v62, %v2032_v15  ;;  %4991 = vmatmul.mubr.msk.f32.gmra.mxu1 %vm587_vm3, %v2047_v31  ;;  %v4439_v15 = vld [vmem:[%s5654_s24 + $0xc8] sm:$0xff] }
 0x44a   : > { %v4964_v47 = vpop.f32.mrf.mxu0  ;;  %4993 = vmatprep.mubr.msk.f32.mxu1 %vm5506_vm1, %v8455_v10 }
 0x44b   : > { %v2048_v40 = vmax.f32 %v2033_v44, 0.0  ;;  %v4440_v44 = vld [vmem:[%s5654_s24 + $0xd0] sm:$0xff]  ;;  %v4441_v47 = vld [vmem:[%s5654_s24 + $0xd8] sm:$0xff] }
 0x44c   : > { %v2037_v17 = vpop.f32.mrf.mxu0 }
 0x44d   : > { %v2038_v57 = vadd.f32 %v6676_v62, %v2037_v17  ;;  %4994 = vmatmul.mubr.msk.f32.gmra.mxu1 %vm587_vm3, %v2048_v40  ;;  %v4442_v40 = vld [vmem:[%s5654_s24 + $0xe0] sm:$0xff]  ;;  %v4443_v17 = vld [vmem:[%s5654_s24 + $0xe8] sm:$0xff] }
 0x44e   : > { %v4967_v16 = vpop.f32.mrf.mxu0  ;;  %4996 = vmatprep.mubr.msk.f32.mxu1 %vm5506_vm1, %v8455_v10 }
 0x44f   : > { %v2049_v45 = vmax.f32 %v2038_v57, 0.0  ;;  %v6753_v57 = vld [vmem:[%s8364_s6 + $0x18] sm:$0xff]  ;;  %v6759_v16 = vld [vmem:[%s8364_s6 + $0x10] sm:$0xff] }
 0x450   : > { %v2042_v37 = vpop.f32.mrf.mxu0  ;;  %8456 = vst [vmem:[#allocation23_spill] sm:$0xff] %v6753_v57  ;;  %8457 = vst [vmem:[#allocation24_spill] sm:$0xff] %v6759_v16 }
 0x451   : > { %v2043_v35 = vadd.f32 %v6676_v62, %v2042_v37  ;;  %4997 = vmatmul.mubr.msk.f32.gmra.mxu1 %vm587_vm3, %v2049_v45  ;;  %v6765_v45 = vld [vmem:[%s8364_s6 + $0x8] sm:$0xff]  ;;  %v6771_v37 = vld [vmem:[%s8364_s6] sm:$0xff] }
 0x452   : > { %v4970_v3 = vpop.f32.mrf.mxu0  ;;  %4999 = vmatprep.mubr.msk.f32.mxu1 %vm5506_vm1, %v8455_v10  ;;  %8458 = vst [vmem:[#allocation25_spill] sm:$0xff] %v6765_v45  ;;  %8459 = vst [vmem:[#allocation26_spill] sm:$0xff] %v6771_v37 }
 0x453   : > { %v2050_v31 = vmax.f32 %v2043_v35, 0.0  ;;  %v705_v35 = vsub.s32 1, %v6212_v19  ;;  %v805_v19 = vld [vmem:[%s8359_s1 + $0x8] sm:$0xff] }
 0x455   : > { %5000 = vmatmul.mubr.msk.f32.gmra.mxu1 %vm587_vm3, %v2050_v31  ;;  %v6777_v3 = vrot.slane %v6218_v21, %v705_v35  ;;  %v4378_v21 = vld [vmem:[%s8359_s1 + $0xa8] sm:$0xff] }
 0x456   : > { %5004 = vmatprep.mubr.msk.f32.mxu1 %vm5506_vm1, %v8455_v10 }
 0x457   : > { %v1129_v31 = vadd.f32 %v6232_v28, %v6777_v3  ;;  %v8460_v28 = vld [vmem:[#allocation9_spill] sm:$0xff] }
 0x459   : > { %5005 = vmatmul.mubr.msk.f32.vlgmr.msra.gmra.mxu1 %vm466_vm2, %v4439_v15  ;;  %v4352_v15 = vld [vmem:[%s8359_s1 + $0x58] sm:$0xff] }
 0x45a   : > { %5007 = vmatprep.mubr.msk.f32.mxu1 %vm5506_vm1, %v8455_v10  ;;  %2529 = vmatpush1.msra.mxu1 %v6401_v9 }
 0x45b   : > { %2530 = vmatprep.subr.mxu1 %v6407_v52 }
 0x45c   : > { %2531 = vmatpush1.msra.mxu1 %v6413_v6 }
 0x45d   : > { %5008 = vmatmul.mubr.msk.f32.gmra.mxu1 %vm466_vm2, %v4440_v44  ;;  %2532 = vmatprep.subr.mxu1 %v6420_v18  ;;  %v778_v44 = vadd.f32 %v6093_v55, %v6777_v3  ;;  %v4354_v55 = vld [vmem:[%s8359_s1 + $0x68] sm:$0xff] }
 0x45e   : > { %5010 = vmatprep.mubr.msk.f32.mxu1 %vm5506_vm1, %v8455_v10  ;;  %2533 = vmatpush1.msra.mxu1 %v6429_v24 }
 0x45f   : > { %2534 = vmatprep.subr.mxu1 %v6435_v25  ;;  %v815_v35 = vadd.f32 %v805_v19, %v778_v44  ;;  %v8462_v19 = vld [vmem:[#allocation10_spill] sm:$0xff] }
 0x460   : > { %2535 = vmatpush1.msra.mxu1 %v6441_v14 }
 0x461   : > { %5011 = vmatmul.mubr.msk.f32.gmra.mxu1 %vm466_vm2, %v4441_v47  ;;  %2536 = vmatprep.subr.mxu1 %v6448_v26  ;;  %v1496_v47 = vadd.f32 %v6583_v61, %v6777_v3 }
 0x462   : > { %5013 = vmatprep.mubr.msk.f32.mxu1 %vm5506_vm1, %v8455_v10  ;;  %2537 = vmatpush1.msra.mxu1 %v6457_v32 }
 0x463   : > { %2538 = vmatprep.subr.mxu1 %v6463_v33  ;;  %v1534_v61 = vadd.f32 %v4378_v21, %v1496_v47  ;;  %v4380_v47 = vld [vmem:[%s8359_s1 + $0xb8] sm:$0xff] }
 0x464   : > { %2539 = vmatpush1.msra.mxu1 %v6469_v36 }
 0x465   : > { %5014 = vmatmul.mubr.msk.f32.gmra.mxu1 %vm466_vm2, %v4442_v40  ;;  %2540 = vmatprep.subr.mxu1 %v6476_v2  ;;  %v1167_v40 = vadd.f32 %v4352_v15, %v1129_v31  ;;  %v807_v31 = vld [vmem:[%s8359_s1 + $0x18] sm:$0xff]  ;;  %v1502_v15 = vadd.f32 %v6594_v1, %v6777_v3 }
 0x466   : > { %5016 = vmatprep.mubr.msk.f32.mxu1 %vm5506_vm1, %v8455_v10  ;;  %2541 = vmatpush1.msra.mxu1 %v6485_v42  ;;  %v4356_v1 = vld [vmem:[%s8359_s1 + $0x78] sm:$0xff] }
 0x467   : > { %2542 = vmatprep.subr.mxu1 %v6491_v8 }
 0x468   : > { %2543 = vmatpush1.msra.mxu1 %v6497_v58 }
 0x469   : > { %5017 = vmatmul.mubr.msk.f32.gmra.mxu1 %vm466_vm2, %v4443_v17  ;;  %2544 = vmatprep.subr.mxu1 %v6504_v4  ;;  %v1135_v17 = vadd.f32 %v8460_v28, %v6777_v3  ;;  %v1141_v28 = vadd.f32 %v8462_v19, %v6777_v3 }
 0x46a   : > { %2545 = vmatpush1.msra.mxu1 %v6510_v49  ;;  %2592 = vmatprep.mubr.f32.mxu1 %v8455_v10 }
 0x46b   : > { %2546 = vmatprep.subr.mxu1 %v6517_v60 }
 0x46c   : > { %2547 = vmatpush1.msra.mxu1 %v6523_v51 }
 0x46d   : > { %2548 = vmatprep.subr.mxu1 %v6529_v43 }
 0x46e   : > { %2549 = vmatpush1.msra.mxu1 %v6535_v23  ;;  %v4358_v23 = vld [vmem:[%s8359_s1 + $0x88] sm:$0xff] }
 0x46f   : > { %2550 = vmatprep.subr.mxu1 %v6541_v30 }
 0x470   : > { %2551 = vmatpush1.msra.mxu1 %v6547_v41  ;;  %v1508_v41 = vadd.f32 %v6605_v29, %v6777_v3 }
 0x471   : > { %2552 = vmatprep.subr.mxu1 %v6553_v20 }
 0x472   : > { %2553 = vmatpush1.msra.mxu1 %v6559_v53 }
 0x473   : > { %2554 = vmatprep.subr.mxu1 %v6565_v0  ;;  %v1169_v0 = vadd.f32 %v4354_v55, %v1135_v17  ;;  %v4405_v17 = vld [vmem:[%s8359_s1 + $0x100] sm:$0xff]  ;;  %v1536_v55 = vadd.f32 %v4380_v47, %v1502_v15  ;;  %v4406_v15 = vld [vmem:[%s8359_s1 + $0x108] sm:$0xff] }
 0x474   : > { %2555 = vmatpush1.msra.mxu1 %v6571_v56  ;;  %v4404_v56 = vld [vmem:[%s8359_s1 + $0xf8] sm:$0xff] }
 0x475   : > { %2556 = vmatprep.subr.mxu1 %v6753_v57  ;;  %v4403_v57 = vld [vmem:[%s8359_s1 + $0xf0] sm:$0xff] }
 0x476   : > { %2557 = vmatpush1.msra.mxu1 %v6759_v16 }
 0x477   : > { %2558 = vmatprep.subr.mxu1 %v6765_v45 }
 0x478   : > { %2559 = vmatpush1.msra.mxu1 %v6771_v37  ;;  %v8461_v37 = vld [vmem:[#allocation5_spill] sm:$0xff] }
 0x479   : > { %5067 = vmatprep.subr.mxu1 %v8455_v10  ;;  %v784_v45 = vadd.f32 %v8461_v37, %v6777_v3  ;;  %v1187_v37 = vmax.f32 %v815_v35, %v1167_v40  ;;  %v8464_v35 = vld [vmem:[#allocation6_spill] sm:$0xff] }
 0x47a   : > { %v790_v19 = vadd.f32 %v8464_v35, %v6777_v3 }
 0x47b   : > { %v817_v40 = vadd.f32 %v807_v31, %v784_v45  ;;  %v6826_v20 = vmax.f32 %v1187_v37, %v1534_v61  ;;  %v4382_v45 = vld [vmem:[%s8359_s1 + $0xc8] sm:$0xff]  ;;  %v8467_v37 = vld [vmem:[#allocation11_spill] sm:$0xff] }
 0x47c   : > { %v1538_v61 = vadd.f32 %v4382_v45, %v1508_v41  ;;  %v8469_v41 = vld [vmem:[#allocation21_spill] sm:$0xff] }
 0x47d   : > { %8465 = vst [vmem:[#allocation5_spill] sm:$0xff] %v6826_v20  ;;  %v1189_v47 = vmax.f32 %v817_v40, %v1169_v0  ;;  %v4407_v40 = vld [vmem:[%s8359_s1 + $0x110] sm:$0xff] }
 0x4f1   : > { %v1860_v16 = vpop.f32.mrf.mxu1 }
 0x4f2   : > { %v1861_v44 = vadd.f32 %v1860_v16, %v6221_v22 }
 0x4f3   : > { %v1862_v21 = vpop.f32.mrf.mxu1 }
 0x4f4   : > { %v6821_v53 = vadd.f32 %v4403_v57, %v1861_v44  ;;  %v1863_v16 = vadd.f32 %v1862_v21, %v6777_v3  ;;  %v809_v57 = vld [vmem:[%s8359_s1 + $0x28] sm:$0xff]  ;;  %v1171_v44 = vadd.f32 %v4356_v1, %v1141_v28  ;;  %v1147_v21 = vadd.f32 %v8467_v37, %v6777_v3  ;;  %v8468_v1 = vld [vmem:[#allocation7_spill] sm:$0xff] }
 0x4f5   : > { %v1866_v30 = vpop.f32.mrf.mxu1  ;;  %v819_v28 = vadd.f32 %v809_v57, %v790_v19  ;;  %v796_v37 = vadd.f32 %v8468_v1, %v6777_v3  ;;  %v4384_v19 = vld [vmem:[%s8359_s1 + $0xd8] sm:$0xff] }
 0x4f6   : > { %8463 = vst [vmem:[#allocation9_spill] sm:$0xff] %v6821_v53  ;;  %v6841_v31 = vadd.f32 %v4404_v56, %v1863_v16  ;;  %v1867_v29 = vadd.f32 %v1866_v30, %v6221_v22  ;;  %v1514_v53 = vadd.f32 %v6616_v38, %v6777_v3  ;;  %v1173_v1 = vadd.f32 %v4358_v23, %v1147_v21  ;;  %v4360_v23 = vld [vmem:[%s8359_s1 + $0x98] sm:$0xff] }
 0x4f7   : > { %v1868_v35 = vpop.f32.mrf.mxu1 }
 0x4f8   : > { %8466 = vst [vmem:[#allocation10_spill] sm:$0xff] %v6841_v31  ;;  %v6854_v16 = vadd.f32 %v4405_v17, %v1867_v29  ;;  %v1869_v30 = vadd.f32 %v1868_v35, %v6777_v3  ;;  %v811_v17 = vld [vmem:[%s8359_s1 + $0x38] sm:$0xff]  ;;  %v6867_v29 = vmax.f32 %v1189_v47, %v1536_v55  ;;  %v1191_v35 = vmax.f32 %v819_v28, %v1171_v44 }
 0x4f9   : > { %v1872_v0 = vpop.f32.mrf.mxu1  ;;  %v4408_v31 = vld [vmem:[%s8359_s1 + $0x118] sm:$0xff]  ;;  %v1540_v28 = vadd.f32 %v4384_v19, %v1514_v53  ;;  %v4386_v19 = vld [vmem:[%s8359_s1 + $0xe8] sm:$0xff] }
 0x4fa   : > { %v6874_v45 = vadd.f32 %v4406_v15, %v1869_v30  ;;  %v1873_v38 = vadd.f32 %v1872_v0, %v6221_v22  ;;  %v8471_v55 = vld [vmem:[#allocation12_spill] sm:$0xff]  ;;  %v821_v30 = vadd.f32 %v811_v17, %v796_v37  ;;  %v6892_v21 = vmax.f32 %v1191_v35, %v1538_v61 }
 0x4fb   : > { %v1874_v56 = vpop.f32.mrf.mxu1  ;;  %v1153_v47 = vadd.f32 %v8471_v55, %v6777_v3  ;;  %v8473_v0 = vld [vmem:[#allocation8_spill] sm:$0xff]  ;;  %v4409_v55 = vld [vmem:[%s8359_s1 + $0x120] sm:$0xff]  ;;  %v1520_v37 = vadd.f32 %v6627_v11, %v6777_v3 }
 0x4fc   : > { %8470 = vst [vmem:[#allocation6_spill] sm:$0xff] %v6874_v45  ;;  %v6884_v46 = vadd.f32 %v4407_v40, %v1873_v38  ;;  %v1875_v15 = vadd.f32 %v1874_v56, %v6777_v3  ;;  %v802_v44 = vadd.f32 %v8473_v0, %v6777_v3  ;;  %v813_v56 = vld [vmem:[%s8359_s1 + $0x48] sm:$0xff]  ;;  %v1193_v53 = vmax.f32 %v821_v30, %v1173_v1  ;;  %v4411_v30 = vld [vmem:[%s8359_s1 + $0x130] sm:$0xff] }
 0x4fd   : > { %v1878_v57 = vpop.f32.mrf.mxu1  ;;  %v8474_v40 = vld [vmem:[#allocation22_spill] sm:$0xff]  ;;  %v1175_v20 = vadd.f32 %v4360_v23, %v1153_v47  ;;  %v1542_v17 = vadd.f32 %v4386_v19, %v1520_v37 }
 0x4fe   : > { %8472 = vst [vmem:[#allocation11_spill] sm:$0xff] %v6884_v46  ;;  %v6904_v38 = vadd.f32 %v4408_v31, %v1875_v15  ;;  %v1879_v61 = vadd.f32 %v1878_v57, %v6221_v22  ;;  %v4410_v0 = vld [vmem:[%s8359_s1 + $0x128] sm:$0xff]  ;;  %v823_v15 = vadd.f32 %v813_v56, %v802_v44  ;;  %v6918_v57 = vmax.f32 %v1193_v53, %v1540_v28  ;;  %v4412_v44 = vld [vmem:[%s8359_s1 + $0x138] sm:$0xff] }
 0x4ff   : > { %v1880_v35 = vpop.f32.mrf.mxu1 }
 0x500   : > { %v1925_v11 = vmax.f32 %v6892_v21, %v6904_v38  ;;  %v6915_v45 = vadd.f32 %v4409_v55, %v1879_v61  ;;  %v1881_v31 = vadd.f32 %v1880_v35, %v6777_v3  ;;  %v1195_v28 = vmax.f32 %v823_v15, %v1175_v20  ;;  %v4438_v21 = vld [vmem:[%s8359_s1 + $0x188] sm:$0xff] }
 0x501   : > { %v1884_v1 = vpop.f32.mrf.mxu1 }
 0x502   : > { %v1926_v46 = vmax.f32 %v6624_v63, %v6915_v45  ;;  %v6925_v47 = vadd.f32 %v4410_v0, %v1881_v31  ;;  %v1885_v23 = vadd.f32 %v1884_v1, %v6221_v22  ;;  %v6936_v19 = vmax.f32 %v1195_v28, %v1542_v17  ;;  %v6945_v31 = vld [vmem:[%s8363_s5] ss:$0 sm:$0xff] }
 0x503   : > { %v1886_v55 = vpop.f32.mrf.mxu1 }
 0x504   : > { %v1927_v56 = vmax.f32 %v6918_v57, %v6925_v47  ;;  %v6933_v61 = vadd.f32 %v4411_v30, %v1885_v23  ;;  %v1887_v37 = vadd.f32 %v1886_v55, %v6777_v3 }
 0x505   : > { %v2132_v53 = vpop.f32.mrf.mxu1 }
 0x506   : > { %v1928_v35 = vmax.f32 %v6632_v59, %v6933_v61  ;;  %v6940_v0 = vadd.f32 %v4412_v44, %v1887_v37  ;;  %v2133_v20 = vadd.f32 %v6945_v31, %v2132_v53 }
 0x507   : > { %v4989_v15 = vpop.f32.mrf.mxu1 }
 0x508   : > { %v1929_v1 = vmax.f32 %v6936_v19, %v6940_v0  ;;  %v2156_v30 = vmax.f32 %v2133_v20, 0.0  ;;  %v7163_v19 = vld [vmem:[%s8362_s4 + $0x30] sm:$0xff]  ;;  %v7171_v0 = vld [vmem:[%s8362_s4 + $0x28] sm:$0xff] }
 0x509   : > { %v2137_v23 = vpop.f32.mrf.mxu1 }
 0x50a   : > { %v2138_v17 = vadd.f32 %v6945_v31, %v2137_v23  ;;  %2226 = vmatmul.mubr.f32.vlgmr.msra.gmra.mxu0 %v2156_v30 }
 0x50b   : > { %5020 = vmatpush3.msra.mxu0 %v6639_v7  ;;  %v4992_v55 = vpop.f32.mrf.mxu1  ;;  %2231 = vmatprep.mubr.f32.mxu0 %v8455_v10 }
 0x50c   : > { %v2157_v44 = vmax.f32 %v2138_v17, 0.0  ;;  %5021 = vmatprep.subr.mxu0 %v8455_v10 }
 0x50d   : > { %v2142_v28 = vpop.f32.mrf.mxu1  ;;  %5022 = vmatpush3.msra.mxu0 %v6316_v34 }
 0x50e   : > { %v2143_v37 = vadd.f32 %v6945_v31, %v2142_v28  ;;  %2232 = vmatmul.mubr.f32.gmra.mxu0 %v2157_v44  ;;  %5023 = vmatprep.subr.mxu0 %v8455_v10 }
 0x50f   : > { %v4995_v53 = vpop.f32.mrf.mxu1  ;;  %5024 = vmatpush3.msra.mxu0 %v6324_v39  ;;  %2237 = vmatprep.mubr.f32.mxu0 %v8455_v10 }
 0x510   : > { %v2158_v20 = vmax.f32 %v2143_v37, 0.0  ;;  %5025 = vmatprep.subr.mxu0 %v8455_v10 }
 0x511   : > { %v2147_v15 = vpop.f32.mrf.mxu1  ;;  %5026 = vmatpush3.msra.mxu0 %v6332_v54 }
 0x512   : > { %v2148_v30 = vadd.f32 %v6945_v31, %v2147_v15  ;;  %2238 = vmatmul.mubr.f32.gmra.mxu0 %v2158_v20  ;;  %5027 = vmatprep.subr.mxu0 %v8455_v10 }
 0x513   : > { %v4998_v34 = vpop.f32.mrf.mxu1  ;;  %5028 = vmatpush3.msra.mxu0 %v6340_v12  ;;  %2243 = vmatprep.mubr.f32.mxu0 %v8455_v10 }
 0x514   : > { %v2159_v23 = vmax.f32 %v2148_v30, 0.0  ;;  %5029 = vmatprep.subr.mxu0 %v8455_v10 }
 0x515   : > { %v2152_v39 = vpop.f32.mrf.mxu1  ;;  %5030 = vmatpush3.msra.mxu0 %v6348_v5 }
 0x516   : > { %v2153_v17 = vadd.f32 %v6945_v31, %v2152_v39  ;;  %2244 = vmatmul.mubr.f32.gmra.mxu0 %v2159_v23  ;;  %5031 = vmatprep.subr.mxu0 %v8455_v10 }
 0x517   : > { %v5001_v54 = vpop.f32.mrf.mxu1  ;;  %2249 = vmatprep.mubr.f32.mxu0 %v8455_v10  ;;  %5032 = vmatpush3.msra.mxu0 %v6663_v50 }
 0x518   : > { %v2160_v55 = vmax.f32 %v2153_v17, 0.0  ;;  %5033 = vmatprep.subr.mxu0 %v8455_v10 }
 0x519   : > { %v2389_v12 = vpop.f32.mrf.mxu1  ;;  %5034 = vmatpush3.msra.mxu0 %v6670_v48 }
 0x51a   : > { %v2390_v44 = vadd.f32 %v6676_v62, %v2389_v12  ;;  %2250 = vmatmul.mubr.f32.gmra.mxu0 %v2160_v55  ;;  %5050 = vmatprep.subr.mxu0 %v8455_v10 }
 0x51b   : > { %v5006_v5 = vpop.f32.mrf.mxu1  ;;  %5035 = vmatprep.mubr.msk.f32.mxu0 %vm5506_vm1, %v8455_v10 }
 0x51c   : > { %v2413_v28 = vmax.f32 %v2390_v44, 0.0 }
 0x51d   : > { %v2394_v37 = vpop.f32.mrf.mxu1 }
 0x51e   : > { %v2395_v53 = vadd.f32 %v6676_v62, %v2394_v37  ;;  %5036 = vmatmul.mubr.msk.f32.vlgmr.msra.gmra.mxu0 %vm587_vm3, %v2413_v28  ;;  %v7000_v28 = vld [vmem:[%s5654_s24 + $0xf0] sm:$0xff]  ;;  %v7007_v37 = vld [vmem:[%s5654_s24 + $0xf8] sm:$0xff] }
 0x51f   : > { %5051 = vmatpush3.msk.msra.mxu0 %vm482_vm0, %v6366_v13  ;;  %v5009_v20 = vpop.f32.mrf.mxu1  ;;  %5038 = vmatprep.mubr.msk.f32.mxu0 %vm5506_vm1, %v8455_v10 }
 0x520   : > { %v2414_v15 = vmax.f32 %v2395_v53, 0.0  ;;  %2895 = vmatprep.subr.mxu0 %v6375_v27  ;;  %v7018_v53 = vld [vmem:[%s5654_s24 + $0x100] sm:$0xff] }
 0x521   : > { %v2399_v30 = vpop.f32.mrf.mxu1  ;;  %8475 = vst [vmem:[#allocation7_spill] sm:$0xff] %v7018_v53 }
 0x522   : > { %v2400_v34 = vadd.f32 %v6676_v62, %v2399_v30  ;;  %5039 = vmatmul.mubr.msk.f32.gmra.mxu0 %vm587_vm3, %v2414_v15  ;;  %v4431_v15 = vld [vmem:[%s8359_s1 + $0x150] sm:$0xff]  ;;  %v8489_v30 = vld [vmem:[#allocation20_spill] sm:$0xff] }
 0x523   : > { %v5012_v23 = vpop.f32.mrf.mxu1  ;;  %5041 = vmatprep.mubr.msk.f32.mxu0 %vm5506_vm1, %v8455_v10 }
 0x524   : > { %v2415_v39 = vmax.f32 %v2400_v34, 0.0  ;;  %v8490_v34 = vld [vmem:[#allocation9_spill] sm:$0xff] }
 0x525   : > { %v2404_v17 = vpop.f32.mrf.mxu1  ;;  %v8491_v23 = vmax.f32 %v8489_v30, %v8490_v34 }
 0x526   : > { %v2405_v13 = vadd.f32 %v6676_v62, %v2404_v17  ;;  %5042 = vmatmul.mubr.msk.f32.gmra.mxu0 %vm587_vm3, %v2415_v39 }
 0x527   : > { %v5015_v54 = vpop.f32.mrf.mxu1  ;;  %5044 = vmatprep.mubr.msk.f32.mxu0 %vm5506_vm1, %v8455_v10 }
 0x528   : > { %v2416_v27 = vmax.f32 %v2405_v13, 0.0 }
 0x529   : > { %v2409_v55 = vpop.f32.mrf.mxu1 }
 0x52a   : > { %v2410_v12 = vadd.f32 %v6676_v62, %v2409_v55  ;;  %5045 = vmatmul.mubr.msk.f32.gmra.mxu0 %vm587_vm3, %v2416_v27  ;;  %v4432_v27 = vld [vmem:[%s8359_s1 + $0x158] sm:$0xff]  ;;  %v8492_v55 = vld [vmem:[#allocation5_spill] sm:$0xff] }
 0x52b   : > { %v5018_v44 = vpop.f32.mrf.mxu1  ;;  %5047 = vmatprep.mubr.msk.f32.mxu0 %vm5506_vm1, %v8455_v10 }
 0x52c   : > { %v2417_v5 = vmax.f32 %v2410_v12, 0.0  ;;  %v8493_v12 = vld [vmem:[#allocation10_spill] sm:$0xff] }
 0x52d   : > { %v8494_v44 = vmax.f32 %v8492_v55, %v8493_v12 }
 0x52e   : > { %5048 = vmatmul.mubr.msk.f32.gmra.mxu0 %vm587_vm3, %v2417_v5 }
 0x52f   : > { %5052 = vmatprep.mubr.msk.f32.mxu0 %vm5506_vm1, %v8455_v10 }
 0x532   : > { %5053 = vmatmul.mubr.msk.f32.vlgmr.msra.gmra.mxu0 %vm466_vm2, %v7000_v28 }
 0x533   : > { %5055 = vmatprep.mubr.msk.f32.mxu0 %vm5506_vm1, %v8455_v10  ;;  %2896 = vmatpush1.msra.mxu0 %v6401_v9  ;;  %v7029_v9 = vld [vmem:[%s5654_s24 + $0x108] sm:$0xff] }
 0x534   : > { %2897 = vmatprep.subr.mxu0 %v6407_v52  ;;  %8476 = vst [vmem:[#allocation21_spill] sm:$0xff] %v7029_v9  ;;  %v7040_v52 = vld [vmem:[%s5654_s24 + $0x110] sm:$0xff] }
 0x535   : > { %2898 = vmatpush1.msra.mxu0 %v6413_v6  ;;  %8477 = vst [vmem:[#allocation12_spill] sm:$0xff] %v7040_v52  ;;  %v8478_v6 = vld [vmem:[#allocation13_spill] sm:$0xff] }
 0x536   : > { %5056 = vmatmul.mubr.msk.f32.gmra.mxu0 %vm466_vm2, %v7007_v37  ;;  %2899 = vmatprep.subr.mxu0 %v6420_v18  ;;  %v8479_v18 = vld [vmem:[#allocation14_spill] sm:$0xff] }
 0x537   : > { %5058 = vmatprep.mubr.msk.f32.mxu0 %vm5506_vm1, %v8455_v10  ;;  %2900 = vmatpush1.msra.mxu0 %v6429_v24  ;;  %v8480_v24 = vld [vmem:[#allocation15_spill] sm:$0xff] }
 0x538   : > { %2901 = vmatprep.subr.mxu0 %v6435_v25  ;;  %v8481_v25 = vld [vmem:[#allocation16_spill] sm:$0xff] }
 0x539   : > { %2902 = vmatpush1.msra.mxu0 %v6441_v14  ;;  %v8482_v14 = vld [vmem:[#allocation17_spill] sm:$0xff] }
 0x53a   : > { %5059 = vmatmul.mubr.msk.f32.gmra.mxu0 %vm466_vm2, %v7018_v53  ;;  %2903 = vmatprep.subr.mxu0 %v6448_v26  ;;  %v8483_v26 = vld [vmem:[#allocation18_spill] sm:$0xff] }
 0x53b   : > { %5061 = vmatprep.mubr.msk.f32.mxu0 %vm5506_vm1, %v8455_v10  ;;  %2904 = vmatpush1.msra.mxu0 %v6457_v32  ;;  %v8484_v32 = vld [vmem:[#allocation19_spill] sm:$0xff] }
 0x53c   : > { %2905 = vmatprep.subr.mxu0 %v6463_v33  ;;  %v8485_v33 = vld [vmem:[#allocation23_spill] sm:$0xff] }
 0x53d   : > { %2906 = vmatpush1.msra.mxu0 %v6469_v36  ;;  %v8486_v36 = vld [vmem:[#allocation24_spill] sm:$0xff] }
 0x53e   : > { %5062 = vmatmul.mubr.msk.f32.gmra.mxu0 %vm466_vm2, %v7029_v9  ;;  %2907 = vmatprep.subr.mxu0 %v6476_v2  ;;  %v8487_v2 = vld [vmem:[#allocation25_spill] sm:$0xff] }
 0x53f   : > { %5064 = vmatprep.mubr.msk.f32.mxu0 %vm5506_vm1, %v8455_v10  ;;  %2908 = vmatpush1.msra.mxu0 %v6485_v42  ;;  %v8488_v42 = vld [vmem:[#allocation26_spill] sm:$0xff] }
 0x540   : > { %2909 = vmatprep.subr.mxu0 %v6491_v8 }
 0x541   : > { %2910 = vmatpush1.msra.mxu0 %v6497_v58  ;;  %v4429_v58 = vld [vmem:[%s8359_s1 + $0x140] sm:$0xff] }
 0x542   : > { %5065 = vmatmul.mubr.msk.f32.gmra.mxu0 %vm466_vm2, %v7040_v52  ;;  %2911 = vmatprep.subr.mxu0 %v6504_v4 }
 0x543   : > { %2912 = vmatpush1.msra.mxu0 %v6510_v49  ;;  %2959 = vmatprep.mubr.f32.mxu0 %v8455_v10 }
 0x544   : > { %2913 = vmatprep.subr.mxu0 %v6517_v60  ;;  %v4430_v60 = vld [vmem:[%s8359_s1 + $0x148] sm:$0xff] }
 0x545   : > { %2914 = vmatpush1.msra.mxu0 %v6523_v51 }
 0x546   : > { %2915 = vmatprep.subr.mxu0 %v6529_v43 }
 0x547   : > { %2916 = vmatpush1.msra.mxu0 %v8478_v6 }
 0x548   : > { %2917 = vmatprep.subr.mxu0 %v8479_v18 }
 0x549   : > { %2918 = vmatpush1.msra.mxu0 %v8480_v24 }
 0x54a   : > { %2919 = vmatprep.subr.mxu0 %v8481_v25  ;;  %v4433_v25 = vld [vmem:[%s8359_s1 + $0x160] sm:$0xff] }
 0x54b   : > { %2920 = vmatpush1.msra.mxu0 %v8482_v14  ;;  %v8495_v14 = vmax.f32 %v8469_v41, %v6854_v16  ;;  %v4435_v16 = vld [vmem:[%s8359_s1 + $0x170] sm:$0xff] }
 0x54c   : > { %2921 = vmatprep.subr.mxu0 %v8483_v26  ;;  %v8498_v41 = vld [vmem:[#allocation11_spill] sm:$0xff] }
 0x54d   : > { %2922 = vmatpush1.msra.mxu0 %v8484_v32  ;;  %v8499_v30 = vmax.f32 %v8474_v40, %v8498_v41  ;;  %v4437_v40 = vld [vmem:[%s8359_s1 + $0x180] sm:$0xff]  ;;  %v7195_v41 = vld [vmem:[%s8362_s4 + $0x10] sm:$0xff] }
 0x54e   : > { %2923 = vmatprep.subr.mxu0 %v8485_v33 }
 0x54f   : > { %2924 = vmatpush1.msra.mxu0 %v8486_v36 }
 0x550   : > { %2925 = vmatprep.subr.mxu0 %v8487_v2 }
 0x551   : > { %2926 = vmatpush1.msra.mxu0 %v8488_v42 }
 0x552   : > { %5115 = vmatprep.subr.mxu0 %v8455_v10 }
 0x5ca   : > { %v2227_v8 = vpop.f32.mrf.mxu0 }
 0x5cb   : > { %v2228_v4 = vadd.f32 %v2227_v8, %v6221_v22 }
 0x5cc   : > { %v2229_v49 = vpop.f32.mrf.mxu0 }
 0x5cd   : > { %v2267_v51 = vadd.f32 %v4429_v58, %v2228_v4  ;;  %v2230_v43 = vadd.f32 %v2229_v49, %v6777_v3  ;;  %v4434_v4 = vld [vmem:[%s8359_s1 + $0x168] sm:$0xff] }
 0x5ce   : > { %v2233_v20 = vpop.f32.mrf.mxu0  ;;  %v8496_v49 = vld [vmem:[#allocation6_spill] sm:$0xff] }
 0x5cf   : > { %v7079_v39 = vmax.f32 %v8491_v23, %v2267_v51  ;;  %v2268_v17 = vadd.f32 %v4430_v60, %v2230_v43  ;;  %v2234_v13 = vadd.f32 %v2233_v20, %v6221_v22  ;;  %v8497_v60 = vmax.f32 %v6867_v29, %v8496_v49  ;;  %v4436_v29 = vld [vmem:[%s8359_s1 + $0x178] sm:$0xff]  ;;  %v7179_v49 = vld [vmem:[%s8362_s4 + $0x20] sm:$0xff] }
 0x5d0   : > { %v2235_v54 = vpop.f32.mrf.mxu0 }
 0x5d1   : > { %v7088_v5 = vmax.f32 %v8494_v44, %v2268_v17  ;;  %v2269_v6 = vadd.f32 %v4431_v15, %v2234_v13  ;;  %v2236_v18 = vadd.f32 %v2235_v54, %v6777_v3 }
 0x5d2   : > { %v2239_v24 = vpop.f32.mrf.mxu0 }
 0x5d3   : > { %v7097_v26 = vmax.f32 %v8495_v14, %v2269_v6  ;;  %v2270_v32 = vadd.f32 %v4432_v27, %v2236_v18  ;;  %v2240_v8 = vadd.f32 %v2239_v24, %v6221_v22 }
 0x5d4   : > { %v2241_v58 = vpop.f32.mrf.mxu0 }
 0x5d5   : > { %v7106_v51 = vmax.f32 %v8497_v60, %v2270_v32  ;;  %v2271_v43 = vadd.f32 %v4433_v25, %v2240_v8  ;;  %v2242_v20 = vadd.f32 %v2241_v58, %v6777_v3 }
 0x5d6   : > { %v2245_v15 = vpop.f32.mrf.mxu0 }
 0x5d7   : > { %v7115_v34 = vmax.f32 %v8499_v30, %v2271_v43  ;;  %v2272_v23 = vadd.f32 %v4434_v4, %v2242_v20  ;;  %v2246_v17 = vadd.f32 %v2245_v15, %v6221_v22  ;;  %v7187_v20 = vld [vmem:[%s8362_s4 + $0x18] sm:$0xff] }
 0x5d8   : > { %v2247_v13 = vpop.f32.mrf.mxu0 }
 0x5d9   : > { %v7124_v54 = vmax.f32 %v1925_v11, %v2272_v23  ;;  %v2273_v27 = vadd.f32 %v4435_v16, %v2246_v17  ;;  %v2248_v55 = vadd.f32 %v2247_v13, %v6777_v3 }
 0x5da   : > { %v2251_v12 = vpop.f32.mrf.mxu0 }
 0x5db   : > { %8500 = vst [vmem:[#allocation8_spill] sm:$0xff] %v7124_v54  ;;  %v7133_v44 = vmax.f32 %v1926_v46, %v2273_v27  ;;  %v2274_v6 = vadd.f32 %v4436_v29, %v2248_v55  ;;  %v2252_v18 = vadd.f32 %v2251_v12, %v6221_v22 }
 0x5dc   : > { %v2253_v24 = vpop.f32.mrf.mxu0 }
 0x5dd   : > { %8501 = vst [vmem:[#allocation22_spill] sm:$0xff] %v7133_v44  ;;  %v7142_v38 = vmax.f32 %v1927_v56, %v2274_v6  ;;  %v2275_v11 = vadd.f32 %v4437_v40, %v2252_v18  ;;  %v2254_v25 = vadd.f32 %v2253_v24, %v6777_v3  ;;  %v7222_v18 = vld [vmem:[%s8364_s6 + $0xf8] sm:$0xff] }
 0x5de   : > { %v2499_v14 = vpop.f32.mrf.mxu0 }
 0x5df   : > { %v7148_v46 = vmax.f32 %v1928_v35, %v2275_v11  ;;  %v2276_v63 = vadd.f32 %v4438_v21, %v2254_v25  ;;  %v2500_v45 = vadd.f32 %v6945_v31, %v2499_v14 }
 0x5e0   : > { %v5037_v32 = vpop.f32.mrf.mxu0 }
 0x5e1   : > { %v7154_v8 = vmax.f32 %v1929_v1, %v2276_v63  ;;  %v2523_v57 = vmax.f32 %v2500_v45, 0.0 }
 0x5e2   : > { %v2504_v47 = vpop.f32.mrf.mxu0 }
 0x5e3   : > { %v2505_v56 = vadd.f32 %v6945_v31, %v2504_v47  ;;  %2593 = vmatmul.mubr.f32.vlgmr.msra.gmra.mxu1 %v2523_v57 }
 0x5e4   : > { %5068 = vmatpush3.msra.mxu1 %v6639_v7  ;;  %v5040_v58 = vpop.f32.mrf.mxu0  ;;  %2598 = vmatprep.mubr.f32.mxu1 %v8455_v10 }
 0x5e5   : > { %v2524_v59 = vmax.f32 %v2505_v56, 0.0  ;;  %5069 = vmatprep.subr.mxu1 %v8455_v10 }
 0x5e6   : > { %v2509_v61 = vpop.f32.mrf.mxu0  ;;  %5070 = vmatpush3.msra.mxu1 %v7163_v19 }
 0x5e7   : > { %v2510_v35 = vadd.f32 %v6945_v31, %v2509_v61  ;;  %2599 = vmatmul.mubr.f32.gmra.mxu1 %v2524_v59  ;;  %5071 = vmatprep.subr.mxu1 %v8455_v10  ;;  %v7241_v59 = vld [vmem:[%s5654_s24 + $0x118] sm:$0xff]  ;;  %v7253_v61 = vld [vmem:[%s8364_s6 + $0xf0] sm:$0xff] }
 0x5e8   : > { %v5043_v7 = vpop.f32.mrf.mxu0  ;;  %5072 = vmatpush3.msra.mxu1 %v7171_v0  ;;  %2604 = vmatprep.mubr.f32.mxu1 %v8455_v10  ;;  %8502 = vst [vmem:[#allocation13_spill] sm:$0xff] %v7241_v59 }
 0x5e9   : > { %v2525_v1 = vmax.f32 %v2510_v35, 0.0  ;;  %5073 = vmatprep.subr.mxu1 %v8455_v10  ;;  %v7259_v35 = vld [vmem:[%s8364_s6 + $0xe8] sm:$0xff]  ;;  %v7265_v7 = vld [vmem:[%s8364_s6 + $0xe0] sm:$0xff] }
 0x5ea   : > { %v2514_v4 = vpop.f32.mrf.mxu0  ;;  %5074 = vmatpush3.msra.mxu1 %v7179_v49 }
 0x5eb   : > { %v2515_v60 = vadd.f32 %v6945_v31, %v2514_v4  ;;  %2605 = vmatmul.mubr.f32.gmra.mxu1 %v2525_v1  ;;  %5075 = vmatprep.subr.mxu1 %v8455_v10  ;;  %v7273_v1 = vld [vmem:[%s8364_s6 + $0xd8] sm:$0xff]  ;;  %v7279_v4 = vld [vmem:[%s5654_s24 + $0x128] sm:$0xff] }
 0x5ec   : > { %v5046_v43 = vpop.f32.mrf.mxu0  ;;  %5076 = vmatpush3.msra.mxu1 %v7187_v20  ;;  %2610 = vmatprep.mubr.f32.mxu1 %v8455_v10  ;;  %8504 = vst [vmem:[#allocation15_spill] sm:$0xff] %v7279_v4 }
 0x5ed   : > { %v2526_v15 = vmax.f32 %v2515_v60, 0.0  ;;  %5077 = vmatprep.subr.mxu1 %v8455_v10  ;;  %v7284_v60 = vld [vmem:[%s8364_s6 + $0xd0] sm:$0xff]  ;;  %v7290_v43 = vld [vmem:[%s8364_s6 + $0xc8] sm:$0xff] }
 0x5ee   : > { %v2519_v16 = vpop.f32.mrf.mxu0  ;;  %5078 = vmatpush3.msra.mxu1 %v7195_v41 }
 0x5ef   : > { %v2520_v30 = vadd.f32 %v6945_v31, %v2519_v16  ;;  %2611 = vmatmul.mubr.f32.gmra.mxu1 %v2526_v15  ;;  %5079 = vmatprep.subr.mxu1 %v8455_v10  ;;  %v7296_v15 = vld [vmem:[%s8364_s6 + $0xc0] sm:$0xff]  ;;  %v7304_v16 = vld [vmem:[%s8364_s6 + $0xb8] sm:$0xff] }
 0x5f0   : > { %v5049_v23 = vpop.f32.mrf.mxu0  ;;  %2616 = vmatprep.mubr.f32.mxu1 %v8455_v10  ;;  %5080 = vmatpush3.msra.mxu1 %v6663_v50  ;;  %v7213_v50 = vld [vmem:[%s8360_s2] sm:$0x7f] }
 0x5f1   : > { %v2527_v17 = vmax.f32 %v2520_v30, 0.0  ;;  %5081 = vmatprep.subr.mxu1 %v8455_v10  ;;  %v7310_v30 = vld [vmem:[%s5654_s24 + $0x130] sm:$0xff] }
 0x5f2   : > { %v2756_v13 = vpop.f32.mrf.mxu0  ;;  %5082 = vmatpush3.msra.mxu1 %v6670_v48  ;;  %8505 = vst [vmem:[#allocation16_spill] sm:$0xff] %v7310_v30  ;;  %v7315_v23 = vld [vmem:[%s8364_s6 + $0xb0] sm:$0xff] }
 0x5f3   : > { %v2757_v29 = vadd.f32 %v6676_v62, %v2756_v13  ;;  %2617 = vmatmul.mubr.f32.gmra.mxu1 %v2527_v17  ;;  %5098 = vmatprep.subr.mxu1 %v8455_v10  ;;  %v7321_v17 = vld [vmem:[%s8364_s6 + $0xa8] sm:$0xff]  ;;  %v7327_v13 = vld [vmem:[%s8364_s6 + $0xa0] sm:$0xff] }
 0x5f4   : > { %v5054_v27 = vpop.f32.mrf.mxu0  ;;  %5083 = vmatprep.mubr.msk.f32.mxu1 %vm5506_vm1, %v8455_v10 }
 0x5f5   : > { %v2780_v55 = vmax.f32 %v2757_v29, 0.0  ;;  %v7335_v29 = vld [vmem:[%s8364_s6 + $0x98] sm:$0xff] }
 0x5f6   : > { %v2761_v12 = vpop.f32.mrf.mxu0  ;;  %8506 = vst [vmem:[#allocation17_spill] sm:$0xff] %v7335_v29  ;;  %v7341_v27 = vld [vmem:[%s5654_s24 + $0x138] sm:$0xff] }
 0x5f7   : > { %v2762_v40 = vadd.f32 %v6676_v62, %v2761_v12  ;;  %5084 = vmatmul.mubr.msk.f32.vlgmr.msra.gmra.mxu1 %vm587_vm3, %v2780_v55  ;;  %8507 = vst [vmem:[#allocation18_spill] sm:$0xff] %v7341_v27  ;;  %v7346_v55 = vld [vmem:[%s8364_s6 + $0x90] sm:$0xff]  ;;  %v7352_v12 = vld [vmem:[%s8364_s6 + $0x88] sm:$0xff] }
 0x5f8   : > { %5099 = vmatpush3.msk.msra.mxu1 %vm482_vm0, %v7213_v50  ;;  %v5057_v48 = vpop.f32.mrf.mxu0  ;;  %5086 = vmatprep.mubr.msk.f32.mxu1 %vm5506_vm1, %v8455_v10  ;;  %8508 = vst [vmem:[#allocation19_spill] sm:$0xff] %v7346_v55  ;;  %8509 = vst [vmem:[#allocation23_spill] sm:$0xff] %v7352_v12 }
 0x5f9   : > { %v2781_v6 = vmax.f32 %v2762_v40, 0.0  ;;  %3262 = vmatprep.subr.mxu1 %v7222_v18  ;;  %v7358_v40 = vld [vmem:[%s8364_s6 + $0x80] sm:$0xff]  ;;  %v7366_v48 = vld [vmem:[%s8364_s6 + $0x78] sm:$0xff] }
 0x5fa   : > { %v2766_v24 = vpop.f32.mrf.mxu0  ;;  %8510 = vst [vmem:[#allocation24_spill] sm:$0xff] %v7358_v40  ;;  %8511 = vst [vmem:[#allocation25_spill] sm:$0xff] %v7366_v48 }
 0x5fb   : > { %v2767_v21 = vadd.f32 %v6676_v62, %v2766_v24  ;;  %5087 = vmatmul.mubr.msk.f32.gmra.mxu1 %vm587_vm3, %v2781_v6  ;;  %v7372_v6 = vld [vmem:[%s8364_s6 + $0x70] sm:$0xff]  ;;  %v7379_v24 = vld [vmem:[%s8364_s6 + $0x68] sm:$0xff] }
 0x5fc   : > { %v5060_v11 = vpop.f32.mrf.mxu0  ;;  %5089 = vmatprep.mubr.msk.f32.mxu1 %vm5506_vm1, %v8455_v10  ;;  %8512 = vst [vmem:[#allocation26_spill] sm:$0xff] %v7372_v6  ;;  %8513 = vst [vmem:[#allocation20_spill] sm:$0xff] %v7379_v24 }
 0x5fd   : > { %v2782_v25 = vmax.f32 %v2767_v21, 0.0  ;;  %v7385_v21 = vld [vmem:[%s8364_s6 + $0x60] sm:$0xff]  ;;  %v7391_v11 = vld [vmem:[%s8364_s6 + $0x58] sm:$0xff] }
 0x5fe   : > { %v2771_v14 = vpop.f32.mrf.mxu0  ;;  %8514 = vst [vmem:[#allocation9_spill] sm:$0xff] %v7385_v21  ;;  %8515 = vst [vmem:[#allocation5_spill] sm:$0xff] %v7391_v11 }
 0x5ff   : > { %v2772_v63 = vadd.f32 %v6676_v62, %v2771_v14  ;;  %5090 = vmatmul.mubr.msk.f32.gmra.mxu1 %vm587_vm3, %v2782_v25  ;;  %v7397_v25 = vld [vmem:[%s8364_s6 + $0x50] sm:$0xff]  ;;  %v7403_v14 = vld [vmem:[%s8364_s6 + $0x48] sm:$0xff] }
 0x600   : > { %v5063_v45 = vpop.f32.mrf.mxu0  ;;  %5092 = vmatprep.mubr.msk.f32.mxu1 %vm5506_vm1, %v8455_v10  ;;  %8516 = vst [vmem:[#allocation10_spill] sm:$0xff] %v7397_v25  ;;  %8517 = vst [vmem:[#allocation6_spill] sm:$0xff] %v7403_v14 }
 0x601   : > { %v2783_v32 = vmax.f32 %v2772_v63, 0.0  ;;  %v7409_v63 = vld [vmem:[%s8364_s6 + $0x40] sm:$0xff]  ;;  %v7415_v45 = vld [vmem:[%s8364_s6 + $0x38] sm:$0xff] }
 0x602   : > { %v2776_v57 = vpop.f32.mrf.mxu0  ;;  %8518 = vst [vmem:[#allocation11_spill] sm:$0xff] %v7409_v63  ;;  %8519 = vst [vmem:[#allocation27_spill] sm:$0xff] %v7415_v45 }
 0x603   : > { %v2777_v47 = vadd.f32 %v6676_v62, %v2776_v57  ;;  %5093 = vmatmul.mubr.msk.f32.gmra.mxu1 %vm587_vm3, %v2783_v32  ;;  %v7248_v62 = vld [vmem:[%s5654_s24 + $0x120] sm:$0xff]  ;;  %v7421_v32 = vld [vmem:[%s8364_s6 + $0x30] sm:$0xff]  ;;  %v7427_v57 = vld [vmem:[%s8364_s6 + $0x28] sm:$0xff] }
 0x604   : > { %v5066_v56 = vpop.f32.mrf.mxu0  ;;  %5095 = vmatprep.mubr.msk.f32.mxu1 %vm5506_vm1, %v8455_v10  ;;  %8503 = vst [vmem:[#allocation14_spill] sm:$0xff] %v7248_v62  ;;  %8520 = vst [vmem:[#allocation28_spill] sm:$0xff] %v7421_v32 }
 0x605   : > { %v2784_v58 = vmax.f32 %v2777_v47, 0.0  ;;  %8521 = vst [vmem:[#allocation29_spill] sm:$0xff] %v7427_v57  ;;  %v7433_v47 = vld [vmem:[%s8364_s6 + $0x20] sm:$0xff] }
 0x606   : > { %8522 = vst [vmem:[#allocation30_spill] sm:$0xff] %v7433_v47 }
 0x607   : > { %5096 = vmatmul.mubr.msk.f32.gmra.mxu1 %vm587_vm3, %v2784_v58  ;;  %v4455_v58 = vld [vmem:[%s8359_s1 + $0x190] sm:$0xff] }
 0x608   : > { %5100 = vmatprep.mubr.msk.f32.mxu1 %vm5506_vm1, %v8455_v10 }
 0x60b   : > { %5101 = vmatmul.mubr.msk.f32.vlgmr.msra.gmra.mxu1 %vm466_vm2, %v7241_v59 }
 0x60c   : > { %5103 = vmatprep.mubr.msk.f32.mxu1 %vm5506_vm1, %v8455_v10  ;;  %3263 = vmatpush1.msra.mxu1 %v7253_v61 }
 0x60d   : > { %3264 = vmatprep.subr.mxu1 %v7259_v35 }
 0x60e   : > { %3265 = vmatpush1.msra.mxu1 %v7265_v7 }
 0x60f   : > { %5104 = vmatmul.mubr.msk.f32.gmra.mxu1 %vm466_vm2, %v7248_v62  ;;  %3266 = vmatprep.subr.mxu1 %v7273_v1 }
 0x610   : > { %5106 = vmatprep.mubr.msk.f32.mxu1 %vm5506_vm1, %v8455_v10  ;;  %3267 = vmatpush1.msra.mxu1 %v7284_v60 }
 0x611   : > { %3268 = vmatprep.subr.mxu1 %v7290_v43 }
 0x612   : > { %3269 = vmatpush1.msra.mxu1 %v7296_v15 }
 0x613   : > { %5107 = vmatmul.mubr.msk.f32.gmra.mxu1 %vm466_vm2, %v7279_v4  ;;  %3270 = vmatprep.subr.mxu1 %v7304_v16 }
 0x614   : > { %5109 = vmatprep.mubr.msk.f32.mxu1 %vm5506_vm1, %v8455_v10  ;;  %3271 = vmatpush1.msra.mxu1 %v7315_v23 }
 0x615   : > { %3272 = vmatprep.subr.mxu1 %v7321_v17 }
 0x616   : > { %3273 = vmatpush1.msra.mxu1 %v7327_v13 }
 0x617   : > { %5110 = vmatmul.mubr.msk.f32.gmra.mxu1 %vm466_vm2, %v7310_v30  ;;  %3274 = vmatprep.subr.mxu1 %v7335_v29 }
 0x618   : > { %5112 = vmatprep.mubr.msk.f32.mxu1 %vm5506_vm1, %v8455_v10  ;;  %3275 = vmatpush1.msra.mxu1 %v7346_v55 }
 0x619   : > { %3276 = vmatprep.subr.mxu1 %v7352_v12 }
 0x61a   : > { %3277 = vmatpush1.msra.mxu1 %v7358_v40 }
 0x61b   : > { %5113 = vmatmul.mubr.msk.f32.gmra.mxu1 %vm466_vm2, %v7341_v27  ;;  %3278 = vmatprep.subr.mxu1 %v7366_v48 }
 0x61c   : > { %3279 = vmatpush1.msra.mxu1 %v7372_v6  ;;  %3326 = vmatprep.mubr.f32.mxu1 %v8455_v10 }
 0x61d   : > { %3280 = vmatprep.subr.mxu1 %v7379_v24 }
 0x61e   : > { %3281 = vmatpush1.msra.mxu1 %v7385_v21 }
 0x61f   : > { %3282 = vmatprep.subr.mxu1 %v7391_v11 }
 0x620   : > { %3283 = vmatpush1.msra.mxu1 %v7397_v25 }
 0x621   : > { %3284 = vmatprep.subr.mxu1 %v7403_v14 }
 0x622   : > { %3285 = vmatpush1.msra.mxu1 %v7409_v63 }
 0x623   : > { %3286 = vmatprep.subr.mxu1 %v7415_v45 }
 0x624   : > { %3287 = vmatpush1.msra.mxu1 %v7421_v32 }
 0x625   : > { %3288 = vmatprep.subr.mxu1 %v7427_v57 }
 0x626   : > { %3289 = vmatpush1.msra.mxu1 %v7433_v47 }
 0x627   : > { %3290 = vmatprep.subr.mxu1 %v8485_v33  ;;  %v4456_v33 = vld [vmem:[%s8359_s1 + $0x198] sm:$0xff] }
 0x628   : > { %3291 = vmatpush1.msra.mxu1 %v8486_v36 }
 0x629   : > { %3292 = vmatprep.subr.mxu1 %v8487_v2 }
 0x62a   : > { %3293 = vmatpush1.msra.mxu1 %v8488_v42  ;;  %v4457_v42 = vld [vmem:[%s8359_s1 + $0x1a0] sm:$0xff] }
 0x62b   : > { %5163 = vmatprep.subr.mxu1 %v8455_v10 }
 0x6a3   : > { %v2594_v56 = vpop.f32.mrf.mxu1 }
 0x6a4   : > { %v2595_v27 = vadd.f32 %v2594_v56, %v6221_v22 }
 0x6a5   : > { %v2596_v30 = vpop.f32.mrf.mxu1 }
 0x6a6   : > { %v7448_v52 = vadd.f32 %v4455_v58, %v2595_v27  ;;  %v2597_v36 = vadd.f32 %v2596_v30, %v6777_v3  ;;  %v4458_v27 = vld [vmem:[%s8359_s1 + $0x1a8] sm:$0xff] }
 0x6a7   : > { %v2600_v2 = vpop.f32.mrf.mxu1 }
 0x6a8   : > { %8523 = vst [vmem:[#allocation31_spill] sm:$0xff] %v7448_v52  ;;  %v7456_v9 = vadd.f32 %v4456_v33, %v2597_v36  ;;  %v2601_v56 = vadd.f32 %v2600_v2, %v6221_v22  ;;  %v4459_v33 = vld [vmem:[%s8359_s1 + $0x1b0] sm:$0xff] }
 0x6a9   : > { %v2602_v62 = vpop.f32.mrf.mxu1 }
 0x6aa   : > { %8524 = vst [vmem:[#allocation32_spill] sm:$0xff] %v7456_v9  ;;  %v7464_v58 = vadd.f32 %v4457_v42, %v2601_v56  ;;  %v2603_v53 = vadd.f32 %v2602_v62, %v6777_v3  ;;  %v4460_v42 = vld [vmem:[%s8359_s1 + $0x1b8] sm:$0xff] }
 0x6ab   : > { %v2606_v59 = vpop.f32.mrf.mxu1 }
 0x6ac   : > { %8525 = vst [vmem:[#allocation33_spill] sm:$0xff] %v7464_v58  ;;  %v7472_v2 = vadd.f32 %v4458_v27, %v2603_v53  ;;  %v2607_v4 = vadd.f32 %v2606_v59, %v6221_v22  ;;  %v4461_v53 = vld [vmem:[%s8359_s1 + $0x1c0] sm:$0xff] }
 0x6ad   : > { %v2608_v52 = vpop.f32.mrf.mxu1 }
 0x6ae   : > { %8526 = vst [vmem:[#allocation34_spill] sm:$0xff] %v7472_v2  ;;  %v7480_v56 = vadd.f32 %v4459_v33, %v2607_v4  ;;  %v2609_v30 = vadd.f32 %v2608_v52, %v6777_v3  ;;  %v4462_v4 = vld [vmem:[%s8359_s1 + $0x1c8] sm:$0xff] }
 0x6af   : > { %v2612_v9 = vpop.f32.mrf.mxu1 }
 0x6b0   : > { %8527 = vst [vmem:[#allocation35_spill] sm:$0xff] %v7480_v56  ;;  %v7488_v27 = vadd.f32 %v4460_v42, %v2609_v30  ;;  %v2613_v36 = vadd.f32 %v2612_v9, %v6221_v22  ;;  %v4463_v30 = vld [vmem:[%s8359_s1 + $0x1d0] sm:$0xff]  ;;  %v5390_v9 = vld [vmem:[%s5654_s24] sm:$0xff] }
 0x6b1   : > { %v2614_v58 = vpop.f32.mrf.mxu1  ;;  %vm824_vm4 = vcmp.eq.f32.partialorder %v5390_v9, 0.0 }
 0x6b2   : > { %8528 = vst [vmem:[#allocation36_spill] sm:$0xff] %v7488_v27  ;;  %v7496_v33 = vadd.f32 %v4461_v53, %v2613_v36  ;;  %v2615_v62 = vadd.f32 %v2614_v58, %v6777_v3  ;;  %v4464_v36 = vld [vmem:[%s8359_s1 + $0x1d8] sm:$0xff] }
 0x6b3   : > { %v2618_v2 = vpop.f32.mrf.mxu1 }
 0x6b4   : > { %8529 = vst [vmem:[#allocation37_spill] sm:$0xff] %v7496_v33  ;;  %v7504_v42 = vadd.f32 %v4462_v4, %v2615_v62  ;;  %v2619_v59 = vadd.f32 %v2618_v2, %v6221_v22 }
 0x6b5   : > { %v2620_v56 = vpop.f32.mrf.mxu1 }
 0x6b6   : > { %v7512_v53 = vadd.f32 %v4463_v30, %v2619_v59  ;;  %v2621_v52 = vadd.f32 %v2620_v56, %v6777_v3  ;;  %v7526_v56 = vld [vmem:[%s8362_s4 + $0x38] sm:$0xff] }
 0x6b7   : > { %v2866_v27 = vpop.f32.mrf.mxu1 }
 0x6b8   : > { %v7517_v62 = vadd.f32 %v4464_v36, %v2621_v52  ;;  %v2867_v2 = vadd.f32 %v6945_v31, %v2866_v27 }
 0x6b9   : > { %v5085_v4 = vpop.f32.mrf.mxu1 }
 0x6ba   : > { %v2890_v44 = vmax.f32 %v2867_v2, 0.0 }
 0x6bb   : > { %v2871_v54 = vpop.f32.mrf.mxu1 }
 0x6bc   : > { %v2872_v58 = vadd.f32 %v6945_v31, %v2871_v54  ;;  %2960 = vmatmul.mubr.f32.vlgmr.msra.gmra.mxu0 %v2890_v44 }
 0x6bd   : > { %5116 = vmatpush3.msra.mxu0 %v7526_v56  ;;  %v5088_v59 = vpop.f32.mrf.mxu1  ;;  %2965 = vmatprep.mubr.f32.mxu0 %v8455_v10 }
 0x6be   : > { %v2891_v27 = vmax.f32 %v2872_v58, 0.0  ;;  %5117 = vmatprep.subr.mxu0 %v8455_v10 }
 0x6bf   : > { %v2876_v52 = vpop.f32.mrf.mxu1  ;;  %5118 = vmatpush3.msra.mxu0 %v7163_v19 }
 0x6c0   : > { %v2877_v30 = vadd.f32 %v6945_v31, %v2876_v52  ;;  %2966 = vmatmul.mubr.f32.gmra.mxu0 %v2891_v27  ;;  %5119 = vmatprep.subr.mxu0 %v8455_v10 }
 0x6c1   : > { %v5091_v54 = vpop.f32.mrf.mxu1  ;;  %5120 = vmatpush3.msra.mxu0 %v7171_v0  ;;  %2971 = vmatprep.mubr.f32.mxu0 %v8455_v10 }
 0x6c2   : > { %v2892_v44 = vmax.f32 %v2877_v30, 0.0  ;;  %5121 = vmatprep.subr.mxu0 %v8455_v10  ;;  %v7550_v30 = vld [vmem:[%s8362_s4 + $0x8] sm:$0xff] }
 0x6c3   : > { %v2881_v36 = vpop.f32.mrf.mxu1  ;;  %5122 = vmatpush3.msra.mxu0 %v7179_v49 }
 0x6c4   : > { %v2882_v58 = vadd.f32 %v6945_v31, %v2881_v36  ;;  %2972 = vmatmul.mubr.f32.gmra.mxu0 %v2892_v44  ;;  %5123 = vmatprep.subr.mxu0 %v8455_v10  ;;  %v7563_v36 = vld [vmem:[%s8361_s3] ss:$0 sm:$0xff] }
 0x6c5   : > { %v5094_v2 = vpop.f32.mrf.mxu1  ;;  %5124 = vmatpush3.msra.mxu0 %v7187_v20  ;;  %2977 = vmatprep.mubr.f32.mxu0 %v8455_v10 }
 0x6c6   : > { %v2893_v4 = vmax.f32 %v2882_v58, 0.0  ;;  %5125 = vmatprep.subr.mxu0 %v8455_v10 }
 0x6c7   : > { %v2886_v59 = vpop.f32.mrf.mxu1  ;;  %5126 = vmatpush3.msra.mxu0 %v7195_v41 }
 0x6c8   : > { %v2887_v27 = vadd.f32 %v6945_v31, %v2886_v59  ;;  %2978 = vmatmul.mubr.f32.gmra.mxu0 %v2893_v4  ;;  %5127 = vmatprep.subr.mxu0 %v8455_v10  ;;  %v7557_v31 = vld [vmem:[%s8362_s4] sm:$0xff] }
 0x6c9   : > { %v5097_v52 = vpop.f32.mrf.mxu1  ;;  %2983 = vmatprep.mubr.f32.mxu0 %v8455_v10  ;;  %5128 = vmatpush3.msra.mxu0 %v7550_v30 }
 0x6ca   : > { %v2894_v54 = vmax.f32 %v2887_v27, 0.0  ;;  %5129 = vmatprep.subr.mxu0 %v8455_v10 }
 0x6cb   : > { %v3123_v44 = vpop.f32.mrf.mxu1  ;;  %5130 = vmatpush3.msra.mxu0 %v7557_v31 }
 0x6cc   : > { %v3124_v58 = vadd.f32 %v7563_v36, %v3123_v44  ;;  %2984 = vmatmul.mubr.f32.gmra.mxu0 %v2894_v54  ;;  %5146 = vmatprep.subr.mxu0 %v8455_v10 }
 0x6cd   : > { %v5102_v2 = vpop.f32.mrf.mxu1  ;;  %5131 = vmatprep.mubr.msk.f32.mxu0 %vm5506_vm1, %v8455_v10 }
 0x6ce   : > { %v3147_v4 = vmax.f32 %v3124_v58, 0.0 }
 0x6cf   : > { %v3128_v59 = vpop.f32.mrf.mxu1 }
 0x6d0   : > { %v3129_v27 = vadd.f32 %v7563_v36, %v3128_v59  ;;  %5132 = vmatmul.mubr.msk.f32.vlgmr.msra.gmra.mxu0 %vm587_vm3, %v3147_v4 }
 0x6d1   : > { %5147 = vmatpush3.msk.msra.mxu0 %vm482_vm0, %v7213_v50  ;;  %v5105_v52 = vpop.f32.mrf.mxu1  ;;  %5134 = vmatprep.mubr.msk.f32.mxu0 %vm5506_vm1, %v8455_v10 }
 0x6d2   : > { %v3148_v54 = vmax.f32 %v3129_v27, 0.0  ;;  %3629 = vmatprep.subr.mxu0 %v7222_v18 }
 0x6d3   : > { %v3133_v44 = vpop.f32.mrf.mxu1 }
 0x6d4   : > { %v3134_v2 = vadd.f32 %v7563_v36, %v3133_v44  ;;  %5135 = vmatmul.mubr.msk.f32.gmra.mxu0 %vm587_vm3, %v3148_v54 }
 0x6d5   : > { %v5108_v58 = vpop.f32.mrf.mxu1  ;;  %5137 = vmatprep.mubr.msk.f32.mxu0 %vm5506_vm1, %v8455_v10 }
 0x6d6   : > { %v3149_v4 = vmax.f32 %v3134_v2, 0.0 }
 0x6d7   : > { %v3138_v59 = vpop.f32.mrf.mxu1 }
 0x6d8   : > { %v3139_v52 = vadd.f32 %v7563_v36, %v3138_v59  ;;  %5138 = vmatmul.mubr.msk.f32.gmra.mxu0 %vm587_vm3, %v3149_v4  ;;  %v7592_v4 = vld [vmem:[%s5654_s24 + $0x140] sm:$0xff]  ;;  %v7610_v59 = vld [vmem:[%s5654_s24 + $0x150] sm:$0xff] }
 0x6d9   : > { %v5111_v27 = vpop.f32.mrf.mxu1  ;;  %5140 = vmatprep.mubr.msk.f32.mxu0 %vm5506_vm1, %v8455_v10 }
 0x6da   : > { %v3150_v33 = vmax.f32 %v3139_v52, 0.0  ;;  %v7621_v52 = vld [vmem:[%s5654_s24 + $0x158] sm:$0xff]  ;;  %v7632_v27 = vld [vmem:[%s5654_s24 + $0x160] sm:$0xff] }
 0x6db   : > { %v3143_v44 = vpop.f32.mrf.mxu1 }
 0x6dc   : > { %v3144_v54 = vadd.f32 %v7563_v36, %v3143_v44  ;;  %5141 = vmatmul.mubr.msk.f32.gmra.mxu0 %vm587_vm3, %v3150_v33  ;;  %v7599_v33 = vld [vmem:[%s5654_s24 + $0x148] sm:$0xff]  ;;  %v7655_v44 = vld [vmem:[%s8364_s6 + $0x18] sm:$0xff] }
 0x6dd   : > { %v5114_v58 = vpop.f32.mrf.mxu1  ;;  %5143 = vmatprep.mubr.msk.f32.mxu0 %vm5506_vm1, %v8455_v10  ;;  %8530 = vst [vmem:[#allocation38_spill] sm:$0xff] %v7655_v44 }
 0x6de   : > { %v3151_v2 = vmax.f32 %v3144_v54, 0.0  ;;  %v7661_v54 = vld [vmem:[%s8364_s6 + $0x10] sm:$0xff]  ;;  %v7667_v58 = vld [vmem:[%s8364_s6 + $0x8] sm:$0xff] }
 0x6df   : > { %8531 = vst [vmem:[#allocation39_spill] sm:$0xff] %v7661_v54  ;;  %8532 = vst [vmem:[#allocation40_spill] sm:$0xff] %v7667_v58 }
 0x6e0   : > { %5144 = vmatmul.mubr.msk.f32.gmra.mxu0 %vm587_vm3, %v3151_v2  ;;  %v7673_v2 = vld [vmem:[%s8364_s6] sm:$0xff] }
 0x6e1   : > { %5148 = vmatprep.mubr.msk.f32.mxu0 %vm5506_vm1, %v8455_v10  ;;  %8533 = vst [vmem:[#allocation41_spill] sm:$0xff] %v7673_v2 }
 0x6e4   : > { %5149 = vmatmul.mubr.msk.f32.vlgmr.msra.gmra.mxu0 %vm466_vm2, %v7592_v4 }
 0x6e5   : > { %5151 = vmatprep.mubr.msk.f32.mxu0 %vm5506_vm1, %v8455_v10  ;;  %3630 = vmatpush1.msra.mxu0 %v7253_v61 }
 0x6e6   : > { %3631 = vmatprep.subr.mxu0 %v7259_v35 }
 0x6e7   : > { %3632 = vmatpush1.msra.mxu0 %v7265_v7 }
 0x6e8   : > { %5152 = vmatmul.mubr.msk.f32.gmra.mxu0 %vm466_vm2, %v7599_v33  ;;  %3633 = vmatprep.subr.mxu0 %v7273_v1 }
 0x6e9   : > { %5154 = vmatprep.mubr.msk.f32.mxu0 %vm5506_vm1, %v8455_v10  ;;  %3634 = vmatpush1.msra.mxu0 %v7284_v60 }
 0x6ea   : > { %3635 = vmatprep.subr.mxu0 %v7290_v43 }
 0x6eb   : > { %3636 = vmatpush1.msra.mxu0 %v7296_v15 }
 0x6ec   : > { %5155 = vmatmul.mubr.msk.f32.gmra.mxu0 %vm466_vm2, %v7610_v59  ;;  %3637 = vmatprep.subr.mxu0 %v7304_v16 }
 0x6ed   : > { %5157 = vmatprep.mubr.msk.f32.mxu0 %vm5506_vm1, %v8455_v10  ;;  %3638 = vmatpush1.msra.mxu0 %v7315_v23 }
 0x6ee   : > { %3639 = vmatprep.subr.mxu0 %v7321_v17 }
 0x6ef   : > { %3640 = vmatpush1.msra.mxu0 %v7327_v13 }
 0x6f0   : > { %5158 = vmatmul.mubr.msk.f32.gmra.mxu0 %vm466_vm2, %v7621_v52  ;;  %3641 = vmatprep.subr.mxu0 %v7335_v29  ;;  %v5415_v29 = vld [vmem:[%s5654_s24 + $0xb8] sm:$0xff] }
 0x6f1   : > { %5160 = vmatprep.mubr.msk.f32.mxu0 %vm5506_vm1, %v8455_v10  ;;  %3642 = vmatpush1.msra.mxu0 %v7346_v55  ;;  %v5411_v55 = vld [vmem:[%s5654_s24 + $0x90] sm:$0xff] }
 0x6f2   : > { %3643 = vmatprep.subr.mxu0 %v7352_v12 }
 0x6f3   : > { %3644 = vmatpush1.msra.mxu0 %v7358_v40  ;;  %v5407_v40 = vld [vmem:[%s5654_s24 + $0x88] sm:$0xff] }
 0x6f4   : > { %5161 = vmatmul.mubr.msk.f32.gmra.mxu0 %vm466_vm2, %v7632_v27  ;;  %3645 = vmatprep.subr.mxu0 %v7366_v48 }
 0x6f5   : > { %3646 = vmatpush1.msra.mxu0 %v7372_v6  ;;  %3693 = vmatprep.mubr.f32.mxu0 %v8455_v10  ;;  %v5406_v6 = vld [vmem:[%s5654_s24 + $0x68] sm:$0xff] }
 0x6f6   : > { %3647 = vmatprep.subr.mxu0 %v7379_v24  ;;  %v5402_v24 = vld [vmem:[%s5654_s24 + $0x80] sm:$0xff] }
 0x6f7   : > { %3648 = vmatpush1.msra.mxu0 %v7385_v21  ;;  %v5401_v21 = vld [vmem:[%s5654_s24 + $0x60] sm:$0xff] }
 0x6f8   : > { %3649 = vmatprep.subr.mxu0 %v7391_v11  ;;  %v5400_v11 = vld [vmem:[%s5654_s24 + $0x40] sm:$0xff]  ;;  %vm1545_vm15 = vcmp.eq.f32.partialorder %v5401_v21, 0.0 }
 0x6f9   : > { %3650 = vmatpush1.msra.mxu0 %v7397_v25  ;;  %v5397_v25 = vld [vmem:[%s5654_s24 + $0x58] sm:$0xff]  ;;  %vm1179_vm14 = vcmp.eq.f32.partialorder %v5400_v11, 0.0  ;;  %v1550_v21 = vsel %vm1545_vm15, 1.0, %v8455_v10 }
 0x6fa   : > { %3651 = vmatprep.subr.mxu0 %v7403_v14  ;;  %v5396_v14 = vld [vmem:[%s5654_s24 + $0x38] sm:$0xff]  ;;  %vm1544_vm11 = vcmp.eq.f32.partialorder %v5397_v25, 0.0  ;;  %v1184_v11 = vsel %vm1179_vm14, 1.0, %v8455_v10 }
 0x6fb   : > { %3652 = vmatpush1.msra.mxu0 %v7409_v63  ;;  %vm1178_vm10 = vcmp.eq.f32.partialorder %v5396_v14, 0.0  ;;  %v1549_v14 = vsel %vm1544_vm11, 1.0, %v8455_v10 }
 0x6fc   : > { %3653 = vmatprep.subr.mxu0 %v7415_v45  ;;  %v5395_v45 = vld [vmem:[%s5654_s24 + $0x10] sm:$0xff] }
 0x6fd   : > { %3654 = vmatpush1.msra.mxu0 %v7421_v32  ;;  %v5394_v32 = vld [vmem:[%s5654_s24 + $0x30] sm:$0xff]  ;;  %vm826_vm9 = vcmp.eq.f32.partialorder %v5395_v45, 0.0 }
 0x6fe   : > { %3655 = vmatprep.subr.mxu0 %v7427_v57  ;;  %v5393_v57 = vld [vmem:[%s5654_s24 + $0x8] sm:$0xff]  ;;  %vm1177_vm8 = vcmp.eq.f32.partialorder %v5394_v32, 0.0  ;;  %v831_v32 = vsel %vm826_vm9, 1.0, %v8455_v10  ;;  %vm1912_vm9 = vcmp.eq.f32.partialorder %v5407_v40, 0.0 }
 0x6ff   : > { %3656 = vmatpush1.msra.mxu0 %v7433_v47  ;;  %v5392_v47 = vld [vmem:[%s5654_s24 + $0x50] sm:$0xff]  ;;  %vm825_vm7 = vcmp.eq.f32.partialorder %v5393_v57, 0.0  ;;  %v1182_v63 = vsel %vm1177_vm8, 1.0, %v8455_v10  ;;  %v5398_v57 = vld [vmem:[%s5654_s24 + $0x78] sm:$0xff]  ;;  %vm1546_vm8 = vcmp.eq.f32.partialorder %v5406_v6, 0.0  ;;  %v1917_v12 = vsel %vm1912_vm9, 1.0, %v8455_v10 }
 0x700   : > { %3657 = vmatprep.subr.mxu0 %v7655_v44  ;;  %v829_v44 = vsel %vm824_vm4, 1.0, %v8455_v10  ;;  %vm1543_vm6 = vcmp.eq.f32.partialorder %v5392_v47, 0.0  ;;  %vm1910_vm12 = vcmp.eq.f32.partialorder %v5398_v57, 0.0  ;;  %v5399_v47 = vld [vmem:[%s5654_s24 + $0x18] sm:$0xff]  ;;  %vm1911_vm4 = vcmp.eq.f32.partialorder %v5402_v24, 0.0 }
 0x701   : > { %3658 = vmatpush1.msra.mxu0 %v7661_v54  ;;  %v5391_v54 = vld [vmem:[%s5654_s24 + $0x28] sm:$0xff]  ;;  %v1548_v9 = vsel %vm1543_vm6, 1.0, %v8455_v10  ;;  %vm827_vm13 = vcmp.eq.f32.partialorder %v5399_v47, 0.0  ;;  %v1915_v25 = vsel %vm1910_vm12, 1.0, %v8455_v10  ;;  %v5403_v47 = vld [vmem:[%s5654_s24 + $0xa0] sm:$0xff]  ;;  %v1916_v24 = vsel %vm1911_vm4, 1.0, %v8455_v10 }
 0x702   : > { %3659 = vmatprep.subr.mxu0 %v7667_v58  ;;  %vm1176_vm5 = vcmp.eq.f32.partialorder %v5391_v54, 0.0  ;;  %v830_v54 = vsel %vm825_vm7, 1.0, %v8455_v10  ;;  %v832_v57 = vsel %vm827_vm13, 1.0, %v8455_v10  ;;  %vm1913_vm13 = vcmp.eq.f32.partialorder %v5411_v55, 0.0 }
 0x703   : > { %3660 = vmatpush1.msra.mxu0 %v7673_v2  ;;  %v1181_v58 = vsel %vm1176_vm5, 1.0, %v8455_v10  ;;  %vm2277_vm5 = vcmp.eq.f32.partialorder %v5403_v47, 0.0  ;;  %vm3011_vm4 = vcmp.eq.f32.partialorder %v7000_v28, 0.0  ;;  %v1918_v55 = vsel %vm1913_vm13, 1.0, %v8455_v10 }
 0x704   : > { %5211 = vmatprep.subr.mxu0 %v8455_v10  ;;  %v1196_v2 = vmax.f32 %v829_v44, %v1181_v58  ;;  %v1197_v44 = vmax.f32 %v830_v54, %v1182_v63  ;;  %v1183_v58 = vsel %vm1178_vm10, 1.0, %v8455_v10  ;;  %v5404_v63 = vld [vmem:[%s5654_s24 + $0x20] sm:$0xff]  ;;  %v2282_v47 = vsel %vm2277_vm5, 1.0, %v8455_v10 }
 0x705   : > { %vm828_vm6 = vcmp.eq.f32.partialorder %v5404_v63, 0.0  ;;  %v5408_v63 = vld [vmem:[%s5654_s24 + $0xa8] sm:$0xff]  ;;  %v3016_v28 = vsel %vm3011_vm4, 1.0, %v8455_v10 }
 0x706   : > { %v1563_v45 = vmax.f32 %v1196_v2, %v1548_v9  ;;  %v1198_v2 = vmax.f32 %v831_v32, %v1183_v58  ;;  %v5405_v9 = vld [vmem:[%s5654_s24 + $0x48] sm:$0xff]  ;;  %v1564_v54 = vmax.f32 %v1197_v44, %v1549_v14  ;;  %v833_v32 = vsel %vm828_vm6, 1.0, %v8455_v10 }
 0x707   : > { %vm1180_vm7 = vcmp.eq.f32.partialorder %v5405_v9, 0.0  ;;  %v1199_v58 = vmax.f32 %v832_v57, %v1184_v11  ;;  %vm2278_vm10 = vcmp.eq.f32.partialorder %v5408_v63, 0.0  ;;  %v5409_v44 = vld [vmem:[%s5654_s24 + $0xc8] sm:$0xff]  ;;  %v1551_v14 = vsel %vm1546_vm8, 1.0, %v8455_v10  ;;  %v5412_v63 = vld [vmem:[%s5654_s24 + $0xb0] sm:$0xff] }
 0x708   : > { %v1930_v48 = vmax.f32 %v1563_v45, %v1915_v25  ;;  %vm2644_vm11 = vcmp.eq.f32.partialorder %v5409_v44, 0.0  ;;  %v1185_v6 = vsel %vm1180_vm7, 1.0, %v8455_v10  ;;  %v1565_v45 = vmax.f32 %v1198_v2, %v1550_v21  ;;  %v5410_v25 = vld [vmem:[%s5654_s24 + $0x70] sm:$0xff] }
 0x709   : > { %vm1547_vm12 = vcmp.eq.f32.partialorder %v5410_v25, 0.0  ;;  %v1931_v40 = vmax.f32 %v1564_v54, %v1916_v24  ;;  %v2283_v11 = vsel %vm2278_vm10, 1.0, %v8455_v10  ;;  %vm2279_vm14 = vcmp.eq.f32.partialorder %v5412_v63, 0.0  ;;  %v5413_v2 = vld [vmem:[%s5654_s24 + $0xd0] sm:$0xff] }
 0x70a   : > { %v2297_v57 = vmax.f32 %v1930_v48, %v2282_v47  ;;  %v2649_v9 = vsel %vm2644_vm11, 1.0, %v8455_v10  ;;  %v1200_v44 = vmax.f32 %v833_v32, %v1185_v6  ;;  %vm2645_vm15 = vcmp.eq.f32.partialorder %v5413_v2, 0.0  ;;  %v5414_v48 = vld [vmem:[%s5654_s24 + $0x98] sm:$0xff] }
 0x70b   : > { %v1566_v54 = vmax.f32 %v1199_v58, %v1551_v14  ;;  %v1552_v21 = vsel %vm1547_vm12, 1.0, %v8455_v10  ;;  %v1932_v24 = vmax.f32 %v1565_v45, %v1917_v12  ;;  %vm1914_vm5 = vcmp.eq.f32.partialorder %v5414_v48, 0.0  ;;  %v5416_v58 = vld [vmem:[%s5654_s24 + $0xd8] sm:$0xff]  ;;  %v8534_v12 = vld [vmem:[#allocation13_spill] sm:$0xff] }
 0x70c   : > { %v2298_v47 = vmax.f32 %v1931_v40, %v2283_v11  ;;  %v2284_v25 = vsel %vm2279_vm14, 1.0, %v8455_v10  ;;  %v2664_v63 = vmax.f32 %v2297_v57, %v2649_v9  ;;  %vm2280_vm6 = vcmp.eq.f32.partialorder %v5415_v29, 0.0  ;;  %v5417_v11 = vld [vmem:[%s5654_s24 + $0xc0] sm:$0xff] }
 0x70d   : > { %v2650_v32 = vsel %vm2645_vm15, 1.0, %v8455_v10  ;;  %vm2646_vm7 = vcmp.eq.f32.partialorder %v5416_v58, 0.0  ;;  %vm3012_vm8 = vcmp.eq.f32.partialorder %v7007_v37, 0.0  ;;  %vm3378_vm9 = vcmp.eq.f32.partialorder %v8534_v12, 0.0  ;;  %v5418_v48 = vld [vmem:[%s5654_s24 + $0xe0] sm:$0xff] }
 0x70e   : > { %v1567_v6 = vmax.f32 %v1200_v44, %v1552_v21  ;;  %v1933_v45 = vmax.f32 %v1566_v54, %v1918_v55  ;;  %v1919_v14 = vsel %vm1914_vm5, 1.0, %v8455_v10  ;;  %v2299_v40 = vmax.f32 %v1932_v24, %v2284_v25  ;;  %v8535_v44 = vld [vmem:[#allocation7_spill] sm:$0xff]  ;;  %v8536_v54 = vld [vmem:[#allocation14_spill] sm:$0xff] }
 0x70f   : > { %v2285_v57 = vsel %vm2280_vm6, 1.0, %v8455_v10  ;;  %vm2281_vm10 = vcmp.eq.f32.partialorder %v5417_v11, 0.0  ;;  %v2665_v29 = vmax.f32 %v2298_v47, %v2650_v32  ;;  %v3031_v9 = vmax.f32 %v2664_v63, %v3016_v28  ;;  %v5419_v28 = vld [vmem:[%s5654_s24 + $0xe8] sm:$0xff] }
 0x710   : > { %v2651_v2 = vsel %vm2646_vm7, 1.0, %v8455_v10  ;;  %vm2647_vm11 = vcmp.eq.f32.partialorder %v5418_v48, 0.0  ;;  %v3017_v37 = vsel %vm3012_vm8, 1.0, %v8455_v10  ;;  %v3383_v58 = vsel %vm3378_vm9, 1.0, %v8455_v10 }
 0x711   : > { %vm3013_vm12 = vcmp.eq.f32.partialorder %v8535_v44, 0.0  ;;  %vm3379_vm13 = vcmp.eq.f32.partialorder %v8536_v54, 0.0  ;;  %vm3745_vm14 = vcmp.eq.f32.partialorder %v7592_v4, 0.0  ;;  %v1934_v21 = vmax.f32 %v1567_v6, %v1919_v14  ;;  %v8537_v4 = vld [vmem:[#allocation21_spill] sm:$0xff]  ;;  %v8538_v6 = vld [vmem:[#allocation15_spill] sm:$0xff]  ;;  %v7758_v44 = vld [vmem:[%s5654_s24 + $0x168] sm:$0xff] }
 0x712   : > { %v2300_v24 = vmax.f32 %v1933_v45, %v2285_v57  ;;  %v2286_v55 = vsel %vm2281_vm10, 1.0, %v8455_v10  ;;  %v2666_v47 = vmax.f32 %v2299_v40, %v2651_v2  ;;  %v2652_v25 = vsel %vm2647_vm11, 1.0, %v8455_v10  ;;  %v8539_v54 = vld [vmem:[#allocation12_spill] sm:$0xff] }
 0x713   : > { %v3032_v63 = vmax.f32 %v2665_v29, %v3017_v37  ;;  %v3398_v32 = vmax.f32 %v3031_v9, %v3383_v58  ;;  %vm2648_vm15 = vcmp.eq.f32.partialorder %v5419_v28, 0.0  ;;  %v3018_v12 = vsel %vm3013_vm12, 1.0, %v8455_v10 }
 0x714   : > { %v3384_v11 = vsel %vm3379_vm13, 1.0, %v8455_v10  ;;  %v3750_v48 = vsel %vm3745_vm14, 1.0, %v8455_v10  ;;  %vm3014_vm4 = vcmp.eq.f32.partialorder %v8537_v4, 0.0  ;;  %vm3380_vm5 = vcmp.eq.f32.partialorder %v8538_v6, 0.0 }
 0x715   : > { %vm3746_vm6 = vcmp.eq.f32.partialorder %v7599_v33, 0.0  ;;  %v2301_v45 = vmax.f32 %v1934_v21, %v2286_v55  ;;  %v2667_v14 = vmax.f32 %v2300_v24, %v2652_v25  ;;  %v2653_v40 = vsel %vm2648_vm15, 1.0, %v8455_v10  ;;  %v8540_v33 = vld [vmem:[#allocation16_spill] sm:$0xff] }
 0x716   : > { %v3033_v57 = vmax.f32 %v2666_v47, %v3018_v12  ;;  %v3399_v29 = vmax.f32 %v3032_v63, %v3384_v11  ;;  %v3765_v9 = vmax.f32 %v3398_v32, %v3750_v48  ;;  %v3019_v2 = vsel %vm3014_vm4, 1.0, %v8455_v10  ;;  %v7774_v12 = vld [vmem:[%s5654_s24 + $0x170] sm:$0xff]  ;;  %v8541_v11 = vld [vmem:[#allocation18_spill] sm:$0xff] }
 0x717   : > { %v3385_v37 = vsel %vm3380_vm5, 1.0, %v8455_v10  ;;  %v3751_v58 = vsel %vm3746_vm6, 1.0, %v8455_v10  ;;  %vm3015_vm7 = vcmp.eq.f32.partialorder %v8539_v54, 0.0  ;;  %vm3381_vm8 = vcmp.eq.f32.partialorder %v8540_v33, 0.0  ;;  %v7794_v54 = vld [vmem:[%s5654_s24 + $0x180] sm:$0xff] }
 0x718   : > { %vm3747_vm9 = vcmp.eq.f32.partialorder %v7610_v59, 0.0  ;;  %vm4112_vm10 = vcmp.eq.f32.partialorder %v7758_v44, 0.0  ;;  %v2668_v21 = vmax.f32 %v2301_v45, %v2653_v40  ;;  %vm4147_vm11 = vcmask 7168  }
 0x719   : > { %v4117_v24 = vsel %vm4112_vm10, 1.0, %v8455_v10  ;;  %v3034_v55 = vmax.f32 %v2667_v14, %v3019_v2  ;;  %v3400_v47 = vmax.f32 %v3033_v57, %v3385_v37  ;;  %v3766_v25 = vmax.f32 %v3399_v29, %v3751_v58  ;;  %v7785_v29 = vld [vmem:[%s5654_s24 + $0x178] sm:$0xff] }
 0x71a   : > { %v4132_v63 = vmax.f32 %v3765_v9, %v4117_v24  ;;  %v3020_v32 = vsel %vm3015_vm7, 1.0, %v8455_v10  ;;  %v3386_v59 = vsel %vm3381_vm8, 1.0, %v8455_v10  ;;  %v3752_v28 = vsel %vm3747_vm9, 1.0, %v8455_v10  ;;  %v7801_v24 = vld [vmem:[%s5654_s24 + $0x188] sm:$0xff] }
 0x71b   : > { %vm3382_vm12 = vcmp.eq.f32.partialorder %v8541_v11, 0.0  ;;  %vm3748_vm13 = vcmp.eq.f32.partialorder %v7621_v52, 0.0  ;;  %vm4113_vm14 = vcmp.eq.f32.partialorder %v7774_v12, 0.0  ;;  %v3035_v4 = vmax.f32 %v2668_v21, %v3020_v32 }
 0x71c   : > { %4148 = vst.msk [vmem:[%s7767_s29] sm:$0xff] %vm4147_vm11, %v4132_v63  ;;  %v4118_v48 = vsel %vm4113_vm14, 1.0, %v8455_v10  ;;  %v3401_v6 = vmax.f32 %v3034_v55, %v3386_v59  ;;  %v3767_v45 = vmax.f32 %v3400_v47, %v3752_v28  ;;  %v3387_v40 = vsel %vm3382_vm12, 1.0, %v8455_v10  ;;  %v4481_v63 = vld [vmem:[%s8359_s1 + $0x1e0] sm:$0xff]  ;;  %v4482_v28 = vld [vmem:[%s8359_s1 + $0x1e8] sm:$0xff] }
 0x71d   : > { %v4133_v14 = vmax.f32 %v3766_v25, %v4118_v48  ;;  %v3753_v57 = vsel %vm3748_vm13, 1.0, %v8455_v10  ;;  %vm3749_vm15 = vcmp.eq.f32.partialorder %v7632_v27, 0.0  ;;  %vm4114_vm4 = vcmp.eq.f32.partialorder %v7785_v29, 0.0 }
 0x71e   : > { %v4119_v52 = vsel %vm4114_vm4, 1.0, %v8455_v10  ;;  %v3402_v9 = vmax.f32 %v3035_v4, %v3387_v40  ;;  %v3768_v2 = vmax.f32 %v3401_v6, %v3753_v57  ;;  %v3754_v58 = vsel %vm3749_vm15, 1.0, %v8455_v10  ;;  %v4483_v6 = vld [vmem:[%s8359_s1 + $0x1f0] sm:$0xff] }
 0x71f   : > { %4149 = vst.msk [vmem:[%s7767_s29 + $0x8] sm:$0xff] %vm4147_vm11, %v4133_v14  ;;  %v4134_v37 = vmax.f32 %v3767_v45, %v4119_v52  ;;  %vm4115_vm5 = vcmp.eq.f32.partialorder %v7794_v54, 0.0  ;;  %vm4116_vm6 = vcmp.eq.f32.partialorder %v7801_v24, 0.0  ;;  %v8542_v45 = vld [vmem:[#allocation31_spill] sm:$0xff] }
 0x720   : > { %v4120_v27 = vsel %vm4115_vm5, 1.0, %v8455_v10  ;;  %v3769_v33 = vmax.f32 %v3402_v9, %v3754_v58  ;;  %v4121_v55 = vsel %vm4116_vm6, 1.0, %v8455_v10  ;;  %v8543_v14 = vmax.f32 %v7079_v39, %v8542_v45  ;;  %v4485_v39 = vld [vmem:[%s8359_s1 + $0x200] sm:$0xff] }
 0x721   : > { %4150 = vst.msk [vmem:[%s7767_s29 + $0x10] sm:$0xff] %vm4147_vm11, %v4134_v37  ;;  %v4135_v21 = vmax.f32 %v3768_v2, %v4120_v27  ;;  %v4484_v2 = vld [vmem:[%s8359_s1 + $0x1f8] sm:$0xff] }
 0x722   : > { %v4136_v47 = vmax.f32 %v3769_v33, %v4121_v55  ;;  %v8544_v37 = vld [vmem:[#allocation32_spill] sm:$0xff] }
 0x723   : > { %4151 = vst.msk [vmem:[%s7767_s29 + $0x18] sm:$0xff] %vm4147_vm11, %v4135_v21  ;;  %v8545_v58 = vmax.f32 %v7088_v5, %v8544_v37  ;;  %v4486_v5 = vld [vmem:[%s8359_s1 + $0x208] sm:$0xff] }
 0x724   : > { %4152 = vst.msk [vmem:[%s7767_s29 + $0x20] sm:$0xff] %vm4147_vm11, %v4136_v47  ;;  %v8546_v47 = vld [vmem:[#allocation33_spill] sm:$0xff]  ;;  %s5507_s29 = smov [#allocation2]  }
 0x725   : > { %s5431_s15 = sshll.u32 %s5507_s29, 4  ;;  %s5432_s15 = int_to_ptr.vmem [resolvable:$false] %s5431_s15 }
 0x726   : > { %s5433_s28 = scalar_lea.vmem %s5432_s15, 2560  ;;  %p5434_p1 = scmp.lt.s32.totalorder %s8306_s18, %s5432_s15 }
 0x727   : > { %p5435_p2 = scmp.lt.s32.totalorder %s5433_s28, %s5427_s25 }
 0x729   : > { %p5436_p3 = por %p5435_p2, %p5434_p1 }
 0x72b   : > { %p5437_p5 = pnand %p5436_p3, %p5430_p0 }
 0x77c   : > { %v2961_v25 = vpop.f32.mrf.mxu0 }
 0x77d   : > { %v2962_v32 = vadd.f32 %v2961_v25, %v6221_v22  ;;  %v8547_v25 = vmax.f32 %v7097_v26, %v8546_v47  ;;  %v4487_v26 = vld [vmem:[%s8359_s1 + $0x210] sm:$0xff] }
 0x77e   : > { %v2963_v59 = vpop.f32.mrf.mxu0 }
 0x77f   : > { %v3001_v11 = vadd.f32 %v4481_v63, %v2962_v32  ;;  %v2964_v48 = vadd.f32 %v2963_v59, %v6777_v3 }
 0x780   : > { %v2967_v4 = vpop.f32.mrf.mxu0 }
 0x781   : > { %v7823_v40 = vmax.f32 %v8543_v14, %v3001_v11  ;;  %v3002_v57 = vadd.f32 %v4482_v28, %v2964_v48  ;;  %v2968_v52 = vadd.f32 %v2967_v4, %v6221_v22  ;;  %v8548_v11 = vld [vmem:[#allocation34_spill] sm:$0xff] }
 0x782   : > { %v2969_v9 = vpop.f32.mrf.mxu0  ;;  %v8549_v48 = vmax.f32 %v7106_v51, %v8548_v11  ;;  %v4488_v51 = vld [vmem:[%s8359_s1 + $0x218] sm:$0xff] }
 0x783   : > { %v7832_v27 = vmax.f32 %v8545_v58, %v3002_v57  ;;  %v3003_v33 = vadd.f32 %v4483_v6, %v2968_v52  ;;  %v2970_v21 = vadd.f32 %v2969_v9, %v6777_v3  ;;  %v8550_v57 = vld [vmem:[#allocation35_spill] sm:$0xff] }
 0x784   : > { %v2973_v55 = vpop.f32.mrf.mxu0  ;;  %v8551_v52 = vmax.f32 %v7115_v34, %v8550_v57  ;;  %v4489_v34 = vld [vmem:[%s8359_s1 + $0x220] sm:$0xff] }
 0x785   : > { %v7841_v63 = vmax.f32 %v8547_v25, %v3003_v33  ;;  %v3004_v32 = vadd.f32 %v4484_v2, %v2970_v21  ;;  %v2974_v59 = vadd.f32 %v2973_v55, %v6221_v22  ;;  %v8552_v33 = vld [vmem:[#allocation8_spill] sm:$0xff] }
 0x786   : > { %v2975_v28 = vpop.f32.mrf.mxu0  ;;  %v8553_v21 = vld [vmem:[#allocation36_spill] sm:$0xff] }
 0x787   : > { %v7850_v4 = vmax.f32 %v8549_v48, %v3004_v32  ;;  %v3005_v6 = vadd.f32 %v4485_v39, %v2974_v59  ;;  %v2976_v45 = vadd.f32 %v2975_v28, %v6777_v3  ;;  %v8554_v55 = vmax.f32 %v8552_v33, %v8553_v21  ;;  %v8555_v59 = vld [vmem:[#allocation22_spill] sm:$0xff]  ;;  %v8556_v28 = vld [vmem:[#allocation37_spill] sm:$0xff] }
 0x788   : > { %v2979_v14 = vpop.f32.mrf.mxu0  ;;  %v7897_v21 = vld [vmem:[%s8363_s5] ss:$0 sm:$0xff] }
 0x789   : > { %v7859_v9 = vmax.f32 %v8551_v52, %v3005_v6  ;;  %v3006_v2 = vadd.f32 %v4486_v5, %v2976_v45  ;;  %v2980_v37 = vadd.f32 %v2979_v14, %v6221_v22  ;;  %v8557_v5 = vmax.f32 %v8555_v59, %v8556_v28  ;;  %v4490_v14 = vld [vmem:[%s8359_s1 + $0x228] sm:$0xff] }
 0x78a   : > { %v2981_v58 = vpop.f32.mrf.mxu0 }
 0x78b   : > { %v7868_v39 = vmax.f32 %v8554_v55, %v3006_v2  ;;  %v3007_v47 = vadd.f32 %v4487_v26, %v2980_v37  ;;  %v2982_v25 = vadd.f32 %v2981_v58, %v6777_v3  ;;  %v8558_v26 = vmax.f32 %v7142_v38, %v7504_v42 }
 0x78c   : > { %v2985_v32 = vpop.f32.mrf.mxu0  ;;  %v8559_v58 = vmax.f32 %v7148_v46, %v7512_v53  ;;  %v8560_v42 = vmax.f32 %v7154_v8, %v7517_v62 }
 0x78d   : > { %v7877_v11 = vmax.f32 %v8557_v5, %v3007_v47  ;;  %v3008_v48 = vadd.f32 %v4488_v51, %v2982_v25  ;;  %v2986_v6 = vadd.f32 %v2985_v32, %v6221_v22 }
 0x78e   : > { %v2987_v45 = vpop.f32.mrf.mxu0 }
 0x78f   : > { %v7886_v57 = vmax.f32 %v8558_v26, %v3008_v48  ;;  %v3009_v52 = vadd.f32 %v4489_v34, %v2986_v6  ;;  %v2988_v2 = vadd.f32 %v2987_v45, %v6777_v3 }
 0x790   : > { %v3233_v37 = vpop.f32.mrf.mxu0 }
 0x791   : > { %v7892_v51 = vmax.f32 %v8559_v58, %v3009_v52  ;;  %v3010_v33 = vadd.f32 %v4490_v14, %v2988_v2  ;;  %v3234_v55 = vadd.f32 %v7897_v21, %v3233_v37 }
 0x792   : > { %v5133_v38 = vpop.f32.mrf.mxu0 }
 0x793   : > { %v7903_v47 = vmax.f32 %v8560_v42, %v3010_v33  ;;  %v3257_v25 = vmax.f32 %v3234_v55, 0.0 }
 0x794   : > { %v3238_v32 = vpop.f32.mrf.mxu0 }
 0x795   : > { %v3239_v46 = vadd.f32 %v7897_v21, %v3238_v32  ;;  %3327 = vmatmul.mubr.f32.vlgmr.msra.gmra.mxu1 %v3257_v25 }
 0x796   : > { %5164 = vmatpush3.msra.mxu1 %v7526_v56  ;;  %v5136_v53 = vpop.f32.mrf.mxu0  ;;  %3332 = vmatprep.mubr.f32.mxu1 %v8455_v10 }
 0x797   : > { %v3258_v34 = vmax.f32 %v3239_v46, 0.0  ;;  %5165 = vmatprep.subr.mxu1 %v8455_v10 }
 0x798   : > { %v3243_v59 = vpop.f32.mrf.mxu0  ;;  %5166 = vmatpush3.msra.mxu1 %v7163_v19 }
 0x799   : > { %v3244_v8 = vadd.f32 %v7897_v21, %v3243_v59  ;;  %3333 = vmatmul.mubr.f32.gmra.mxu1 %v3258_v34  ;;  %5167 = vmatprep.subr.mxu1 %v8455_v10 }
 0x79a   : > { %v5139_v62 = vpop.f32.mrf.mxu0  ;;  %5168 = vmatpush3.msra.mxu1 %v7171_v0  ;;  %3338 = vmatprep.mubr.f32.mxu1 %v8455_v10 }
 0x79b   : > { %v3259_v28 = vmax.f32 %v3244_v8, 0.0  ;;  %5169 = vmatprep.subr.mxu1 %v8455_v10  ;;  %v8577_v62 = vld [vmem:[#allocation38_spill] sm:$0xff] }
 0x79c   : > { %v3248_v5 = vpop.f32.mrf.mxu0  ;;  %5170 = vmatpush3.msra.mxu1 %v7179_v49 }
 0x79d   : > { %v3249_v48 = vadd.f32 %v7897_v21, %v3248_v5  ;;  %3339 = vmatmul.mubr.f32.gmra.mxu1 %v3259_v28  ;;  %5171 = vmatprep.subr.mxu1 %v8455_v10  ;;  %v8578_v28 = vld [vmem:[#allocation39_spill] sm:$0xff]  ;;  %v8579_v5 = vld [vmem:[#allocation40_spill] sm:$0xff] }
 0x79e   : > { %v5142_v19 = vpop.f32.mrf.mxu0  ;;  %5172 = vmatpush3.msra.mxu1 %v7187_v20  ;;  %3344 = vmatprep.mubr.f32.mxu1 %v8455_v10 }
 0x79f   : > { %v3260_v6 = vmax.f32 %v3249_v48, 0.0  ;;  %5173 = vmatprep.subr.mxu1 %v8455_v10  ;;  %v8580_v48 = vld [vmem:[#allocation41_spill] sm:$0xff] }
 0x7a0   : > { %v3253_v0 = vpop.f32.mrf.mxu0  ;;  %5174 = vmatpush3.msra.mxu1 %v7195_v41 }
 0x7a1   : > { %v3254_v45 = vadd.f32 %v7897_v21, %v3253_v0  ;;  %3345 = vmatmul.mubr.f32.gmra.mxu1 %v3260_v6  ;;  %5175 = vmatprep.subr.mxu1 %v8455_v10  ;;  %v4507_v6 = vld [vmem:[%s8359_s1 + $0x230] sm:$0xff] }
 0x7a2   : > { %v5145_v49 = vpop.f32.mrf.mxu0  ;;  %3350 = vmatprep.mubr.f32.mxu1 %v8455_v10  ;;  %5176 = vmatpush3.msra.mxu1 %v7550_v30 }
 0x7a3   : > { %v3261_v14 = vmax.f32 %v3254_v45, 0.0  ;;  %5177 = vmatprep.subr.mxu1 %v8455_v10  ;;  %v4508_v49 = vld [vmem:[%s8359_s1 + $0x238] sm:$0xff] }
 0x7a4   : > { %v3490_v20 = vpop.f32.mrf.mxu0  ;;  %5178 = vmatpush3.msra.mxu1 %v7557_v31 }
 0x7a5   : > { %v3491_v26 = vadd.f32 %v7563_v36, %v3490_v20  ;;  %3351 = vmatmul.mubr.f32.gmra.mxu1 %v3261_v14  ;;  %5194 = vmatprep.subr.mxu1 %v8455_v10 }
 0x7a6   : > { %v5150_v41 = vpop.f32.mrf.mxu0  ;;  %5179 = vmatprep.mubr.msk.f32.mxu1 %vm5506_vm1, %v8455_v10 }
 0x7a7   : > { %v3514_v52 = vmax.f32 %v3491_v26, 0.0  ;;  %v4509_v41 = vld [vmem:[%s8359_s1 + $0x240] sm:$0xff] }
 0x7a8   : > { %v3495_v2 = vpop.f32.mrf.mxu0 }
 0x7a9   : > { %v3496_v37 = vadd.f32 %v7563_v36, %v3495_v2  ;;  %5180 = vmatmul.mubr.msk.f32.vlgmr.msra.gmra.mxu1 %vm587_vm3, %v3514_v52 }
 0x7aa   : > { %5195 = vmatpush3.msk.msra.mxu1 %vm482_vm0, %v7213_v50  ;;  %v5153_v58 = vpop.f32.mrf.mxu0  ;;  %5182 = vmatprep.mubr.msk.f32.mxu1 %vm5506_vm1, %v8455_v10 }
 0x7ab   : > { %v3515_v33 = vmax.f32 %v3496_v37, 0.0  ;;  %3996 = vmatprep.subr.mxu1 %v7222_v18 }
 0x7ac   : > { %v3500_v55 = vpop.f32.mrf.mxu0 }
 0x7ad   : > { %v3501_v38 = vadd.f32 %v7563_v36, %v3500_v55  ;;  %5183 = vmatmul.mubr.msk.f32.gmra.mxu1 %vm587_vm3, %v3515_v33  ;;  %v4510_v33 = vld [vmem:[%s8359_s1 + $0x248] sm:$0xff] }
 0x7ae   : > { %v5156_v42 = vpop.f32.mrf.mxu0  ;;  %5185 = vmatprep.mubr.msk.f32.mxu1 %vm5506_vm1, %v8455_v10 }
 0x7af   : > { %v3516_v25 = vmax.f32 %v3501_v38, 0.0 }
 0x7b0   : > { %v3505_v32 = vpop.f32.mrf.mxu0 }
 0x7b1   : > { %v3506_v50 = vadd.f32 %v7563_v36, %v3505_v32  ;;  %5186 = vmatmul.mubr.msk.f32.gmra.mxu1 %vm587_vm3, %v3516_v25  ;;  %v4511_v32 = vld [vmem:[%s8359_s1 + $0x250] sm:$0xff] }
 0x7b2   : > { %v5159_v46 = vpop.f32.mrf.mxu0  ;;  %5188 = vmatprep.mubr.msk.f32.mxu1 %vm5506_vm1, %v8455_v10 }
 0x7b3   : > { %v3517_v18 = vmax.f32 %v3506_v50, 0.0 }
 0x7b4   : > { %v3510_v53 = vpop.f32.mrf.mxu0 }
 0x7b5   : > { %v3511_v34 = vadd.f32 %v7563_v36, %v3510_v53  ;;  %5189 = vmatmul.mubr.msk.f32.gmra.mxu1 %vm587_vm3, %v3517_v18 }
 0x7b6   : > { %v5162_v59 = vpop.f32.mrf.mxu0  ;;  %5191 = vmatprep.mubr.msk.f32.mxu1 %vm5506_vm1, %v8455_v10 }
 0x7b7   : > { %v3518_v8 = vmax.f32 %v3511_v34, 0.0  ;;  %v4512_v34 = vld [vmem:[%s8359_s1 + $0x258] sm:$0xff] }
 0x7b9   : > { %5192 = vmatmul.mubr.msk.f32.gmra.mxu1 %vm587_vm3, %v3518_v8 }
 0x7ba   : > { %5196 = vmatprep.mubr.msk.f32.mxu1 %vm5506_vm1, %v8455_v10 }
 0x7bd   : > { %5197 = vmatmul.mubr.msk.f32.vlgmr.msra.gmra.mxu1 %vm466_vm2, %v7758_v44  ;;  %v8572_v44 = vld [vmem:[#allocation11_spill] sm:$0xff] }
 0x7be   : > { %5199 = vmatprep.mubr.msk.f32.mxu1 %vm5506_vm1, %v8455_v10  ;;  %3997 = vmatpush1.msra.mxu1 %v7253_v61  ;;  %v8561_v61 = vld [vmem:[#allocation17_spill] sm:$0xff] }
 0x7bf   : > { %3998 = vmatprep.subr.mxu1 %v7259_v35  ;;  %v8562_v35 = vld [vmem:[#allocation19_spill] sm:$0xff] }
 0x7c0   : > { %3999 = vmatpush1.msra.mxu1 %v7265_v7  ;;  %v8563_v7 = vld [vmem:[#allocation23_spill] sm:$0xff] }
 0x7c1   : > { %5200 = vmatmul.mubr.msk.f32.gmra.mxu1 %vm466_vm2, %v7774_v12  ;;  %4000 = vmatprep.subr.mxu1 %v7273_v1  ;;  %v8564_v1 = vld [vmem:[#allocation24_spill] sm:$0xff]  ;;  %v8573_v12 = vld [vmem:[#allocation27_spill] sm:$0xff] }
 0x7c2   : > { %5202 = vmatprep.mubr.msk.f32.mxu1 %vm5506_vm1, %v8455_v10  ;;  %4001 = vmatpush1.msra.mxu1 %v7284_v60  ;;  %v8565_v60 = vld [vmem:[#allocation25_spill] sm:$0xff] }
 0x7c3   : > { %4002 = vmatprep.subr.mxu1 %v7290_v43  ;;  %v8566_v43 = vld [vmem:[#allocation26_spill] sm:$0xff] }
 0x7c4   : > { %4003 = vmatpush1.msra.mxu1 %v7296_v15  ;;  %v8567_v15 = vld [vmem:[#allocation20_spill] sm:$0xff] }
 0x7c5   : > { %5203 = vmatmul.mubr.msk.f32.gmra.mxu1 %vm466_vm2, %v7785_v29  ;;  %4004 = vmatprep.subr.mxu1 %v7304_v16  ;;  %v8568_v16 = vld [vmem:[#allocation9_spill] sm:$0xff]  ;;  %v8574_v29 = vld [vmem:[#allocation28_spill] sm:$0xff] }
 0x7c6   : > { %5205 = vmatprep.mubr.msk.f32.mxu1 %vm5506_vm1, %v8455_v10  ;;  %4005 = vmatpush1.msra.mxu1 %v7315_v23  ;;  %v8569_v23 = vld [vmem:[#allocation5_spill] sm:$0xff] }
 0x7c7   : > { %4006 = vmatprep.subr.mxu1 %v7321_v17  ;;  %v8570_v17 = vld [vmem:[#allocation10_spill] sm:$0xff] }
 0x7c8   : > { %4007 = vmatpush1.msra.mxu1 %v7327_v13  ;;  %v8571_v13 = vld [vmem:[#allocation6_spill] sm:$0xff] }
 0x7c9   : > { %5206 = vmatmul.mubr.msk.f32.gmra.mxu1 %vm466_vm2, %v7794_v54  ;;  %4008 = vmatprep.subr.mxu1 %v8561_v61  ;;  %v8575_v54 = vld [vmem:[#allocation29_spill] sm:$0xff] }
 0x7ca   : > { %5208 = vmatprep.mubr.msk.f32.mxu1 %vm5506_vm1, %v8455_v10  ;;  %4009 = vmatpush1.msra.mxu1 %v8562_v35 }
 0x7cb   : > { %4010 = vmatprep.subr.mxu1 %v8563_v7  ;;  %v4513_v7 = vld [vmem:[%s8359_s1 + $0x260] sm:$0xff] }
 0x7cc   : > { %4011 = vmatpush1.msra.mxu1 %v8564_v1 }
 0x7cd   : > { %5209 = vmatmul.mubr.msk.f32.gmra.mxu1 %vm466_vm2, %v7801_v24  ;;  %4012 = vmatprep.subr.mxu1 %v8565_v60  ;;  %v8576_v24 = vld [vmem:[#allocation30_spill] sm:$0xff] }
 0x7ce   : > { %4013 = vmatpush1.msra.mxu1 %v8566_v43  ;;  %4060 = vmatprep.mubr.f32.mxu1 %v8455_v10 }
 0x7cf   : > { %4014 = vmatprep.subr.mxu1 %v8567_v15 }
 0x7d0   : > { %4015 = vmatpush1.msra.mxu1 %v8568_v16  ;;  %v4514_v16 = vld [vmem:[%s8359_s1 + $0x268] sm:$0xff] }
 0x7d1   : > { %4016 = vmatprep.subr.mxu1 %v8569_v23 }
 0x7d2   : > { %4017 = vmatpush1.msra.mxu1 %v8570_v17 }
 0x7d3   : > { %4018 = vmatprep.subr.mxu1 %v8571_v13 }
 0x7d4   : > { %4019 = vmatpush1.msra.mxu1 %v8572_v44 }
 0x7d5   : > { %4020 = vmatprep.subr.mxu1 %v8573_v12  ;;  %v4515_v12 = vld [vmem:[%s8359_s1 + $0x270] sm:$0xff] }
 0x7d6   : > { %4021 = vmatpush1.msra.mxu1 %v8574_v29 }
 0x7d7   : > { %4022 = vmatprep.subr.mxu1 %v8575_v54 }
 0x7d8   : > { %4023 = vmatpush1.msra.mxu1 %v8576_v24 }
 0x7d9   : > { %4024 = vmatprep.subr.mxu1 %v8577_v62 }
 0x7da   : > { %4025 = vmatpush1.msra.mxu1 %v8578_v28  ;;  %v4516_v28 = vld [vmem:[%s8359_s1 + $0x278] sm:$0xff] }
 0x7db   : > { %4026 = vmatprep.subr.mxu1 %v8579_v5 }
 0x7dc   : > { %4027 = vmatpush1.msra.mxu1 %v8580_v48 }
 0x855   : > { %v3328_v19 = vpop.f32.mrf.mxu1 }
 0x856   : > { %v3329_v0 = vadd.f32 %v3328_v19, %v6221_v22 }
 0x857   : > { %v3330_v45 = vpop.f32.mrf.mxu1 }
 0x858   : > { %v8011_v14 = vadd.f32 %v4507_v6, %v3329_v0  ;;  %v3331_v20 = vadd.f32 %v3330_v45, %v6777_v3 }
 0x859   : > { %v3334_v26 = vpop.f32.mrf.mxu1 }
 0x85a   : > { %v3388_v52 = vmax.f32 %v7823_v40, %v8011_v14  ;;  %v8019_v2 = vadd.f32 %v4508_v49, %v3331_v20  ;;  %v3335_v37 = vadd.f32 %v3334_v26, %v6221_v22  ;;  %v4537_v40 = vld [vmem:[%s8359_s1 + $0x2a0] sm:$0xff] }
 0x85b   : > { %v3336_v58 = vpop.f32.mrf.mxu1 }
 0x85c   : > { %v3389_v55 = vmax.f32 %v7832_v27, %v8019_v2  ;;  %v8027_v38 = vadd.f32 %v4509_v41, %v3335_v37  ;;  %v3337_v42 = vadd.f32 %v3336_v58, %v6777_v3  ;;  %v4538_v27 = vld [vmem:[%s8359_s1 + $0x2a8] sm:$0xff] }
 0x85d   : > { %v3340_v25 = vpop.f32.mrf.mxu1 }
 0x85e   : > { %v3390_v50 = vmax.f32 %v7841_v63, %v8027_v38  ;;  %v8035_v46 = vadd.f32 %v4510_v33, %v3337_v42  ;;  %v3341_v18 = vadd.f32 %v3340_v25, %v6221_v22  ;;  %v4539_v63 = vld [vmem:[%s8359_s1 + $0x2b0] sm:$0xff] }
 0x85f   : > { %v3342_v53 = vpop.f32.mrf.mxu1 }
 0x860   : > { %v3391_v59 = vmax.f32 %v7850_v4, %v8035_v46  ;;  %v8043_v8 = vadd.f32 %v4511_v32, %v3341_v18  ;;  %v3343_v61 = vadd.f32 %v3342_v53, %v6777_v3  ;;  %v5421_v32 = vld [vmem:[%s8362_s4 + $0x30] sm:$0xff]  ;;  %v4540_v4 = vld [vmem:[%s8359_s1 + $0x2b8] sm:$0xff] }
 0x861   : > { %v3346_v35 = vpop.f32.mrf.mxu1 }
 0x862   : > { %v3392_v1 = vmax.f32 %v7859_v9, %v8043_v8  ;;  %v8051_v60 = vadd.f32 %v4512_v34, %v3343_v61  ;;  %v3347_v43 = vadd.f32 %v3346_v35, %v6221_v22  ;;  %v5423_v35 = vld [vmem:[%s8362_s4 + $0x20] sm:$0xff] }
 0x863   : > { %v3348_v15 = vpop.f32.mrf.mxu1  ;;  %v4541_v9 = vld [vmem:[%s8359_s1 + $0x2c0] sm:$0xff] }
 0x864   : > { %v3393_v23 = vmax.f32 %v7868_v39, %v8051_v60  ;;  %v8059_v17 = vadd.f32 %v4513_v7, %v3347_v43  ;;  %v3349_v13 = vadd.f32 %v3348_v15, %v6777_v3  ;;  %v5424_v15 = vld [vmem:[%s8362_s4 + $0x18] sm:$0xff]  ;;  %v4542_v39 = vld [vmem:[%s8359_s1 + $0x2c8] sm:$0xff] }
 0x865   : > { %v3352_v44 = vpop.f32.mrf.mxu1 }
 0x866   : > { %v3394_v29 = vmax.f32 %v7877_v11, %v8059_v17  ;;  %v8067_v54 = vadd.f32 %v4514_v16, %v3349_v13  ;;  %v3353_v24 = vadd.f32 %v3352_v44, %v6221_v22  ;;  %v5425_v44 = vld [vmem:[%s8362_s4 + $0x10] sm:$0xff] }
 0x867   : > { %v3354_v62 = vpop.f32.mrf.mxu1 }
 0x868   : > { %v3395_v5 = vmax.f32 %v7886_v57, %v8067_v54  ;;  %v8075_v48 = vadd.f32 %v4515_v12, %v3353_v24  ;;  %v3355_v19 = vadd.f32 %v3354_v62, %v6777_v3 }
 0x869   : > { %v3600_v6 = vpop.f32.mrf.mxu1 }
 0x86a   : > { %v3396_v0 = vmax.f32 %v7892_v51, %v8075_v48  ;;  %v8080_v45 = vadd.f32 %v4516_v28, %v3355_v19  ;;  %v3601_v49 = vadd.f32 %v7897_v21, %v3600_v6 }
 0x86b   : > { %v5181_v20 = vpop.f32.mrf.mxu1 }
 0x86c   : > { %v3397_v26 = vmax.f32 %v7903_v47, %v8080_v45  ;;  %v3624_v41 = vmax.f32 %v3601_v49, 0.0 }
 0x86d   : > { %v3605_v37 = vpop.f32.mrf.mxu1 }
 0x86e   : > { %v3606_v58 = vadd.f32 %v7897_v21, %v3605_v37  ;;  %3694 = vmatmul.mubr.f32.vlgmr.msra.gmra.mxu0 %v3624_v41 }
 0x86f   : > { %5212 = vmatpush3.msra.mxu0 %v7526_v56  ;;  %v5184_v33 = vpop.f32.mrf.mxu1  ;;  %3699 = vmatprep.mubr.f32.mxu0 %v8455_v10  ;;  %v5422_v56 = vld [vmem:[%s8362_s4 + $0x28] sm:$0xff] }
 0x870   : > { %v3625_v42 = vmax.f32 %v3606_v58, 0.0  ;;  %5213 = vmatprep.subr.mxu0 %v8455_v10 }
 0x871   : > { %v3610_v25 = vpop.f32.mrf.mxu1  ;;  %5214 = vmatpush3.msra.mxu0 %v5421_v32 }
 0x872   : > { %v3611_v18 = vadd.f32 %v7897_v21, %v3610_v25  ;;  %3700 = vmatmul.mubr.f32.gmra.mxu0 %v3625_v42  ;;  %5215 = vmatprep.subr.mxu0 %v8455_v10 }
 0x873   : > { %v5187_v53 = vpop.f32.mrf.mxu1  ;;  %5216 = vmatpush3.msra.mxu0 %v5422_v56  ;;  %3705 = vmatprep.mubr.f32.mxu0 %v8455_v10 }
 0x874   : > { %v3626_v34 = vmax.f32 %v3611_v18, 0.0  ;;  %5217 = vmatprep.subr.mxu0 %v8455_v10 }
 0x875   : > { %v3615_v61 = vpop.f32.mrf.mxu1  ;;  %5218 = vmatpush3.msra.mxu0 %v5423_v35 }
 0x876   : > { %v3616_v7 = vadd.f32 %v7897_v21, %v3615_v61  ;;  %3706 = vmatmul.mubr.f32.gmra.mxu0 %v3626_v34  ;;  %5219 = vmatprep.subr.mxu0 %v8455_v10 }
 0x877   : > { %v5190_v43 = vpop.f32.mrf.mxu1  ;;  %5220 = vmatpush3.msra.mxu0 %v5424_v15  ;;  %3711 = vmatprep.mubr.f32.mxu0 %v8455_v10 }
 0x878   : > { %v3627_v16 = vmax.f32 %v3616_v7, 0.0  ;;  %5221 = vmatprep.subr.mxu0 %v8455_v10  ;;  %v4533_v43 = vld [vmem:[%s8359_s1 + $0x280] sm:$0xff] }
 0x879   : > { %v3620_v13 = vpop.f32.mrf.mxu1  ;;  %5222 = vmatpush3.msra.mxu0 %v5425_v44 }
 0x87a   : > { %v3621_v12 = vadd.f32 %v7897_v21, %v3620_v13  ;;  %3712 = vmatmul.mubr.f32.gmra.mxu0 %v3627_v16  ;;  %5223 = vmatprep.subr.mxu0 %v8455_v10  ;;  %v4534_v13 = vld [vmem:[%s8359_s1 + $0x288] sm:$0xff] }
 0x87b   : > { %v5193_v24 = vpop.f32.mrf.mxu1  ;;  %3717 = vmatprep.mubr.f32.mxu0 %v8455_v10  ;;  %5224 = vmatpush3.msra.mxu0 %v7550_v30 }
 0x87c   : > { %v3628_v62 = vmax.f32 %v3621_v12, 0.0  ;;  %5225 = vmatprep.subr.mxu0 %v8455_v10 }
 0x87d   : > { %v3857_v28 = vpop.f32.mrf.mxu1  ;;  %5226 = vmatpush3.msra.mxu0 %v7557_v31  ;;  %v5426_v31 = vld [vmem:[%s8361_s3] ss:$0 sm:$0xff] }
 0x87e   : > { %v3858_v19 = vadd.f32 %v7563_v36, %v3857_v28  ;;  %3718 = vmatmul.mubr.f32.gmra.mxu0 %v3628_v62  ;;  %v4535_v62 = vld [vmem:[%s8359_s1 + $0x290] sm:$0xff] }
 0x87f   : > { %v5198_v6 = vpop.f32.mrf.mxu1  ;;  %5227 = vmatprep.mubr.msk.f32.mxu0 %vm5506_vm1, %v8455_v10 }
 0x880   : > { %v3881_v49 = vmax.f32 %v3858_v19, 0.0 }
 0x881   : > { %v3862_v20 = vpop.f32.mrf.mxu1 }
 0x882   : > { %v3863_v41 = vadd.f32 %v7563_v36, %v3862_v20  ;;  %5228 = vmatmul.mubr.msk.f32.vlgmr.msra.gmra.mxu0 %vm587_vm3, %v3881_v49  ;;  %v4536_v20 = vld [vmem:[%s8359_s1 + $0x298] sm:$0xff] }
 0x883   : > { %v5201_v30 = vpop.f32.mrf.mxu1  ;;  %5230 = vmatprep.mubr.msk.f32.mxu0 %vm5506_vm1, %v8455_v10 }
 0x884   : > { %v3882_v37 = vmax.f32 %v3863_v41, 0.0 }
 0x885   : > { %v3867_v58 = vpop.f32.mrf.mxu1 }
 0x886   : > { %v3868_v33 = vadd.f32 %v5426_v31, %v3867_v58  ;;  %5231 = vmatmul.mubr.msk.f32.gmra.mxu0 %vm587_vm3, %v3882_v37 }
 0x887   : > { %v5204_v42 = vpop.f32.mrf.mxu1  ;;  %5233 = vmatprep.mubr.msk.f32.mxu0 %vm5506_vm1, %v8455_v10 }
 0x888   : > { %v3883_v36 = vmax.f32 %v3868_v33, 0.0 }
 0x889   : > { %v3872_v25 = vpop.f32.mrf.mxu1 }
 0x88a   : > { %v3873_v32 = vadd.f32 %v5426_v31, %v3872_v25  ;;  %5234 = vmatmul.mubr.msk.f32.gmra.mxu0 %vm587_vm3, %v3883_v36 }
 0x88b   : > { %v5207_v18 = vpop.f32.mrf.mxu1  ;;  %5236 = vmatprep.mubr.msk.f32.mxu0 %vm5506_vm1, %v8455_v10 }
 0x88c   : > { %v3884_v53 = vmax.f32 %v3873_v32, 0.0 }
 0x88d   : > { %v3877_v56 = vpop.f32.mrf.mxu1 }
 0x88e   : > { %v3878_v34 = vadd.f32 %v5426_v31, %v3877_v56  ;;  %5237 = vmatmul.mubr.msk.f32.gmra.mxu0 %vm587_vm3, %v3884_v53 }
 0x88f   : > { %v5210_v61 = vpop.f32.mrf.mxu1  ;;  %5239 = vmatprep.mubr.msk.f32.mxu0 %vm5506_vm1, %v8455_v10 }
 0x890   : > { %v3885_v35 = vmax.f32 %v3878_v34, 0.0 }
 0x892   : > { %5240 = vmatmul.mubr.msk.f32.gmra.mxu0 %vm587_vm3, %v3885_v35 }
 0x92e   : > { %v3695_v7 = vpop.f32.mrf.mxu0 }
 0x92f   : > { %v3696_v15 = vadd.f32 %v3695_v7, %v6221_v22 }
 0x930   : > { %v3697_v16 = vpop.f32.mrf.mxu0 }
 0x931   : > { %v3735_v44 = vadd.f32 %v4533_v43, %v3696_v15  ;;  %v3698_v12 = vadd.f32 %v3697_v16, %v6777_v3 }
 0x932   : > { %v3701_v24 = vpop.f32.mrf.mxu0 }
 0x933   : > { %v8152_v28 = vmax.f32 %v3388_v52, %v3735_v44  ;;  %v3736_v19 = vadd.f32 %v4534_v13, %v3698_v12  ;;  %v3702_v6 = vadd.f32 %v3701_v24, %v6221_v22 }
 0x934   : > { %v3703_v49 = vpop.f32.mrf.mxu0 }
 0x935   : > { %v8161_v41 = vmax.f32 %v3389_v55, %v3736_v19  ;;  %v3737_v30 = vadd.f32 %v4535_v62, %v3702_v6  ;;  %v3704_v37 = vadd.f32 %v3703_v49, %v6777_v3  ;;  %v4559_v49 = vld [vmem:[%s8359_s1 + $0x2d0] sm:$0xff] }
 0x936   : > { %v3707_v58 = vpop.f32.mrf.mxu0 }
 0x937   : > { %v8170_v14 = vmax.f32 %v3390_v50, %v3737_v30  ;;  %v3738_v52 = vadd.f32 %v4536_v20, %v3704_v37  ;;  %v3708_v31 = vadd.f32 %v3707_v58, %v6221_v22 }
 0x938   : > { %v3709_v33 = vpop.f32.mrf.mxu0 }
 0x939   : > { %v8179_v2 = vmax.f32 %v3391_v59, %v3738_v52  ;;  %v3739_v55 = vadd.f32 %v4537_v40, %v3708_v31  ;;  %v3710_v42 = vadd.f32 %v3709_v33, %v6777_v3  ;;  %v4561_v40 = vld [vmem:[%s8359_s1 + $0x2e0] sm:$0xff] }
 0x93a   : > { %v3713_v36 = vpop.f32.mrf.mxu0 }
 0x93b   : > { %v8188_v38 = vmax.f32 %v3392_v1, %v3739_v55  ;;  %v3740_v50 = vadd.f32 %v4538_v27, %v3710_v42  ;;  %v3714_v25 = vadd.f32 %v3713_v36, %v6221_v22  ;;  %v4562_v55 = vld [vmem:[%s8359_s1 + $0x2e8] sm:$0xff] }
 0x93c   : > { %v3715_v32 = vpop.f32.mrf.mxu0 }
 0x93d   : > { %v8197_v46 = vmax.f32 %v3393_v23, %v3740_v50  ;;  %v3741_v59 = vadd.f32 %v4539_v63, %v3714_v25  ;;  %v3716_v18 = vadd.f32 %v3715_v32, %v6777_v3  ;;  %v4563_v50 = vld [vmem:[%s8359_s1 + $0x2f0] sm:$0xff] }
 0x93e   : > { %v3719_v53 = vpop.f32.mrf.mxu0 }
 0x93f   : > { %v8206_v8 = vmax.f32 %v3394_v29, %v3741_v59  ;;  %v3742_v1 = vadd.f32 %v4540_v4, %v3716_v18  ;;  %v3720_v56 = vadd.f32 %v3719_v53, %v6221_v22 }
 0x940   : > { %v3721_v34 = vpop.f32.mrf.mxu0 }
 0x941   : > { %v8215_v60 = vmax.f32 %v3395_v5, %v3742_v1  ;;  %v3743_v23 = vadd.f32 %v4541_v9, %v3720_v56  ;;  %v3722_v61 = vadd.f32 %v3721_v34, %v6777_v3 }
 0x942   : > { %v3967_v35 = vpop.f32.mrf.mxu0 }
 0x943   : > { %v8221_v11 = vmax.f32 %v3396_v0, %v3743_v23  ;;  %v3744_v17 = vadd.f32 %v4542_v39, %v3722_v61  ;;  %v3968_v29 = vadd.f32 %v7897_v21, %v3967_v35 }
 0x944   : > { %v5229_v7 = vpop.f32.mrf.mxu0 }
 0x945   : > { %v8227_v43 = vmax.f32 %v3397_v26, %v3744_v17  ;;  %v3991_v57 = vmax.f32 %v3968_v29, 0.0 }
 0x946   : > { %v3972_v54 = vpop.f32.mrf.mxu0 }
 0x947   : > { %v3973_v5 = vadd.f32 %v7897_v21, %v3972_v54  ;;  %4061 = vmatmul.mubr.f32.vlgmr.msra.gmra.mxu1 %v3991_v57 }
 0x948   : > { %v5232_v15 = vpop.f32.mrf.mxu0  ;;  %4066 = vmatprep.mubr.f32.mxu1 %v8455_v10 }
 0x949   : > { %v3992_v51 = vmax.f32 %v3973_v5, 0.0 }
 0x94a   : > { %v3977_v48 = vpop.f32.mrf.mxu0 }
 0x94b   : > { %v3978_v0 = vadd.f32 %v7897_v21, %v3977_v48  ;;  %4067 = vmatmul.mubr.f32.gmra.mxu1 %v3992_v51 }
 0x94c   : > { %v5235_v16 = vpop.f32.mrf.mxu0  ;;  %4072 = vmatprep.mubr.f32.mxu1 %v8455_v10 }
 0x94d   : > { %v3993_v47 = vmax.f32 %v3978_v0, 0.0 }
 0x94e   : > { %v3982_v45 = vpop.f32.mrf.mxu0 }
 0x94f   : > { %v3983_v26 = vadd.f32 %v7897_v21, %v3982_v45  ;;  %4073 = vmatmul.mubr.f32.gmra.mxu1 %v3993_v47 }
 0x950   : > { %v5238_v13 = vpop.f32.mrf.mxu0  ;;  %4078 = vmatprep.mubr.f32.mxu1 %v8455_v10 }
 0x951   : > { %v3994_v44 = vmax.f32 %v3983_v26, 0.0 }
 0x952   : > { %v3987_v12 = vpop.f32.mrf.mxu0 }
 0x953   : > { %v3988_v24 = vadd.f32 %v7897_v21, %v3987_v12  ;;  %4079 = vmatmul.mubr.f32.gmra.mxu1 %v3994_v44  ;;  %v4560_v21 = vld [vmem:[%s8359_s1 + $0x2d8] sm:$0xff] }
 0x954   : > { %v5241_v62 = vpop.f32.mrf.mxu0  ;;  %4084 = vmatprep.mubr.f32.mxu1 %v8455_v10 }
 0x955   : > { %v3995_v19 = vmax.f32 %v3988_v24, 0.0 }
 0x957   : > { %4085 = vmatmul.mubr.f32.gmra.mxu1 %v3995_v19 }
 0xa07   : > { %v4062_v6 = vpop.f32.mrf.mxu1 }
 0xa08   : > { %v4063_v20 = vadd.f32 %v4062_v6, %v6221_v22 }
 0xa09   : > { %v4064_v30 = vpop.f32.mrf.mxu1 }
 0xa0a   : > { %v4102_v37 = vadd.f32 %v4559_v49, %v4063_v20  ;;  %v4065_v10 = vadd.f32 %v4064_v30, %v6777_v3 }
 0xa0b   : > { %v4068_v58 = vpop.f32.mrf.mxu1 }
 0xa0c   : > { %v4122_v52 = vmax.f32 %v8152_v28, %v4102_v37  ;;  %v4103_v31 = vadd.f32 %v4560_v21, %v4065_v10  ;;  %v4069_v33 = vadd.f32 %v4068_v58, %v6221_v22 }
 0xa0d   : > { %v4070_v27 = vpop.f32.mrf.mxu1 }
 0xa0e   : > { %4137 = vst [vmem:[%s8256_s26] sm:$0xff] %v4122_v52  ;;  %v4123_v42 = vmax.f32 %v8161_v41, %v4103_v31  ;;  %v4104_v36 = vadd.f32 %v4561_v40, %v4069_v33  ;;  %v4071_v28 = vadd.f32 %v4070_v27, %v6777_v3  ;;  %v4564_v41 = vld [vmem:[%s8359_s1 + $0x2f8] sm:$0xff] }
 0xa0f   : > { %v4074_v63 = vpop.f32.mrf.mxu1 }
 0xa10   : > { %4138 = vst [vmem:[%s8256_s26 + $0x8] sm:$0xff] %v4123_v42  ;;  %v4124_v25 = vmax.f32 %v8170_v14, %v4104_v36  ;;  %v4105_v32 = vadd.f32 %v4562_v55, %v4071_v28  ;;  %v4075_v4 = vadd.f32 %v4074_v63, %v6221_v22  ;;  %v4565_v14 = vld [vmem:[%s8359_s1 + $0x300] sm:$0xff] }
 0xa11   : > { %v4076_v59 = vpop.f32.mrf.mxu1 }
 0xa12   : > { %4139 = vst [vmem:[%s8256_s26 + $0x10] sm:$0xff] %v4124_v25  ;;  %v4125_v18 = vmax.f32 %v8179_v2, %v4105_v32  ;;  %v4106_v53 = vadd.f32 %v4563_v50, %v4075_v4  ;;  %v4077_v9 = vadd.f32 %v4076_v59, %v6777_v3  ;;  %v4566_v2 = vld [vmem:[%s8359_s1 + $0x308] sm:$0xff] }
 0xa13   : > { %v4080_v1 = vpop.f32.mrf.mxu1 }
 0xa14   : > { %4140 = vst [vmem:[%s8256_s26 + $0x18] sm:$0xff] %v4125_v18  ;;  %v4126_v56 = vmax.f32 %v8188_v38, %v4106_v53  ;;  %v4107_v34 = vadd.f32 %v4564_v41, %v4077_v9  ;;  %v4081_v39 = vadd.f32 %v4080_v1, %v6221_v22  ;;  %v4567_v38 = vld [vmem:[%s8359_s1 + $0x310] sm:$0xff] }
 0xa15   : > { %v4082_v23 = vpop.f32.mrf.mxu1 }
 0xa16   : > { %4141 = vst [vmem:[%s8256_s26 + $0x20] sm:$0xff] %v4126_v56  ;;  %v4127_v61 = vmax.f32 %v8197_v46, %v4107_v34  ;;  %v4108_v35 = vadd.f32 %v4565_v14, %v4081_v39  ;;  %v4083_v17 = vadd.f32 %v4082_v23, %v6777_v3  ;;  %v4568_v46 = vld [vmem:[%s8359_s1 + $0x318] sm:$0xff] }
 0xa17   : > { %v4086_v29 = vpop.f32.mrf.mxu1 }
 0xa18   : > { %4142 = vst [vmem:[%s8256_s26 + $0x28] sm:$0xff] %v4127_v61  ;;  %v4128_v7 = vmax.f32 %v8206_v8, %v4108_v35  ;;  %v4109_v57 = vadd.f32 %v4566_v2, %v4083_v17  ;;  %v4087_v54 = vadd.f32 %v4086_v29, %v6221_v22 }
 0xa19   : > { %v4088_v5 = vpop.f32.mrf.mxu1 }
 0xa1a   : > { %4143 = vst [vmem:[%s8256_s26 + $0x30] sm:$0xff] %v4128_v7  ;;  %v4129_v15 = vmax.f32 %v8215_v60, %v4109_v57  ;;  %v4110_v51 = vadd.f32 %v4567_v38, %v4087_v54  ;;  %v4089_v48 = vadd.f32 %v4088_v5, %v6777_v3 }
 0xa1c   : > { %4144 = vst [vmem:[%s8256_s26 + $0x38] sm:$0xff] %v4129_v15  ;;  %v4130_v8 = vmax.f32 %v8221_v11, %v4110_v51  ;;  %v4111_v22 = vadd.f32 %v4568_v46, %v4089_v48 }
 0xa1e   : > { %4145 = vst [vmem:[%s8256_s26 + $0x40] sm:$0xff] %v4130_v8  ;;  %v4131_v60 = vmax.f32 %v8227_v43, %v4111_v22 }
 0xa20   : > { %4146 = vst [vmem:[%s8256_s26 + $0x48] sm:$0xff] %v4131_v60 }
 0xa21   : > { %5440 = shalt.err (!%p5437_p5)
}
 0xa22   : > { %s5441_s27 = scalar_lea.hbm %s8304_s23, 1280  ;;  %s5445_s24 = scalar_lea.hbm %s8366_s8, 2560 }
 0xa23   : > { %p5442_p6 = scmp.ne.s32.totalorder %s8304_s23, %s5441_s27  ;;  %p5446_p10 = scmp.lt.s32.totalorder %s8304_s23, %s8366_s8 }
 0xa24   : > { %p5447_p11 = scmp.lt.s32.totalorder %s5445_s24, %s5441_s27 }
 0xa25   : > { %p5443_p7 = pnand %p5442_p6, %p5600_p4 }
 0xa26   : > { %p5448_p12 = por %p5447_p11, %p5446_p10 }
 0xa27   : > { %p5444_p9 = pneg %p5443_p7 }
 0xa29   : > { %p5449_p13 = pnand %p5448_p12, %p5444_p9 }
 0xa2b   : > { %5452 = shalt.err (!%p5449_p13)
}
 0xa2c   : > { %s5508_s25 = smov 256   ;;  %s5509_s15 = smov 16  }
 0xa2d   : > { %5246 = dma.vmem_to_hbm [thread:$0]  (%p5600_p4), %s8306_s18, 1280, %s8304_s23, %s8313_s12, %s5508_s25, %s5508_s25, %s5509_s15  }
 0xa2e PF: > { %p5252_p0 = scmp.ge.s32.totalorder %s5503_s14, 2  ;;  %s4198_s28 = sand.u32 1, %s5483_s30  }
 0xa2f   : > { %s4199_s27 = scalar_lea.sflag [#allocation3], %s4198_s28 }
 0xa30   : > { %p5249_p1 = pnand %p5252_p0, %p5607_p8 }
 0xa32   : > { %p5250_p2 = pneg %p5249_p1 }
 0xa34   : > { %5478 = dma.done.wait (%p5250_p2), %s4199_s27, 1280  }
 0xa35   : > { %5480 = vsyncadd (%p5250_p2), %s4199_s27, 4294966016  ;;  %s23_s14 = sadd.s32 1, %s5503_s14   ;;  %s8581_s30 = smov %s5487_s10 }
 0xa36   : > { %p20_p3 = scmp.ge.s32.totalorder %s23_s14, 4   ;;  %s8582_s10 = smov %s5491_s11 }
 0xa37   : > { %s8583_s11 = smov %s5613_s22  ;;  %s8584_s12 = smov %s5499_s13 }
 0xa38   : > { %s8585_s13 = smov %s8587_s17  ;;  %22 = sbr.rel (!%p20_p3) target bundleno = 4 (0x4), region = 120 }
 0xa3d   :  { %4216 = vsyncpa [#allocation3], 1 }
 0xa3e   :  { %4218 = vsyncpa [#allocation3 + $0x1], 1 }

</bundles_post_ra>
